<compile_context>
chip_gen: v5e
topology: v5e:2x2
jax: 0.10.0
libtpu: 0.0.40
codegen_flags: <defaults>
</compile_context>

<pallas_src>
import functools

import jax
import jax.numpy as jnp
from jax.experimental import pallas as pl
from jax.experimental.pallas import tpu as pltpu


def _sigmoid(x):
    # plain exp/add/div: lowers cleanly on Mosaic and in interpret mode
    return 1.0 / (1.0 + jnp.exp(-x))


def _rbm_kernel(v_ref, w_ref, wt_ref, vb_ref, hb_ref, uh_ref, uv_ref,
                v_out_ref, *, k):
    b = v_ref.shape[0]
    h_dim = hb_ref.shape[1]
    v_dim = vb_ref.shape[1]

    # Hoist the bias broadcasts once (JAX does not CSE broadcast_in_dim).
    hb = jnp.broadcast_to(hb_ref[...].astype(jnp.float32), (b, h_dim))
    vb = jnp.broadcast_to(vb_ref[...].astype(jnp.float32), (b, v_dim))

    def v_to_h_probs(v_bf):
        # F.linear(v, W, h_bias) == v @ W.T + h_bias ; wt_ref holds W.T (bf16)
        return _sigmoid(jnp.dot(v_bf, wt_ref[...],
                                preferred_element_type=jnp.float32) + hb)

    def h_to_v_probs(h_bf):
        # F.linear(h, W.t(), v_bias) == h @ W + v_bias ; w_ref holds W (bf16)
        return _sigmoid(jnp.dot(h_bf, w_ref[...],
                                preferred_element_type=jnp.float32) + vb)

    def sample(p, u):
        # relu(sign(p - u)) == 1.0 where p > u else 0.0 ; {0,1} exact in bf16
        return (p > u).astype(jnp.bfloat16)

    v0 = v_ref[...].astype(jnp.bfloat16)

    # initial v -> h
    h = sample(v_to_h_probs(v0), uh_ref[0])

    v_ = v0
    for i in range(k):                       # k is small & static -> unrolled
        v_ = sample(h_to_v_probs(h), uv_ref[i])
        if i < k - 1:
            # the final v->h of the PyTorch loop is dead for forward(); skip it
            h = sample(v_to_h_probs(v_), uh_ref[i + 1])

    v_out_ref[...] = v_.astype(v_out_ref.dtype)


def rbm_forward(v, W, v_bias, h_bias, key, *, k=5, tile_b=None):
    """Returns (v, v_k), matching RBM.forward semantics."""
    B, V = v.shape
    H = W.shape[0]

    if tile_b is None:
        # Split the batch into two tiles (each a multiple of 8 sublanes) so
        # v7x's second TensorCore has independent work; single tile otherwise.
        tile_b = B // 2 if (B % 16 == 0 and B >= 16) else B
    assert B % tile_b == 0 and (tile_b % 8 == 0 or tile_b == B)

    # Pre-drawn uniforms for every Bernoulli sample (the torch.rand calls).
    k_h, k_v = jax.random.split(key)
    u_h = jax.random.uniform(k_h, (k, B, H), dtype=jnp.float32)
    u_v = jax.random.uniform(k_v, (k, B, V), dtype=jnp.float32)

    # bf16 weights (plus a one-time pre-transposed copy) for MXU-native matmuls.
    W_bf = W.astype(jnp.bfloat16)
    Wt_bf = W_bf.T

    grid = (B // tile_b,)
    v_k = pl.pallas_call(
        functools.partial(_rbm_kernel, k=k),
        out_shape=jax.ShapeDtypeStruct((B, V), jnp.float32),
        grid=grid,
        in_specs=[
            pl.BlockSpec((tile_b, V), lambda i: (i, 0)),        # v tile
            pl.BlockSpec((H, V), lambda i: (0, 0)),             # W   [H, V] bf16
            pl.BlockSpec((V, H), lambda i: (0, 0)),             # W.T [V, H] bf16
            pl.BlockSpec((1, V), lambda i: (0, 0)),             # v_bias
            pl.BlockSpec((1, H), lambda i: (0, 0)),             # h_bias
            pl.BlockSpec((k, tile_b, H), lambda i: (0, i, 0)),  # hidden uniforms
            pl.BlockSpec((k, tile_b, V), lambda i: (0, i, 0)),  # visible uniforms
        ],
        out_specs=pl.BlockSpec((tile_b, V), lambda i: (i, 0)),
        compiler_params=pltpu.CompilerParams(
            dimension_semantics=("parallel",)),
    )(v, W_bf, Wt_bf, v_bias.reshape(1, V), h_bias.reshape(1, H), u_h, u_v)

    return v, v_k


if __name__ == "__main__":
    # Small, MXU/vreg-friendly sizes consistent with the module's Linear layers.
    # B=128 fills the MXU systolic rows far better than a tiny batch while the
    # whole problem is still well under 1 MiB of VMEM.
    B, n_vis, n_hin, k = 128, 256, 128, 5

    key = jax.random.PRNGKey(0)
    k_w, k_v, k_noise = jax.random.split(key, 3)

    # Deterministic parameter init mirroring __init__: W ~ N(0,1)*0.01, biases = 0.
    W = jax.random.normal(k_w, (n_hin, n_vis), dtype=jnp.float32) * 0.01
    v_bias = jnp.zeros((n_vis,), dtype=jnp.float32)
    h_bias = jnp.zeros((n_hin,), dtype=jnp.float32)

    # Binary visible input (like binarized MNIST pixels).
    v_in = (jax.random.uniform(k_v, (B, n_vis)) > 0.5).astype(jnp.float32)

    v_orig, v_k = rbm_forward(v_in, W, v_bias, h_bias, k_noise, k=k)
    jax.block_until_ready(v_k)

    assert v_orig.shape == (B, n_vis) and v_k.shape == (B, n_vis)
    assert bool(jnp.all((v_k == 0.0) | (v_k == 1.0)))

    print("KERNEL_OK")
</pallas_src>

<mosaic_0001>
module attributes {stable_mosaic.version = 11 : i64} {
  func.func @_rbm_kernel(%arg0: i32, %arg1: memref<64x256xf32, #tpu.memory_space<vmem>>, %arg2: memref<128x256xbf16, #tpu.memory_space<vmem>>, %arg3: memref<256x128xbf16, #tpu.memory_space<vmem>>, %arg4: memref<1x256xf32, #tpu.memory_space<vmem>>, %arg5: memref<1x128xf32, #tpu.memory_space<vmem>>, %arg6: memref<5x64x128xf32, #tpu.memory_space<vmem>>, %arg7: memref<5x64x256xf32, #tpu.memory_space<vmem>>, %arg8: memref<64x256xf32, #tpu.memory_space<vmem>>) attributes {dimension_semantics = [#tpu.dimension_semantics<parallel>], iteration_bounds = array<i64: 2>, scalar_prefetch = 0 : i64, scratch_operands = 0 : i64, tpu.core_type = #tpu.core_type<tc>, window_params = [{transform_indices = @transform_0, window_bounds = array<i64: 64, 256>}, {pipeline_mode = #tpu.pipeline_mode<synchronous>, transform_indices = @transform_1, window_bounds = array<i64: 128, 256>}, {pipeline_mode = #tpu.pipeline_mode<synchronous>, transform_indices = @transform_2, window_bounds = array<i64: 256, 128>}, {pipeline_mode = #tpu.pipeline_mode<synchronous>, transform_indices = @transform_3, window_bounds = array<i64: 1, 256>}, {pipeline_mode = #tpu.pipeline_mode<synchronous>, transform_indices = @transform_4, window_bounds = array<i64: 1, 128>}, {transform_indices = @transform_5, window_bounds = array<i64: 5, 64, 128>}, {transform_indices = @transform_6, window_bounds = array<i64: 5, 64, 256>}, {transform_indices = @transform_7, window_bounds = array<i64: 64, 256>}]} {
    %c0 = arith.constant 0 : index
    %c0_0 = arith.constant 0 : index
    %0 = vector.load %arg5[%c0, %c0_0] : memref<1x128xf32, #tpu.memory_space<vmem>>, vector<1x128xf32>
    %1 = vector.shape_cast %0 : vector<1x128xf32> to vector<1x128xf32>
    %2 = vector.broadcast %1 : vector<1x128xf32> to vector<64x128xf32>
    %c0_1 = arith.constant 0 : index
    %c0_2 = arith.constant 0 : index
    %3 = vector.load %arg4[%c0_1, %c0_2] : memref<1x256xf32, #tpu.memory_space<vmem>>, vector<1x256xf32>
    %4 = vector.shape_cast %3 : vector<1x256xf32> to vector<1x256xf32>
    %5 = vector.broadcast %4 : vector<1x256xf32> to vector<64x256xf32>
    %c0_3 = arith.constant 0 : index
    %c0_4 = arith.constant 0 : index
    %6 = vector.load %arg1[%c0_3, %c0_4] : memref<64x256xf32, #tpu.memory_space<vmem>>, vector<64x256xf32>
    %7 = arith.truncf %6 : vector<64x256xf32> to vector<64x256xbf16>
    %c0_5 = arith.constant 0 : index
    %c0_6 = arith.constant 0 : index
    %8 = vector.load %arg3[%c0_5, %c0_6] : memref<256x128xbf16, #tpu.memory_space<vmem>>, vector<256x128xbf16>
    %cst = arith.constant dense<0.000000e+00> : vector<64x128xf32>
    %9 = tpu.matmul %7, %8, %cst {dimension_numbers = #tpu.dot_dimension_numbers<[1], [0], [0], [1], [0, 0, 1, 1], [], []>} : vector<64x256xbf16>, vector<256x128xbf16>, vector<64x128xf32> -> vector<64x128xf32>
    %10 = arith.addf %9, %2 : vector<64x128xf32>
    %cst_7 = arith.constant 0.000000e+00 : f32
    %11 = vector.broadcast %cst_7 : f32 to vector<64x128xf32>
    %12 = arith.subf %11, %10 : vector<64x128xf32>
    %13 = math.exp %12 : vector<64x128xf32>
    %cst_8 = arith.constant 1.000000e+00 : f32
    %14 = vector.broadcast %cst_8 : f32 to vector<64x128xf32>
    %15 = arith.addf %14, %13 : vector<64x128xf32>
    %cst_9 = arith.constant 1.000000e+00 : f32
    %16 = vector.broadcast %cst_9 : f32 to vector<64x128xf32>
    %17 = arith.divf %16, %15 : vector<64x128xf32>
    %c0_10 = arith.constant 0 : index
    %c0_11 = arith.constant 0 : index
    %c0_12 = arith.constant 0 : index
    %18 = vector.load %arg6[%c0_10, %c0_11, %c0_12] : memref<5x64x128xf32, #tpu.memory_space<vmem>>, vector<1x64x128xf32>
    %19 = vector.shape_cast %18 : vector<1x64x128xf32> to vector<64x128xf32>
    %20 = arith.cmpf ogt, %17, %19 : vector<64x128xf32>
    %21 = arith.extui %20 : vector<64x128xi1> to vector<64x128xi32>
    %22 = arith.sitofp %21 : vector<64x128xi32> to vector<64x128xf32>
    %23 = arith.truncf %22 : vector<64x128xf32> to vector<64x128xbf16>
    %c0_13 = arith.constant 0 : index
    %c0_14 = arith.constant 0 : index
    %24 = vector.load %arg2[%c0_13, %c0_14] : memref<128x256xbf16, #tpu.memory_space<vmem>>, vector<128x256xbf16>
    %cst_15 = arith.constant dense<0.000000e+00> : vector<64x256xf32>
    %25 = tpu.matmul %23, %24, %cst_15 {dimension_numbers = #tpu.dot_dimension_numbers<[1], [0], [0], [1], [0, 0, 1, 1], [], []>} : vector<64x128xbf16>, vector<128x256xbf16>, vector<64x256xf32> -> vector<64x256xf32>
    %26 = arith.addf %25, %5 : vector<64x256xf32>
    %cst_16 = arith.constant 0.000000e+00 : f32
    %27 = vector.broadcast %cst_16 : f32 to vector<64x256xf32>
    %28 = arith.subf %27, %26 : vector<64x256xf32>
    %29 = math.exp %28 : vector<64x256xf32>
    %cst_17 = arith.constant 1.000000e+00 : f32
    %30 = vector.broadcast %cst_17 : f32 to vector<64x256xf32>
    %31 = arith.addf %30, %29 : vector<64x256xf32>
    %cst_18 = arith.constant 1.000000e+00 : f32
    %32 = vector.broadcast %cst_18 : f32 to vector<64x256xf32>
    %33 = arith.divf %32, %31 : vector<64x256xf32>
    %c0_19 = arith.constant 0 : index
    %c0_20 = arith.constant 0 : index
    %c0_21 = arith.constant 0 : index
    %34 = vector.load %arg7[%c0_19, %c0_20, %c0_21] : memref<5x64x256xf32, #tpu.memory_space<vmem>>, vector<1x64x256xf32>
    %35 = vector.shape_cast %34 : vector<1x64x256xf32> to vector<64x256xf32>
    %36 = arith.cmpf ogt, %33, %35 : vector<64x256xf32>
    %37 = arith.extui %36 : vector<64x256xi1> to vector<64x256xi32>
    %38 = arith.sitofp %37 : vector<64x256xi32> to vector<64x256xf32>
    %39 = arith.truncf %38 : vector<64x256xf32> to vector<64x256xbf16>
    %c0_22 = arith.constant 0 : index
    %c0_23 = arith.constant 0 : index
    %40 = vector.load %arg3[%c0_22, %c0_23] : memref<256x128xbf16, #tpu.memory_space<vmem>>, vector<256x128xbf16>
    %cst_24 = arith.constant dense<0.000000e+00> : vector<64x128xf32>
    %41 = tpu.matmul %39, %40, %cst_24 {dimension_numbers = #tpu.dot_dimension_numbers<[1], [0], [0], [1], [0, 0, 1, 1], [], []>} : vector<64x256xbf16>, vector<256x128xbf16>, vector<64x128xf32> -> vector<64x128xf32>
    %42 = arith.addf %41, %2 : vector<64x128xf32>
    %cst_25 = arith.constant 0.000000e+00 : f32
    %43 = vector.broadcast %cst_25 : f32 to vector<64x128xf32>
    %44 = arith.subf %43, %42 : vector<64x128xf32>
    %45 = math.exp %44 : vector<64x128xf32>
    %cst_26 = arith.constant 1.000000e+00 : f32
    %46 = vector.broadcast %cst_26 : f32 to vector<64x128xf32>
    %47 = arith.addf %46, %45 : vector<64x128xf32>
    %cst_27 = arith.constant 1.000000e+00 : f32
    %48 = vector.broadcast %cst_27 : f32 to vector<64x128xf32>
    %49 = arith.divf %48, %47 : vector<64x128xf32>
    %c1 = arith.constant 1 : index
    %c0_28 = arith.constant 0 : index
    %c0_29 = arith.constant 0 : index
    %50 = vector.load %arg6[%c1, %c0_28, %c0_29] : memref<5x64x128xf32, #tpu.memory_space<vmem>>, vector<1x64x128xf32>
    %51 = vector.shape_cast %50 : vector<1x64x128xf32> to vector<64x128xf32>
    %52 = arith.cmpf ogt, %49, %51 : vector<64x128xf32>
    %53 = arith.extui %52 : vector<64x128xi1> to vector<64x128xi32>
    %54 = arith.sitofp %53 : vector<64x128xi32> to vector<64x128xf32>
    %55 = arith.truncf %54 : vector<64x128xf32> to vector<64x128xbf16>
    %c0_30 = arith.constant 0 : index
    %c0_31 = arith.constant 0 : index
    %56 = vector.load %arg2[%c0_30, %c0_31] : memref<128x256xbf16, #tpu.memory_space<vmem>>, vector<128x256xbf16>
    %cst_32 = arith.constant dense<0.000000e+00> : vector<64x256xf32>
    %57 = tpu.matmul %55, %56, %cst_32 {dimension_numbers = #tpu.dot_dimension_numbers<[1], [0], [0], [1], [0, 0, 1, 1], [], []>} : vector<64x128xbf16>, vector<128x256xbf16>, vector<64x256xf32> -> vector<64x256xf32>
    %58 = arith.addf %57, %5 : vector<64x256xf32>
    %cst_33 = arith.constant 0.000000e+00 : f32
    %59 = vector.broadcast %cst_33 : f32 to vector<64x256xf32>
    %60 = arith.subf %59, %58 : vector<64x256xf32>
    %61 = math.exp %60 : vector<64x256xf32>
    %cst_34 = arith.constant 1.000000e+00 : f32
    %62 = vector.broadcast %cst_34 : f32 to vector<64x256xf32>
    %63 = arith.addf %62, %61 : vector<64x256xf32>
    %cst_35 = arith.constant 1.000000e+00 : f32
    %64 = vector.broadcast %cst_35 : f32 to vector<64x256xf32>
    %65 = arith.divf %64, %63 : vector<64x256xf32>
    %c1_36 = arith.constant 1 : index
    %c0_37 = arith.constant 0 : index
    %c0_38 = arith.constant 0 : index
    %66 = vector.load %arg7[%c1_36, %c0_37, %c0_38] : memref<5x64x256xf32, #tpu.memory_space<vmem>>, vector<1x64x256xf32>
    %67 = vector.shape_cast %66 : vector<1x64x256xf32> to vector<64x256xf32>
    %68 = arith.cmpf ogt, %65, %67 : vector<64x256xf32>
    %69 = arith.extui %68 : vector<64x256xi1> to vector<64x256xi32>
    %70 = arith.sitofp %69 : vector<64x256xi32> to vector<64x256xf32>
    %71 = arith.truncf %70 : vector<64x256xf32> to vector<64x256xbf16>
    %c0_39 = arith.constant 0 : index
    %c0_40 = arith.constant 0 : index
    %72 = vector.load %arg3[%c0_39, %c0_40] : memref<256x128xbf16, #tpu.memory_space<vmem>>, vector<256x128xbf16>
    %cst_41 = arith.constant dense<0.000000e+00> : vector<64x128xf32>
    %73 = tpu.matmul %71, %72, %cst_41 {dimension_numbers = #tpu.dot_dimension_numbers<[1], [0], [0], [1], [0, 0, 1, 1], [], []>} : vector<64x256xbf16>, vector<256x128xbf16>, vector<64x128xf32> -> vector<64x128xf32>
    %74 = arith.addf %73, %2 : vector<64x128xf32>
    %cst_42 = arith.constant 0.000000e+00 : f32
    %75 = vector.broadcast %cst_42 : f32 to vector<64x128xf32>
    %76 = arith.subf %75, %74 : vector<64x128xf32>
    %77 = math.exp %76 : vector<64x128xf32>
    %cst_43 = arith.constant 1.000000e+00 : f32
    %78 = vector.broadcast %cst_43 : f32 to vector<64x128xf32>
    %79 = arith.addf %78, %77 : vector<64x128xf32>
    %cst_44 = arith.constant 1.000000e+00 : f32
    %80 = vector.broadcast %cst_44 : f32 to vector<64x128xf32>
    %81 = arith.divf %80, %79 : vector<64x128xf32>
    %c2 = arith.constant 2 : index
    %c0_45 = arith.constant 0 : index
    %c0_46 = arith.constant 0 : index
    %82 = vector.load %arg6[%c2, %c0_45, %c0_46] : memref<5x64x128xf32, #tpu.memory_space<vmem>>, vector<1x64x128xf32>
    %83 = vector.shape_cast %82 : vector<1x64x128xf32> to vector<64x128xf32>
    %84 = arith.cmpf ogt, %81, %83 : vector<64x128xf32>
    %85 = arith.extui %84 : vector<64x128xi1> to vector<64x128xi32>
    %86 = arith.sitofp %85 : vector<64x128xi32> to vector<64x128xf32>
    %87 = arith.truncf %86 : vector<64x128xf32> to vector<64x128xbf16>
    %c0_47 = arith.constant 0 : index
    %c0_48 = arith.constant 0 : index
    %88 = vector.load %arg2[%c0_47, %c0_48] : memref<128x256xbf16, #tpu.memory_space<vmem>>, vector<128x256xbf16>
    %cst_49 = arith.constant dense<0.000000e+00> : vector<64x256xf32>
    %89 = tpu.matmul %87, %88, %cst_49 {dimension_numbers = #tpu.dot_dimension_numbers<[1], [0], [0], [1], [0, 0, 1, 1], [], []>} : vector<64x128xbf16>, vector<128x256xbf16>, vector<64x256xf32> -> vector<64x256xf32>
    %90 = arith.addf %89, %5 : vector<64x256xf32>
    %cst_50 = arith.constant 0.000000e+00 : f32
    %91 = vector.broadcast %cst_50 : f32 to vector<64x256xf32>
    %92 = arith.subf %91, %90 : vector<64x256xf32>
    %93 = math.exp %92 : vector<64x256xf32>
    %cst_51 = arith.constant 1.000000e+00 : f32
    %94 = vector.broadcast %cst_51 : f32 to vector<64x256xf32>
    %95 = arith.addf %94, %93 : vector<64x256xf32>
    %cst_52 = arith.constant 1.000000e+00 : f32
    %96 = vector.broadcast %cst_52 : f32 to vector<64x256xf32>
    %97 = arith.divf %96, %95 : vector<64x256xf32>
    %c2_53 = arith.constant 2 : index
    %c0_54 = arith.constant 0 : index
    %c0_55 = arith.constant 0 : index
    %98 = vector.load %arg7[%c2_53, %c0_54, %c0_55] : memref<5x64x256xf32, #tpu.memory_space<vmem>>, vector<1x64x256xf32>
    %99 = vector.shape_cast %98 : vector<1x64x256xf32> to vector<64x256xf32>
    %100 = arith.cmpf ogt, %97, %99 : vector<64x256xf32>
    %101 = arith.extui %100 : vector<64x256xi1> to vector<64x256xi32>
    %102 = arith.sitofp %101 : vector<64x256xi32> to vector<64x256xf32>
    %103 = arith.truncf %102 : vector<64x256xf32> to vector<64x256xbf16>
    %c0_56 = arith.constant 0 : index
    %c0_57 = arith.constant 0 : index
    %104 = vector.load %arg3[%c0_56, %c0_57] : memref<256x128xbf16, #tpu.memory_space<vmem>>, vector<256x128xbf16>
    %cst_58 = arith.constant dense<0.000000e+00> : vector<64x128xf32>
    %105 = tpu.matmul %103, %104, %cst_58 {dimension_numbers = #tpu.dot_dimension_numbers<[1], [0], [0], [1], [0, 0, 1, 1], [], []>} : vector<64x256xbf16>, vector<256x128xbf16>, vector<64x128xf32> -> vector<64x128xf32>
    %106 = arith.addf %105, %2 : vector<64x128xf32>
    %cst_59 = arith.constant 0.000000e+00 : f32
    %107 = vector.broadcast %cst_59 : f32 to vector<64x128xf32>
    %108 = arith.subf %107, %106 : vector<64x128xf32>
    %109 = math.exp %108 : vector<64x128xf32>
    %cst_60 = arith.constant 1.000000e+00 : f32
    %110 = vector.broadcast %cst_60 : f32 to vector<64x128xf32>
    %111 = arith.addf %110, %109 : vector<64x128xf32>
    %cst_61 = arith.constant 1.000000e+00 : f32
    %112 = vector.broadcast %cst_61 : f32 to vector<64x128xf32>
    %113 = arith.divf %112, %111 : vector<64x128xf32>
    %c3 = arith.constant 3 : index
    %c0_62 = arith.constant 0 : index
    %c0_63 = arith.constant 0 : index
    %114 = vector.load %arg6[%c3, %c0_62, %c0_63] : memref<5x64x128xf32, #tpu.memory_space<vmem>>, vector<1x64x128xf32>
    %115 = vector.shape_cast %114 : vector<1x64x128xf32> to vector<64x128xf32>
    %116 = arith.cmpf ogt, %113, %115 : vector<64x128xf32>
    %117 = arith.extui %116 : vector<64x128xi1> to vector<64x128xi32>
    %118 = arith.sitofp %117 : vector<64x128xi32> to vector<64x128xf32>
    %119 = arith.truncf %118 : vector<64x128xf32> to vector<64x128xbf16>
    %c0_64 = arith.constant 0 : index
    %c0_65 = arith.constant 0 : index
    %120 = vector.load %arg2[%c0_64, %c0_65] : memref<128x256xbf16, #tpu.memory_space<vmem>>, vector<128x256xbf16>
    %cst_66 = arith.constant dense<0.000000e+00> : vector<64x256xf32>
    %121 = tpu.matmul %119, %120, %cst_66 {dimension_numbers = #tpu.dot_dimension_numbers<[1], [0], [0], [1], [0, 0, 1, 1], [], []>} : vector<64x128xbf16>, vector<128x256xbf16>, vector<64x256xf32> -> vector<64x256xf32>
    %122 = arith.addf %121, %5 : vector<64x256xf32>
    %cst_67 = arith.constant 0.000000e+00 : f32
    %123 = vector.broadcast %cst_67 : f32 to vector<64x256xf32>
    %124 = arith.subf %123, %122 : vector<64x256xf32>
    %125 = math.exp %124 : vector<64x256xf32>
    %cst_68 = arith.constant 1.000000e+00 : f32
    %126 = vector.broadcast %cst_68 : f32 to vector<64x256xf32>
    %127 = arith.addf %126, %125 : vector<64x256xf32>
    %cst_69 = arith.constant 1.000000e+00 : f32
    %128 = vector.broadcast %cst_69 : f32 to vector<64x256xf32>
    %129 = arith.divf %128, %127 : vector<64x256xf32>
    %c3_70 = arith.constant 3 : index
    %c0_71 = arith.constant 0 : index
    %c0_72 = arith.constant 0 : index
    %130 = vector.load %arg7[%c3_70, %c0_71, %c0_72] : memref<5x64x256xf32, #tpu.memory_space<vmem>>, vector<1x64x256xf32>
    %131 = vector.shape_cast %130 : vector<1x64x256xf32> to vector<64x256xf32>
    %132 = arith.cmpf ogt, %129, %131 : vector<64x256xf32>
    %133 = arith.extui %132 : vector<64x256xi1> to vector<64x256xi32>
    %134 = arith.sitofp %133 : vector<64x256xi32> to vector<64x256xf32>
    %135 = arith.truncf %134 : vector<64x256xf32> to vector<64x256xbf16>
    %c0_73 = arith.constant 0 : index
    %c0_74 = arith.constant 0 : index
    %136 = vector.load %arg3[%c0_73, %c0_74] : memref<256x128xbf16, #tpu.memory_space<vmem>>, vector<256x128xbf16>
    %cst_75 = arith.constant dense<0.000000e+00> : vector<64x128xf32>
    %137 = tpu.matmul %135, %136, %cst_75 {dimension_numbers = #tpu.dot_dimension_numbers<[1], [0], [0], [1], [0, 0, 1, 1], [], []>} : vector<64x256xbf16>, vector<256x128xbf16>, vector<64x128xf32> -> vector<64x128xf32>
    %138 = arith.addf %137, %2 : vector<64x128xf32>
    %cst_76 = arith.constant 0.000000e+00 : f32
    %139 = vector.broadcast %cst_76 : f32 to vector<64x128xf32>
    %140 = arith.subf %139, %138 : vector<64x128xf32>
    %141 = math.exp %140 : vector<64x128xf32>
    %cst_77 = arith.constant 1.000000e+00 : f32
    %142 = vector.broadcast %cst_77 : f32 to vector<64x128xf32>
    %143 = arith.addf %142, %141 : vector<64x128xf32>
    %cst_78 = arith.constant 1.000000e+00 : f32
    %144 = vector.broadcast %cst_78 : f32 to vector<64x128xf32>
    %145 = arith.divf %144, %143 : vector<64x128xf32>
    %c4 = arith.constant 4 : index
    %c0_79 = arith.constant 0 : index
    %c0_80 = arith.constant 0 : index
    %146 = vector.load %arg6[%c4, %c0_79, %c0_80] : memref<5x64x128xf32, #tpu.memory_space<vmem>>, vector<1x64x128xf32>
    %147 = vector.shape_cast %146 : vector<1x64x128xf32> to vector<64x128xf32>
    %148 = arith.cmpf ogt, %145, %147 : vector<64x128xf32>
    %149 = arith.extui %148 : vector<64x128xi1> to vector<64x128xi32>
    %150 = arith.sitofp %149 : vector<64x128xi32> to vector<64x128xf32>
    %151 = arith.truncf %150 : vector<64x128xf32> to vector<64x128xbf16>
    %c0_81 = arith.constant 0 : index
    %c0_82 = arith.constant 0 : index
    %152 = vector.load %arg2[%c0_81, %c0_82] : memref<128x256xbf16, #tpu.memory_space<vmem>>, vector<128x256xbf16>
    %cst_83 = arith.constant dense<0.000000e+00> : vector<64x256xf32>
    %153 = tpu.matmul %151, %152, %cst_83 {dimension_numbers = #tpu.dot_dimension_numbers<[1], [0], [0], [1], [0, 0, 1, 1], [], []>} : vector<64x128xbf16>, vector<128x256xbf16>, vector<64x256xf32> -> vector<64x256xf32>
    %154 = arith.addf %153, %5 : vector<64x256xf32>
    %cst_84 = arith.constant 0.000000e+00 : f32
    %155 = vector.broadcast %cst_84 : f32 to vector<64x256xf32>
    %156 = arith.subf %155, %154 : vector<64x256xf32>
    %157 = math.exp %156 : vector<64x256xf32>
    %cst_85 = arith.constant 1.000000e+00 : f32
    %158 = vector.broadcast %cst_85 : f32 to vector<64x256xf32>
    %159 = arith.addf %158, %157 : vector<64x256xf32>
    %cst_86 = arith.constant 1.000000e+00 : f32
    %160 = vector.broadcast %cst_86 : f32 to vector<64x256xf32>
    %161 = arith.divf %160, %159 : vector<64x256xf32>
    %c4_87 = arith.constant 4 : index
    %c0_88 = arith.constant 0 : index
    %c0_89 = arith.constant 0 : index
    %162 = vector.load %arg7[%c4_87, %c0_88, %c0_89] : memref<5x64x256xf32, #tpu.memory_space<vmem>>, vector<1x64x256xf32>
    %163 = vector.shape_cast %162 : vector<1x64x256xf32> to vector<64x256xf32>
    %164 = arith.cmpf ogt, %161, %163 : vector<64x256xf32>
    %165 = arith.extui %164 : vector<64x256xi1> to vector<64x256xi32>
    %166 = arith.sitofp %165 : vector<64x256xi32> to vector<64x256xf32>
    %167 = arith.truncf %166 : vector<64x256xf32> to vector<64x256xbf16>
    %168 = arith.extf %167 : vector<64x256xbf16> to vector<64x256xf32>
    %c0_90 = arith.constant 0 : index
    %c0_91 = arith.constant 0 : index
    %169 = vector.load %arg8[%c0_90, %c0_91] : memref<64x256xf32, #tpu.memory_space<vmem>>, vector<64x256xf32>
    tpu.vector_store %arg8[%c0_90, %c0_91], %168 {strides = array<i32>} : memref<64x256xf32, #tpu.memory_space<vmem>>, vector<64x256xf32>,
    return
  }
  func.func @transform_0(%arg0: i32) -> (i32, i32) {
    %c0_i32 = arith.constant 0 : i32
    %c0_i32_0 = arith.constant 0 : i32
    return %arg0, %c0_i32 : i32, i32
  }
  func.func @transform_1(%arg0: i32) -> (i32, i32) {
    %c0_i32 = arith.constant 0 : i32
    %c0_i32_0 = arith.constant 0 : i32
    %c0_i32_1 = arith.constant 0 : i32
    return %c0_i32, %c0_i32_0 : i32, i32
  }
  func.func @transform_2(%arg0: i32) -> (i32, i32) {
    %c0_i32 = arith.constant 0 : i32
    %c0_i32_0 = arith.constant 0 : i32
    %c0_i32_1 = arith.constant 0 : i32
    return %c0_i32, %c0_i32_0 : i32, i32
  }
  func.func @transform_3(%arg0: i32) -> (i32, i32) {
    %c0_i32 = arith.constant 0 : i32
    %c0_i32_0 = arith.constant 0 : i32
    %c0_i32_1 = arith.constant 0 : i32
    return %c0_i32, %c0_i32_0 : i32, i32
  }
  func.func @transform_4(%arg0: i32) -> (i32, i32) {
    %c0_i32 = arith.constant 0 : i32
    %c0_i32_0 = arith.constant 0 : i32
    %c0_i32_1 = arith.constant 0 : i32
    return %c0_i32, %c0_i32_0 : i32, i32
  }
  func.func @transform_5(%arg0: i32) -> (i32, i32, i32) {
    %c0_i32 = arith.constant 0 : i32
    %c0_i32_0 = arith.constant 0 : i32
    %c0_i32_1 = arith.constant 0 : i32
    return %c0_i32, %arg0, %c0_i32_0 : i32, i32, i32
  }
  func.func @transform_6(%arg0: i32) -> (i32, i32, i32) {
    %c0_i32 = arith.constant 0 : i32
    %c0_i32_0 = arith.constant 0 : i32
    %c0_i32_1 = arith.constant 0 : i32
    return %c0_i32, %arg0, %c0_i32_0 : i32, i32, i32
  }
  func.func @transform_7(%arg0: i32) -> (i32, i32) {
    %c0_i32 = arith.constant 0 : i32
    %c0_i32_0 = arith.constant 0 : i32
    return %arg0, %c0_i32 : i32, i32
  }
}

</mosaic_0001>

<bundles_post_ra>
// kernel: tpu_custom_call.1
= control target key start
LH: loop header
LB: loop body
LE: loop exit
PB: predicated region body
PF: predicated region fallthrough
CT: control target
= control target key end

     0   :  { %s8125_s0 = inlined_call_operand.hbm [shape: f32[128,256], index: 0, kind: input, shape index: {}]   ;;  %s8126_s1 = inlined_call_operand.hbm [shape: bf16[128,256], index: 1, kind: input, shape index: {}]   ;;  %s8127_s2 = inlined_call_operand.hbm [shape: bf16[256,128], index: 2, kind: input, shape index: {}]   ;;  %s8128_s3 = inlined_call_operand.vmem [shape: f32[1,256], index: 3, kind: input, shape index: {}]   ;;  %s8129_s4 = inlined_call_operand.vmem [shape: f32[1,128], index: 4, kind: input, shape index: {}]   ;;  %s8130_s5 = inlined_call_operand.hbm [shape: f32[5,128,128], index: 5, kind: input, shape index: {}]   ;;  %s8131_s6 = inlined_call_operand.hbm [shape: f32[5,128,256], index: 6, kind: input, shape index: {}]   ;;  %s8132_s7 = inlined_call_operand.hbm [shape: f32[128,256], index: 7, kind: output, shape index: {}]  }
   0x1   :  { %8136 = sst [smem:[#allocation25_spill]] %s8126_s1 }
   0x2   :  { %8137 = sst [smem:[#allocation26_spill]] %s8127_s2 }
   0x3   :  { %12 = vsyncpa [#allocation3], 0 }
   0x4   :  { %14 = vsyncpa [#allocation3 + $0x1], 0 }
   0x5   :  { %15 = vsyncpa [#allocation6], 0 }
   0x6   :  { %16 = vsyncpa [#allocation9], 0 }
   0x7   :  { %18 = vsyncpa [#allocation9 + $0x1], 0 }
   0x8   :  { %19 = vsyncpa [#allocation4], 0 }
   0x9   :  { %21 = vsyncpa [#allocation4 + $0x1], 0  ;;  %s5724_s24 = smov 0   ;;  %s5726_s25 = smov 0  }
   0xa   :  { %s5728_s26 = smov 0   ;;  %s5730_s27 = smov 0  }
   0xb LB: > { %8138 = sst [smem:[#allocation22_spill]] %s5655_s26  ;;  %s5745_s28 = sadd.s32 4294967295, %s5659_s27   ;;  %s5659_s27 = sphi %s5730_s27, %s8322_s27   ;;  %s5655_s26 = sphi %s5728_s26, %s8324_s26   ;;  %s5651_s25 = sphi %s5726_s25, %s8326_s25   ;;  %s5647_s24 = sphi %s5724_s24, %s8325_s24  }
   0xc   : > { %s4319_s29 = sadd.s32 4294967294, %s5659_s27   ;;  %s5749_s30 = sadd.s32 1, %s5659_s27  }
   0xd   : > { %8139 = sst [smem:[#allocation23_spill]] %s5749_s30  ;;  %s34_s8 = sadd.s32 1, %s5655_s26 }
   0xe   : > { %s31_s9 = ssub.s32 %s5659_s27, %s5749_s30  ;;  %p41_p0 = scmp.ne.s32.totalorder %s5655_s26, %s5651_s25 }
   0xf   : > { %p32_p1 = scmp.eq.s32.totalorder %s31_s9, 0  ;;  %p42_p2 = scmp.eq.s32.totalorder %s5659_s27, 0 }
  0x10   : > { %p47_p3 = scmp.ne.s32.totalorder %s5651_s25, %s5647_s24  ;;  %p48_p4 = scmp.eq.s32.totalorder %s5745_s28, 0 }
  0x11   : > { %s5761_s10 = scalar_select %p32_p1, %s5655_s26, %s34_s8  }
  0x12   : > { %p5763_p5 = por %p42_p2, %p41_p0  ;;  %p5769_p6 = por %p48_p4, %p47_p3 }
  0x13   : > { %8140 = sst [smem:[#allocation24_spill]] %s5761_s10  ;;  %p207_p7 = scmp.eq.s32.totalorder %s5745_s28, 1 }
  0x14   : > { %p213_p8 = scmp.eq.s32.totalorder %s4319_s29, 1  ;;  %p4320_p9 = scmp.ge.s32.totalorder %s5659_s27, 1 }
  0x15   : > { %p220_p10 = scmp.lt.s32.totalorder %s5659_s27, 3  ;;  %p5776_p11 = por %p207_p7, %p41_p0 }
  0x16   : > { %p5780_p12 = por %p213_p8, %p47_p3  ;;  %s8146_s1 = sld [smem:[#allocation25_spill]] }
  0x17   : > { %p5784_p13 = pnand %p4320_p9, %p220_p10  ;;  %s5661_s19 = smov [#allocation5]  }
  0x18   : > { %s233_s20 = sshll.u32 %s5661_s19, 4  ;;  %s8147_s2 = sld [smem:[#allocation26_spill]]  ;;  %s234_s20 = int_to_ptr.vmem [resolvable:$true] %s233_s20 }
  0x19   : > { %p4909_p1 = pneg %p5784_p13  ;;  %s5662_s29 = smov 128  }
  0x1a   : > { %s5663_s8 = smov 8   ;;  %s5664_s9 = smov [#allocation7]  }
  0x1b   : > { %p4910_p0 = pnand %p4909_p1, %p48_p4  ;;  %s247_s16 = sshll.u32 %s5664_s9, 4  ;;  %s248_s16 = int_to_ptr.vmem [resolvable:$true] %s247_s16 }
  0x1c   : > { %s231_s18 = sshll.u32 %s8146_s1, 4  ;;  %s5665_s17 = smov 64   ;;  %s232_s18 = int_to_ptr.hbm [resolvable:$true] %s231_s18 }
  0x1d   : > { %4912 = dma.hbm_to_vmem [thread:$0]  (!%p4910_p0), %s232_s18, 2048, %s234_s20, [#allocation6], %s5662_s29, %s5662_s29, %s5663_s8  }
  0x1e   : > { %s245_s23 = sshll.u32 %s8147_s2, 4  ;;  %s5666_s1 = smov 4   ;;  %s246_s23 = int_to_ptr.hbm [resolvable:$true] %s245_s23 }
  0x1f   : > { %4915 = dma.hbm_to_vmem [thread:$0]  (!%p4910_p0), %s246_s23, 2048, %s248_s16, [#allocation6], %s5665_s17, %s5665_s17, %s5666_s1  }
  0x20   : > { %p4323_p2 = scmp.ge.s32.totalorder %s5659_s27, 2 }
  0x21   : > { %s5802_s19 = sand.u32 (!%p4323_p2), 1, %s5655_s26   ;;  %s4837_s18 = sshll.u32 (!%p4323_p2), %s5659_s27, 7 }
  0x22   : > { %263 = sbr.rel (%p4323_p2) target bundleno = 76 (0x4c), region = 32  ;;  %s4324_s20 = sshll.u32 (!%p4323_p2), %s5802_s19, 7 }
  0x23   : > { %s277_s1 = scalar_lea.hbm (!%p4323_p2), %s8125_s0, %s4837_s18  ;;  %s271_s29 = scalar_lea.vmem (!%p4323_p2), [#allocation2], %s4324_s20 }
  0x24   : > { %s278_s23 = sshll.u32 (!%p4323_p2), %s277_s1, 4  ;;  %s280_s8 = sshll.u32 (!%p4323_p2), %s271_s29, 4  ;;  %s279_s23 = int_to_ptr.hbm [resolvable:$true] %s278_s23  ;;  %s281_s8 = int_to_ptr.vmem [resolvable:$true] %s280_s8 }
  0x25   : > { %s268_s9 = scalar_lea.sflag (!%p4323_p2), [#allocation3], %s5802_s19  ;;  %s5557_s16 = sshra.s32 (!%p4323_p2), %s279_s23, 4  ;;  %s5558_s16 = int_to_ptr.hbm [resolvable:$true] %s5557_s16 }
  0x26   : > { %s5559_s17 = scalar_lea.hbm (!%p4323_p2), %s5558_s16, 128  ;;  %s5563_s26 = scalar_lea.hbm (!%p4323_p2), %s8125_s0, 256 }
  0x27   : > { %p5560_p3 = scmp.ne.s32.totalorder %s5558_s16, %s5559_s17  ;;  %p5564_p9 = scmp.lt.s32.totalorder %s5558_s16, %s8125_s0 }
  0x28   : > { %p5565_p10 = scmp.lt.s32.totalorder %s5563_s26, %s5559_s17 }
  0x29   : > { %p5561_p7 = pnand %p5560_p3, %p5763_p5 }
  0x2a   : > { %p5566_p1 = por %p5565_p10, %p5564_p9 }
  0x2b   : > { %p5562_p8 = pneg %p5561_p7 }
  0x2d   : > { %p5567_p0 = pnand %p5566_p1, %p5562_p8 }
  0x2f   : > { %5570 = shalt.err (!%p5567_p0)
}
  0x30   : > { %s5667_s20 = smov 256   ;;  %s5668_s22 = smov 16  }
  0x31   : > { %4883 = dma.hbm_to_vmem [thread:$0]  (%p5763_p5), %s279_s23, 2048, %s281_s8, %s268_s9, %s5667_s20, %s5667_s20, %s5668_s22  }
  0x32   : > { %s290_s2 = sand.u32 1, %s5659_s27   ;;  %s4875_s10 = smul.u32 320, %s5802_s19 }
  0x33   : > { %s4838_s30 = sshll.u32 %s5659_s27, 6  ;;  %s5669_s21 = smov 2048  }
  0x34   : > { %s299_s29 = scalar_lea.hbm %s8130_s5, %s4838_s30  ;;  %s294_s23 = scalar_lea.vmem [#allocation8], %s4875_s10 }
  0x35   : > { %s4884_s16 = scalar_select %p5763_p5, [#allocation0], [#allocation16] }
  0x36   : > { %s312_s17 = sshll.u32 %s299_s29, 4  ;;  %s314_s8 = sshll.u32 %s294_s23, 4  ;;  %s313_s17 = int_to_ptr.hbm [resolvable:$true] %s312_s17  ;;  %s315_s8 = int_to_ptr.vmem [resolvable:$true] %s314_s8 }
  0x37   : > { %s304_s9 = sld [smem:[%s4884_s16]]   ;;  %s5670_s20 = smov 1024  }
  0x38   : > { %4885 = sst [smem:[#allocation13]] (%p5763_p5), %s5669_s21  ;;  %s5671_s22 = smov 8  }
  0x39   : > { %4886 = sst [smem:[#allocation13 + $0x1]] (%p5763_p5), %s5670_s20  ;;  %s5672_s30 = smov 128  }
  0x3a   : > { %4887 = sst [smem:[#allocation13 + $0x2]] (%p5763_p5), %s5671_s22  ;;  %s5842_s26 = scalar_lea.sflag [#allocation9], %s290_s2 }
  0x3b   : > { %4888 = sst [smem:[#allocation13 + $0x3]] (%p5763_p5), %s5672_s30  ;;  %s5673_s29 = smov [#allocation12]  }
  0x3c   : > { %4889 = sst [smem:[#allocation13 + $0x4]] (%p5763_p5), %s5672_s30 }
  0x3d   : > { %s4330_s1 = sshll.u32 %s304_s9, 26  ;;  %4890 = sst [smem:[#allocation13 + $0x5]] (%p5763_p5), %s5671_s22 }
  0x3e   : > { %s4331_s10 = sadd.s32 134217728, %s4330_s1 }
  0x3f   : > { %4891 = dma.general (%p5763_p5), %s313_s17, 5120, %s315_s8, %s5842_s26, %s5673_s29, [#allocation13], %s4331_s10, 0  }
  0x40   : > { %s4876_s16 = smul.u32 640, %s5802_s19  ;;  %s347_s21 = scalar_lea.hbm %s8131_s6, %s4837_s18 }
  0x41   : > { %s4892_s2 = scalar_select %p5763_p5, [#allocation0], [#allocation17] }
  0x42   : > { %s360_s20 = sshll.u32 %s347_s21, 4  ;;  %s341_s17 = scalar_lea.vmem [#allocation10], %s4876_s16  ;;  %s361_s20 = int_to_ptr.hbm [resolvable:$true] %s360_s20 }
  0x43   : > { %s352_s22 = sld [smem:[%s4892_s2]]   ;;  %s362_s8 = sshll.u32 %s341_s17, 4  ;;  %s363_s8 = int_to_ptr.vmem [resolvable:$true] %s362_s8 }
  0x44   : > { %s5674_s30 = smov 4096   ;;  %s5675_s19 = smov 2048  }
  0x45   : > { %4893 = sst [smem:[#allocation15]] (%p5763_p5), %s5674_s30  ;;  %s5676_s18 = smov 8  }
  0x46   : > { %4894 = sst [smem:[#allocation15 + $0x1]] (%p5763_p5), %s5675_s19  ;;  %s5677_s10 = smov 256  }
  0x47   : > { %4895 = sst [smem:[#allocation15 + $0x2]] (%p5763_p5), %s5676_s18  ;;  %s5678_s16 = smov 16  }
  0x48   : > { %4896 = sst [smem:[#allocation15 + $0x3]] (%p5763_p5), %s5677_s10  ;;  %s5679_s23 = smov [#allocation14]  }
  0x49   : > { %s4335_s1 = sshll.u32 %s352_s22, 26  ;;  %4897 = sst [smem:[#allocation15 + $0x4]] (%p5763_p5), %s5677_s10 }
  0x4a   : > { %s4336_s29 = sadd.s32 134217728, %s4335_s1  ;;  %4898 = sst [smem:[#allocation15 + $0x5]] (%p5763_p5), %s5678_s16 }
  0x4b   : > { %4899 = dma.general (%p5763_p5), %s361_s20, 10240, %s363_s8, %s5842_s26, %s5679_s23, [#allocation15], %s4336_s29, 0  }
  0x4c PF: > { %387 = sbr.rel (%p5784_p13) target bundleno = 1912 (0x778), region = 48  ;;  %s5873_s9 = sand.u32 (!%p5784_p13), 1, %s5651_s25  }
  0x4d   : > { %s4338_s21 = sshll.u32 (!%p5784_p13), %s5873_s9, 7  ;;  %s390_s2 = scalar_lea.sflag (!%p5784_p13), [#allocation3], %s5873_s9 }
  0x4e   : > { %s5879_s22 = scalar_lea.vmem (!%p5784_p13), [#allocation2], %s4338_s21 }
  0x51   : > { %5630 = dma.done.wait (%p5769_p6), %s390_s2, 2048  }
  0x52   : > { %5632 = vsyncadd (%p5769_p6), %s390_s2, 4294965248 }
  0x53   : > { %5634 = dma.done.wait (%p48_p4), [#allocation6], 4096  }
  0x54   : > { %5636 = vsyncadd (%p48_p4), [#allocation6], 4294963200  ;;  %s409_s11 = sand.u32 1, %s5745_s28   ;;  %s4877_s15 = smul.u32 320, %s5873_s9 }
  0x55   : > { %s410_s26 = scalar_lea.sflag [#allocation9], %s409_s11 }
  0x56   : > { %s5891_s20 = scalar_lea.vmem [#allocation8], %s4877_s15 }
  0x57   : > { %5638 = dma.done.wait (%p5769_p6), %s410_s26, 15360  }
  0x58   : > { %5640 = vsyncadd (%p5769_p6), %s410_s26, 4294951936  ;;  %v5897_v0 = vld [vmem:[#allocation7 + $0x38] sm:$0xff]  ;;  %v5903_v2 = vld [vmem:[#allocation7 + $0x30] sm:$0xff]  ;;  %s4878_s19 = smul.u32 640, %s5873_s9  ;;  %s7920_s15 = scalar_lea.vmem [#allocation11], %s4338_s21 }
  0x59   : > { %v5899_v1 = vld [vmem:[#allocation7 + $0x78] sm:$0xff]  ;;  %631 = vmatpush.bf16.msra.mxu0 %v5897_v0  ;;  %v5905_v3 = vld [vmem:[#allocation7 + $0x70] sm:$0xff]  ;;  %v5909_v4 = vld [vmem:[#allocation7 + $0x28] sm:$0xff]  ;;  %s4874_s21 = sshll.u32 %s5745_s28, 7  ;;  %s4181_s28 = sshll.u32 %s7920_s15, 4  ;;  %s4182_s28 = int_to_ptr.vmem [resolvable:$true] %s4181_s28 }
  0x5a   : > { %660 = vmatpush.bf16.msra.mxu1 %v5899_v1  ;;  %v5911_v5 = vld [vmem:[#allocation7 + $0x68] sm:$0xff]  ;;  %v5915_v6 = vld [vmem:[#allocation7 + $0x20] sm:$0xff]  ;;  %v5921_v8 = vld [vmem:[#allocation7 + $0x18] sm:$0xff]  ;;  %s6250_s18 = scalar_lea.vmem [#allocation10], %s4878_s19  ;;  %s4180_s12 = scalar_lea.hbm %s8132_s7, %s4874_s21 }
  0x5b   : > { %v5917_v7 = vld [vmem:[#allocation7 + $0x60] sm:$0xff]  ;;  %v5923_v9 = vld [vmem:[#allocation7 + $0x58] sm:$0xff]  ;;  %v5927_v10 = vld [vmem:[#allocation7 + $0x10] sm:$0xff]  ;;  %s4183_s17 = sshll.u32 %s4180_s12, 4  ;;  %s4168_s8 = scalar_lea.sflag [#allocation4], %s5873_s9  ;;  %s4184_s17 = int_to_ptr.hbm [resolvable:$true] %s4183_s17 }
  0x5c   : > { %v5929_v11 = vld [vmem:[#allocation7 + $0x50] sm:$0xff]  ;;  %v5933_v12 = vld [vmem:[#allocation7 + $0x8] sm:$0xff]  ;;  %v5937_v14 = vld [vmem:[#allocation7] sm:$0xff]  ;;  %s5599_s30 = sshra.s32 %s4184_s17, 4  ;;  %s5600_s30 = int_to_ptr.hbm [resolvable:$true] %s5599_s30 }
  0x5d   : > { %632 = vmatpush.bf16.msra.mxu0 %v5903_v2  ;;  %v5935_v13 = vld [vmem:[#allocation7 + $0x48] sm:$0xff]  ;;  %v5939_v15 = vld [vmem:[#allocation7 + $0x40] sm:$0xff]  ;;  %v481_v17 = vld [vmem:[%s5879_s22 + $0x10] sm:$0xff]  ;;  %s5601_s19 = scalar_lea.hbm %s5600_s30, 128  ;;  %p5606_p13 = scmp.lt.s32.totalorder %s5600_s30, %s8132_s7 }
  0x5e   : > { %661 = vmatpush.bf16.msra.mxu1 %v5905_v3  ;;  %v479_v16 = vld [vmem:[%s5879_s22] sm:$0xff]  ;;  %v480_v18 = vld [vmem:[%s5879_s22 + $0x8] sm:$0xff]  ;;  %v482_v19 = vld [vmem:[%s5879_s22 + $0x18] sm:$0xff]  ;;  %p5602_p4 = scmp.ne.s32.totalorder %s5600_s30, %s5601_s19 }
  0x5f   : > { %v495_v20 = vpack.c.bf16 %v481_v17, %v479_v16  ;;  %v496_v21 = vpack.c.bf16 %v482_v19, %v480_v18  ;;  %v483_v22 = vld [vmem:[%s5879_s22 + $0x20] sm:$0xff]  ;;  %v485_v23 = vld [vmem:[%s5879_s22 + $0x30] sm:$0xff]  ;;  %v484_v24 = vld [vmem:[%s5879_s22 + $0x28] sm:$0xff] }
  0x60   : > { %v486_v25 = vld [vmem:[%s5879_s22 + $0x38] sm:$0xff]  ;;  %v497_v26 = vpack.c.bf16 %v485_v23, %v483_v22  ;;  %v487_v28 = vld [vmem:[%s5879_s22 + $0x40] sm:$0xff]  ;;  %v489_v29 = vld [vmem:[%s5879_s22 + $0x50] sm:$0xff]  ;;  %p5603_p5 = pnand %p5602_p4, %p5776_p11 }
  0x61   : > { %633 = vmatpush.bf16.msra.mxu0 %v5909_v4  ;;  %v498_v27 = vpack.c.bf16 %v486_v25, %v484_v24  ;;  %v488_v30 = vld [vmem:[%s5879_s22 + $0x48] sm:$0xff]  ;;  %v490_v31 = vld [vmem:[%s5879_s22 + $0x58] sm:$0xff]  ;;  %v499_v32 = vpack.c.bf16 %v489_v29, %v487_v28  ;;  %v491_v34 = vld [vmem:[%s5879_s22 + $0x60] sm:$0xff] }
  0x62   : > { %662 = vmatpush.bf16.msra.mxu1 %v5911_v5  ;;  %v500_v33 = vpack.c.bf16 %v490_v31, %v488_v30  ;;  %v493_v35 = vld [vmem:[%s5879_s22 + $0x70] sm:$0xff]  ;;  %v492_v36 = vld [vmem:[%s5879_s22 + $0x68] sm:$0xff]  ;;  %v494_v37 = vld [vmem:[%s5879_s22 + $0x78] sm:$0xff]  ;;  %p5604_p6 = pneg %p5603_p5 }
  0x63   : > { %v501_v38 = vpack.c.bf16 %v493_v35, %v491_v34  ;;  %v502_v39 = vpack.c.bf16 %v494_v37, %v492_v36  ;;  %v4472_v40 = vld [vmem:[#allocation5 + $0x70] sm:$0xf]  ;;  %v4872_v41 = vld [vmem:[#allocation5 + $0x74] sm:$0xf0]  ;;  %v4871_v42 = vld [vmem:[#allocation5 + $0x74] sm:$0xf] }
  0x64   : > { %v5993_v43 = vor.u32 %v4872_v41, %v4472_v40  ;;  %v4474_v44 = vld [vmem:[#allocation5 + $0x78] sm:$0xf0]  ;;  %v4464_v46 = vld [vmem:[#allocation5 + $0x60] sm:$0xf]  ;;  %v4870_v47 = vld [vmem:[#allocation5 + $0x64] sm:$0xf0] }
  0x65   : > { %634 = vmatpush.bf16.msra.mxu0 %v5915_v6  ;;  %v5995_v45 = vor.u32 %v4871_v42, %v4474_v44  ;;  %v4869_v48 = vld [vmem:[#allocation5 + $0x64] sm:$0xf]  ;;  %v5999_v49 = vor.u32 %v4870_v47, %v4464_v46  ;;  %v4466_v50 = vld [vmem:[#allocation5 + $0x68] sm:$0xf0]  ;;  %v4456_v52 = vld [vmem:[#allocation5 + $0x50] sm:$0xf] }
  0x66   : > { %663 = vmatpush.bf16.msra.mxu1 %v5917_v7  ;;  %973 = vmatpush.bf16.msra.mxu2 %v5993_v43  ;;  %v6001_v51 = vor.u32 %v4869_v48, %v4466_v50  ;;  %v4868_v53 = vld [vmem:[#allocation5 + $0x54] sm:$0xf0]  ;;  %v4867_v54 = vld [vmem:[#allocation5 + $0x54] sm:$0xf]  ;;  %v4458_v56 = vld [vmem:[#allocation5 + $0x58] sm:$0xf0] }
  0x67   : > { %1002 = vmatpush.bf16.msra.mxu3 %v5995_v45  ;;  %v6005_v55 = vor.u32 %v4868_v53, %v4456_v52  ;;  %v6007_v57 = vor.u32 %v4867_v54, %v4458_v56  ;;  %v4448_v58 = vld [vmem:[#allocation5 + $0x40] sm:$0xf]  ;;  %v4866_v59 = vld [vmem:[#allocation5 + $0x44] sm:$0xf0]  ;;  %v4865_v60 = vld [vmem:[#allocation5 + $0x44] sm:$0xf] }
  0x68   : > { %v6011_v61 = vor.u32 %v4866_v59, %v4448_v58  ;;  %v4450_v62 = vld [vmem:[#allocation5 + $0x48] sm:$0xf0]  ;;  %v4424_v17 = vld [vmem:[#allocation5 + $0x10] sm:$0xf]  ;;  %v4860_v18 = vld [vmem:[#allocation5 + $0x14] sm:$0xf0] }
  0x69   : > { %635 = vmatpush.bf16.msra.mxu0 %v5921_v8  ;;  %v6013_v63 = vor.u32 %v4865_v60, %v4450_v62  ;;  %v4859_v19 = vld [vmem:[#allocation5 + $0x14] sm:$0xf]  ;;  %v4416_v25 = vld [vmem:[#allocation5] sm:$0xf]  ;;  %v4857_v30 = vld [vmem:[#allocation5 + $0x4] sm:$0xf] }
  0x6a   : > { %664 = vmatpush.bf16.msra.mxu1 %v5923_v9  ;;  %974 = vmatpush.bf16.msra.mxu2 %v5999_v49  ;;  %v4418_v31 = vld [vmem:[#allocation5 + $0x8] sm:$0xf0] }
  0x6b   : > { %1003 = vmatpush.bf16.msra.mxu3 %v6001_v51 }
  0x6d   : > { %636 = vmatpush.bf16.msra.mxu0 %v5927_v10 }
  0x6e   : > { %665 = vmatpush.bf16.msra.mxu1 %v5929_v11  ;;  %975 = vmatpush.bf16.msra.mxu2 %v6005_v55 }
  0x6f   : > { %1004 = vmatpush.bf16.msra.mxu3 %v6007_v57 }
  0x71   : > { %637 = vmatpush.bf16.msra.mxu0 %v5933_v12 }
  0x72   : > { %666 = vmatpush.bf16.msra.mxu1 %v5935_v13  ;;  %976 = vmatpush.bf16.msra.mxu2 %v6011_v61 }
  0x73   : > { %1005 = vmatpush.bf16.msra.mxu3 %v6013_v63 }
  0x75   : > { %638 = vmatpush.bf16.msra.mxu0 %v5937_v14 }
  0x76   : > { %667 = vmatpush.bf16.msra.mxu1 %v5939_v15 }
  0x78   : > { %639 = vmatmul.bf16.vlgmr.msra.gmra.mxu0 %v495_v20  ;;  %v6035_v20 = vor.u32 %v4860_v18, %v4424_v17 }
  0x79   : > { %1407 = vmatpush.bf16.msrb.mxu0 %v5897_v0  ;;  %668 = vmatmul.bf16.vlgmr.msra.gmra.mxu1 %v496_v21  ;;  %v4426_v21 = vld [vmem:[#allocation5 + $0x18] sm:$0xf0] }
  0x7a   : > { %1436 = vmatpush.bf16.msrb.mxu1 %v5899_v1  ;;  %v6037_v23 = vor.u32 %v4859_v19, %v4426_v21 }
  0x7d   : > { %1408 = vmatpush.bf16.msrb.mxu0 %v5903_v2 }
  0x7e   : > { %1437 = vmatpush.bf16.msrb.mxu1 %v5905_v3 }
  0x81   : > { %1409 = vmatpush.bf16.msrb.mxu0 %v5909_v4 }
  0x82   : > { %1438 = vmatpush.bf16.msrb.mxu1 %v5911_v5 }
  0x85   : > { %1410 = vmatpush.bf16.msrb.mxu0 %v5915_v6 }
  0x86   : > { %1439 = vmatpush.bf16.msrb.mxu1 %v5917_v7 }
  0x88   : > { %644 = vmatmul.bf16.gmra.mxu0 %v497_v26  ;;  %v4858_v26 = vld [vmem:[#allocation5 + $0x4] sm:$0xf0] }
  0x89   : > { %1411 = vmatpush.bf16.msrb.mxu0 %v5921_v8  ;;  %673 = vmatmul.bf16.gmra.mxu1 %v498_v27  ;;  %v6041_v29 = vor.u32 %v4858_v26, %v4416_v25 }
  0x8a   : > { %1440 = vmatpush.bf16.msrb.mxu1 %v5923_v9 }
  0x8d   : > { %1412 = vmatpush.bf16.msrb.mxu0 %v5927_v10 }
  0x8e   : > { %1441 = vmatpush.bf16.msrb.mxu1 %v5929_v11 }
  0x91   : > { %1413 = vmatpush.bf16.msrb.mxu0 %v5933_v12 }
  0x92   : > { %1442 = vmatpush.bf16.msrb.mxu1 %v5935_v13 }
  0x95   : > { %1414 = vmatpush.bf16.msrb.mxu0 %v5937_v14 }
  0x96   : > { %1443 = vmatpush.bf16.msrb.mxu1 %v5939_v15 }
  0x98   : > { %649 = vmatmul.bf16.gmra.mxu0 %v499_v32 }
  0x99   : > { %2089 = vmatpush.bf16.msra.mxu0 %v5897_v0  ;;  %678 = vmatmul.bf16.gmra.mxu1 %v500_v33  ;;  %v4440_v0 = vld [vmem:[#allocation5 + $0x30] sm:$0xf]  ;;  %v6044_v33 = vor.u32 %v4857_v30, %v4418_v31 }
  0x9a   : > { %2118 = vmatpush.bf16.msra.mxu1 %v5899_v1  ;;  %v4864_v1 = vld [vmem:[#allocation5 + $0x34] sm:$0xf0] }
  0x9d   : > { %2090 = vmatpush.bf16.msra.mxu0 %v5903_v2  ;;  %v4863_v2 = vld [vmem:[#allocation5 + $0x34] sm:$0xf] }
  0x9e   : > { %2119 = vmatpush.bf16.msra.mxu1 %v5905_v3  ;;  %v6017_v3 = vor.u32 %v4864_v1, %v4440_v0 }
  0xa0   : > { %977 = vmatpush.bf16.msra.mxu2 %v6017_v3 }
  0xa1   : > { %2091 = vmatpush.bf16.msra.mxu0 %v5909_v4  ;;  %v4442_v4 = vld [vmem:[#allocation5 + $0x38] sm:$0xf0] }
  0xa2   : > { %2120 = vmatpush.bf16.msra.mxu1 %v5911_v5  ;;  %v6022_v5 = vld [vmem:[%s8129_s4] ss:$0 sm:$0xff] }
  0xa5   : > { %2092 = vmatpush.bf16.msra.mxu0 %v5915_v6  ;;  %v6024_v6 = vor.u32 %v4863_v2, %v4442_v4 }
  0xa6   : > { %2121 = vmatpush.bf16.msra.mxu1 %v5917_v7  ;;  %v4432_v7 = vld [vmem:[#allocation5 + $0x20] sm:$0xf] }
  0xa7   : > { %1006 = vmatpush.bf16.msra.mxu3 %v6024_v6 }
  0xa8   : > { %654 = vmatmul.bf16.gmra.mxu0 %v501_v38 }
  0xa9   : > { %2093 = vmatpush.bf16.msra.mxu0 %v5921_v8  ;;  %683 = vmatmul.bf16.gmra.mxu1 %v502_v39  ;;  %v4862_v8 = vld [vmem:[#allocation5 + $0x24] sm:$0xf0] }
  0xaa   : > { %2122 = vmatpush.bf16.msra.mxu1 %v5923_v9  ;;  %v4861_v9 = vld [vmem:[#allocation5 + $0x24] sm:$0xf] }
  0xad   : > { %2094 = vmatpush.bf16.msra.mxu0 %v5927_v10 }
  0xae   : > { %2123 = vmatpush.bf16.msra.mxu1 %v5929_v11 }
  0xb1   : > { %2095 = vmatpush.bf16.msra.mxu0 %v5933_v12  ;;  %v6028_v12 = vor.u32 %v4862_v8, %v4432_v7 }
  0xb2   : > { %2124 = vmatpush.bf16.msra.mxu1 %v5935_v13  ;;  %v4434_v13 = vld [vmem:[#allocation5 + $0x28] sm:$0xf0] }
  0xb3   : > { %978 = vmatpush.bf16.msra.mxu2 %v6028_v12 }
  0xb5   : > { %2096 = vmatpush.bf16.msra.mxu0 %v5937_v14 }
  0xb6   : > { %2125 = vmatpush.bf16.msra.mxu1 %v5939_v15  ;;  %v6031_v15 = vor.u32 %v4861_v9, %v4434_v13 }
  0xb7   : > { %979 = vmatpush.bf16.msra.mxu2 %v6035_v20 }
  0xb8   : > { %1007 = vmatpush.bf16.msra.mxu3 %v6031_v15 }
  0xbb   : > { %980 = vmatpush.bf16.msra.mxu2 %v6041_v29 }
  0xbc   : > { %1008 = vmatpush.bf16.msra.mxu3 %v6037_v23 }
  0xbf   : > { %1654 = vmatpush.bf16.msrb.mxu2 %v5993_v43 }
  0xc0   : > { %1009 = vmatpush.bf16.msra.mxu3 %v6044_v33 }
  0xc3   : > { %1655 = vmatpush.bf16.msrb.mxu2 %v5999_v49 }
  0xc4   : > { %1683 = vmatpush.bf16.msrb.mxu3 %v5995_v45 }
  0xc7   : > { %1656 = vmatpush.bf16.msrb.mxu2 %v6005_v55 }
  0xc8   : > { %1684 = vmatpush.bf16.msrb.mxu3 %v6001_v51 }
  0xcb   : > { %1657 = vmatpush.bf16.msrb.mxu2 %v6011_v61 }
  0xcc   : > { %1685 = vmatpush.bf16.msrb.mxu3 %v6007_v57 }
  0xcf   : > { %1658 = vmatpush.bf16.msrb.mxu2 %v6017_v3 }
  0xd0   : > { %1686 = vmatpush.bf16.msrb.mxu3 %v6013_v63 }
  0xd3   : > { %1659 = vmatpush.bf16.msrb.mxu2 %v6028_v12 }
  0xd4   : > { %1687 = vmatpush.bf16.msrb.mxu3 %v6024_v6 }
  0xd7   : > { %1660 = vmatpush.bf16.msrb.mxu2 %v6035_v20 }
  0xd8   : > { %1688 = vmatpush.bf16.msrb.mxu3 %v6031_v15 }
  0xdb   : > { %1661 = vmatpush.bf16.msrb.mxu2 %v6041_v29 }
  0xdc   : > { %1689 = vmatpush.bf16.msrb.mxu3 %v6037_v23 }
  0xe0   : > { %1690 = vmatpush.bf16.msrb.mxu3 %v6044_v33 }
  0xf5   : > { %v640_v10 = vpop.f32.mrf.mxu0 }
  0xf6   : > { %v669_v11 = vpop.f32.mrf.mxu1  ;;  %v641_v14 = vadd.f32 %v6022_v5, %v640_v10 }
  0xf8   : > { %v670_v16 = vadd.f32 %v669_v11, %v641_v14 }
  0xfa   : > { %v689_v22 = vsub.f32 0.0, %v670_v16 }
  0xfc   : > { %v697_v24 = vmul.f32 1.442695, %v689_v22 }
  0xfd   : > { %v642_v27 = vpop.f32.mrf.mxu0 }
  0xfe   : > { %v671_v28 = vpop.f32.mrf.mxu1  ;;  %4981 = vpow2.f32 %v697_v24  ;;  %v643_v32 = vadd.f32 %v6022_v5, %v642_v27 }
 0x100   : > { %v672_v34 = vadd.f32 %v671_v28, %v643_v32 }
 0x102   : > { %v690_v35 = vsub.f32 0.0, %v672_v34 }
 0x104   : > { %v4982_v36 = vpop.eup %4981  ;;  %v699_v37 = vmul.f32 1.442695, %v690_v35 }
 0x105   : > { %v713_v38 = vadd.f32 1.0, %v4982_v36  ;;  %v645_v39 = vpop.f32.mrf.mxu0 }
 0x106   : > { %v674_v40 = vpop.f32.mrf.mxu1  ;;  %4983 = vpow2.f32 %v699_v37  ;;  %v646_v41 = vadd.f32 %v6022_v5, %v645_v39  ;;  %v842_v39 = vld [vmem:[%s5891_s20 + $0x8] sm:$0xff] }
 0x107   : > { %4985 = vrcp.f32 %v713_v38  ;;  %v732_v13 = vand.u32 2147483648, %v713_v38  ;;  %vm726_vm1 = vweird.f32 %v713_v38  ;;  %v730_v16 = vand.u32 2147483647, %v713_v38 }
 0x108   : > { %v675_v42 = vadd.f32 %v674_v40, %v646_v41 }
 0x109   : > { %v733_v26 = vor.u32 1.1754944e-38, %v732_v13  ;;  %vm731_vm4 = vcmp.eq.f32.partialorder %v730_v16, 8.507059e+37 }
 0x10a   : > { %v691_v44 = vsub.f32 0.0, %v675_v42 }
 0x10c   : > { %v4984_v46 = vpop.eup %4983  ;;  %v701_v47 = vmul.f32 1.442695, %v691_v44 }
 0x10d   : > { %v4986_v48 = vpop.eup %4985  ;;  %v714_v50 = vadd.f32 1.0, %v4984_v46  ;;  %v647_v52 = vpop.f32.mrf.mxu0 }
 0x10e   : > { %v676_v53 = vpop.f32.mrf.mxu1  ;;  %4987 = vpow2.f32 %v701_v47  ;;  %v648_v54 = vadd.f32 %v6022_v5, %v647_v52  ;;  %v722_v56 = vmul.f32 %v4986_v48, %v713_v38  ;;  %vm727_vm0 = vweird.f32 %v4986_v48  ;;  %v841_v38 = vld [vmem:[%s5891_s20] sm:$0xff] }
 0x10f   : > { %4989 = vrcp.f32 %v714_v50  ;;  %vm6067_vm2 = vmor %vm726_vm1, %vm727_vm0  ;;  %v745_v19 = vand.u32 2147483647, %v714_v50  ;;  %v747_v21 = vand.u32 2147483648, %v714_v50  ;;  %vm741_vm5 = vweird.f32 %v714_v50 }
 0x110   : > { %v677_v58 = vadd.f32 %v676_v53, %v648_v54  ;;  %v723_v59 = vsub.f32 1.0, %v722_v56 }
 0x111   : > { %vm746_vm7 = vcmp.eq.f32.partialorder %v745_v19, 8.507059e+37  ;;  %v748_v37 = vor.u32 1.1754944e-38, %v747_v21 }
 0x112   : > { %v692_v60 = vsub.f32 0.0, %v677_v58  ;;  %v724_v62 = vmul.f32 %v4986_v48, %v723_v59 }
 0x114   : > { %v4988_v0 = vpop.eup %4987  ;;  %v703_v1 = vmul.f32 1.442695, %v692_v60  ;;  %v725_v10 = vadd.f32 %v4986_v48, %v724_v62 }
 0x115   : > { %v4990_v2 = vpop.eup %4989  ;;  %v6061_v4 = vadd.f32 1.0, %v4988_v0  ;;  %v650_v7 = vpop.f32.mrf.mxu0 }
 0x116   : > { %v679_v8 = vpop.f32.mrf.mxu1  ;;  %4991 = vpow2.f32 %v703_v1  ;;  %v651_v9 = vadd.f32 %v6022_v5, %v650_v7  ;;  %v737_v11 = vmul.f32 %v4990_v2, %v714_v50  ;;  %v729_v24 = vsel %vm6067_vm2, %v4986_v48, %v725_v10  ;;  %v845_v10 = vld [vmem:[%s5891_s20 + $0x20] sm:$0xff] }
 0x117   : > { %4993 = vrcp.f32 %v6061_v4  ;;  %vm742_vm3 = vweird.f32 %v4990_v2  ;;  %v734_v36 = vsel %vm731_vm4, %v733_v26, %v729_v24  ;;  %v5680_v50 = vmov 1.0|1.0  }
 0x118   : > { %v680_v14 = vadd.f32 %v679_v8, %v651_v9  ;;  %v738_v17 = vsub.f32 1.0, %v737_v11  ;;  %vm743_vm6 = vmor %vm741_vm5, %vm742_vm3  ;;  %vm849_vm8 = vcmp.gt.f32.partialorder %v734_v36, %v841_v38  ;;  %vm756_vm12 = vweird.f32 %v6061_v4 }
 0x119   : > { %v760_v8 = vand.u32 2147483647, %v6061_v4 }
 0x11a   : > { %v693_v22 = vsub.f32 0.0, %v680_v14  ;;  %v739_v25 = vmul.f32 %v4990_v2, %v738_v17 }
 0x11b   : > { %vm761_vm15 = vcmp.eq.f32.partialorder %v760_v8, 8.507059e+37 }
 0x11c   : > { %v4992_v27 = vpop.eup %4991  ;;  %v705_v28 = vmul.f32 1.442695, %v693_v22  ;;  %v740_v30 = vadd.f32 %v4990_v2, %v739_v25 }
 0x11d   : > { %v6075_v31 = vpop.eup %4993  ;;  %v6077_v32 = vadd.f32 1.0, %v4992_v27  ;;  %v652_v34 = vpop.f32.mrf.mxu0 }
 0x11e   : > { %v681_v35 = vpop.f32.mrf.mxu1  ;;  %4995 = vpow2.f32 %v705_v28  ;;  %v653_v40 = vadd.f32 %v6022_v5, %v652_v34  ;;  %v744_v41 = vsel %vm743_vm6, %v4990_v2, %v740_v30  ;;  %v752_v42 = vmul.f32 %v6075_v31, %v6061_v4  ;;  %v843_v28 = vld [vmem:[%s5891_s20 + $0x10] sm:$0xff]  ;;  %v844_v30 = vld [vmem:[%s5891_s20 + $0x18] sm:$0xff] }
 0x11f   : > { %4997 = vrcp.f32 %v6077_v32  ;;  %v749_v44 = vsel %vm746_vm7, %v748_v37, %v744_v41  ;;  %vm757_vm11 = vweird.f32 %v6075_v31  ;;  %v762_v2 = vand.u32 2147483648, %v6061_v4 }
 0x120   : > { %v682_v46 = vadd.f32 %v681_v35, %v653_v40  ;;  %vm850_vm9 = vcmp.gt.f32.partialorder %v749_v44, %v842_v39  ;;  %v753_v47 = vsub.f32 1.0, %v752_v42  ;;  %vm6103_vm13 = vmor %vm756_vm12, %vm757_vm11  ;;  %v775_v11 = vand.u32 2147483647, %v6077_v32 }
 0x121   : > { %vm4478_vm10 = vmpackc.low %vm850_vm9, %vm849_vm8  ;;  %v777_v13 = vand.u32 2147483648, %v6077_v32  ;;  %v763_v18 = vor.u32 1.1754944e-38, %v762_v2  ;;  %vm771_vm0 = vweird.f32 %v6077_v32 }
 0x122   : > { %v694_v48 = vsub.f32 0.0, %v682_v46  ;;  %4479 = vmatmul.msk.bf16.vlgmr.msra.gmra.mxu2 %vm4478_vm10, %v5680_v50  ;;  %4487 = vmatmul.msk.bf16.vlgmr.msra.gmra.mxu3 %vm4478_vm10, %v5680_v50  ;;  %v754_v52 = vmul.f32 %v6075_v31, %v753_v47  ;;  %vm776_vm2 = vcmp.eq.f32.partialorder %v775_v11, 8.507059e+37  ;;  %v846_v11 = vld [vmem:[%s5891_s20 + $0x28] sm:$0xff] }
 0x123   : > { %2336 = vmatpush.bf16.msra.mxu2 %v5993_v43  ;;  %2365 = vmatpush.bf16.msra.mxu3 %v5995_v45  ;;  %v778_v27 = vor.u32 1.1754944e-38, %v777_v13 }
 0x124   : > { %v4996_v53 = vpop.eup %4995  ;;  %v707_v54 = vmul.f32 1.442695, %v694_v48  ;;  %v755_v0 = vadd.f32 %v6075_v31, %v754_v52 }
 0x125   : > { %v4998_v56 = vpop.eup %4997  ;;  %v6091_v58 = vadd.f32 1.0, %v4996_v53  ;;  %v655_v59 = vpop.f32.mrf.mxu0 }
 0x126   : > { %v684_v60 = vpop.f32.mrf.mxu1  ;;  %4999 = vpow2.f32 %v707_v54  ;;  %v656_v62 = vadd.f32 %v6022_v5, %v655_v59  ;;  %v767_v1 = vmul.f32 %v4998_v56, %v6077_v32  ;;  %v759_v16 = vsel %vm6103_vm13, %v6075_v31, %v755_v0 }
 0x127   : > { %5001 = vrcp.f32 %v6091_v58  ;;  %2337 = vmatpush.bf16.msra.mxu2 %v5999_v49  ;;  %2366 = vmatpush.bf16.msra.mxu3 %v6001_v51  ;;  %vm772_vm14 = vweird.f32 %v4998_v56  ;;  %v764_v26 = vsel %vm761_vm15, %v763_v18, %v759_v16  ;;  %v792_v48 = vand.u32 2147483648, %v6091_v58 }
 0x128   : > { %v685_v7 = vadd.f32 %v684_v60, %v656_v62  ;;  %v768_v9 = vsub.f32 1.0, %v767_v1  ;;  %vm773_vm1 = vmor %vm771_vm0, %vm772_vm14  ;;  %vm851_vm3 = vcmp.gt.f32.partialorder %v764_v26, %v843_v28  ;;  %vm786_vm7 = vweird.f32 %v6091_v58 }
 0x129   : > { %v790_v52 = vand.u32 2147483647, %v6091_v58  ;;  %v793_v0 = vor.u32 1.1754944e-38, %v792_v48 }
 0x12a   : > { %v695_v14 = vsub.f32 0.0, %v685_v7  ;;  %v769_v17 = vmul.f32 %v4998_v56, %v768_v9 }
 0x12b   : > { %2338 = vmatpush.bf16.msra.mxu2 %v6005_v55  ;;  %2367 = vmatpush.bf16.msra.mxu3 %v6007_v57  ;;  %vm791_vm10 = vcmp.eq.f32.partialorder %v790_v52, 8.507059e+37 }
 0x12c   : > { %v5000_v4 = vpop.eup %4999  ;;  %v709_v19 = vmul.f32 1.442695, %v695_v14  ;;  %v770_v21 = vadd.f32 %v4998_v56, %v769_v17 }
 0x12d   : > { %v5002_v22 = vpop.eup %5001  ;;  %v6115_v24 = vadd.f32 1.0, %v5000_v4  ;;  %v657_v25 = vpop.f32.mrf.mxu0 }
 0x12e   : > { %5003 = vpow2.f32 %v709_v19  ;;  %v658_v31 = vadd.f32 %v6022_v5, %v657_v25  ;;  %v774_v34 = vsel %vm773_vm1, %v4998_v56, %v770_v21  ;;  %v782_v35 = vmul.f32 %v5002_v22, %v6091_v58  ;;  %v686_v36 = vpop.f32.mrf.mxu1 }
 0x12f   : > { %5005 = vrcp.f32 %v6115_v24  ;;  %v779_v32 = vsel %vm776_vm2, %v778_v27, %v774_v34  ;;  %2339 = vmatpush.bf16.msra.mxu2 %v6011_v61  ;;  %2368 = vmatpush.bf16.msra.mxu3 %v6013_v63  ;;  %vm787_vm6 = vweird.f32 %v5002_v22  ;;  %v807_v56 = vand.u32 2147483648, %v6115_v24 }
 0x130   : > { %v687_v37 = vadd.f32 %v686_v36, %v658_v31  ;;  %vm852_vm4 = vcmp.gt.f32.partialorder %v779_v32, %v844_v30  ;;  %v783_v38 = vsub.f32 1.0, %v782_v35  ;;  %vm6134_vm8 = vmor %vm786_vm7, %vm787_vm6  ;;  %v805_v62 = vand.u32 2147483647, %v6115_v24  ;;  %v847_v32 = vld [vmem:[%s5891_s20 + $0x30] sm:$0xff] }
 0x131   : > { %vm4480_vm5 = vmpackc.low %vm852_vm4, %vm851_vm3  ;;  %vm801_vm11 = vweird.f32 %v6115_v24  ;;  %v808_v9 = vor.u32 1.1754944e-38, %v807_v56 }
 0x132   : > { %v696_v39 = vsub.f32 0.0, %v687_v37  ;;  %4481 = vmatmul.msk.bf16.gmra.mxu2 %vm4480_vm5, %v5680_v50  ;;  %4489 = vmatmul.msk.bf16.gmra.mxu3 %vm4480_vm5, %v5680_v50  ;;  %v784_v5 = vmul.f32 %v5002_v22, %v783_v38  ;;  %vm806_vm13 = vcmp.eq.f32.partialorder %v805_v62, 8.507059e+37  ;;  %v848_v37 = vld [vmem:[%s5891_s20 + $0x38] sm:$0xff] }
 0x133   : > { %2340 = vmatpush.bf16.msra.mxu2 %v6017_v3  ;;  %2369 = vmatpush.bf16.msra.mxu3 %v6024_v6 }
 0x134   : > { %v5004_v40 = vpop.eup %5003  ;;  %v711_v41 = vmul.f32 1.442695, %v696_v39  ;;  %v785_v46 = vadd.f32 %v5002_v22, %v784_v5  ;;  %v473_v5 = vld [vmem:[%s8128_s3] sm:$0x3] }
 0x135   : > { %v5006_v42 = vpop.eup %5005  ;;  %v719_v44 = vadd.f32 1.0, %v5004_v40  ;;  %v6158_v40 = vperm.slane %v473_v5, 0 }
 0x136   : > { %5007 = vpow2.f32 %v711_v41  ;;  %v797_v47 = vmul.f32 %v5006_v42, %v6115_v24  ;;  %v789_v59 = vsel %vm6134_vm8, %v5002_v22, %v785_v46  ;;  %vm802_vm9 = vweird.f32 %v5006_v42 }
 0x137   : > { %5009 = vrcp.f32 %v719_v44  ;;  %2341 = vmatpush.bf16.msra.mxu2 %v6028_v12  ;;  %2370 = vmatpush.bf16.msra.mxu3 %v6031_v15  ;;  %v794_v8 = vsel %vm791_vm10, %v793_v0, %v789_v59  ;;  %vm803_vm12 = vmor %vm801_vm11, %vm802_vm9  ;;  %v822_v22 = vand.u32 2147483648, %v719_v44  ;;  %vm816_vm2 = vweird.f32 %v719_v44 }
 0x138   : > { %v798_v53 = vsub.f32 1.0, %v797_v47  ;;  %vm853_vm14 = vcmp.gt.f32.partialorder %v794_v8, %v845_v10  ;;  %v820_v24 = vand.u32 2147483647, %v719_v44  ;;  %v6160_v41 = vperm.slane %v473_v5, 1 }
 0x139   : > { %v823_v31 = vor.u32 1.1754944e-38, %v822_v22 }
 0x13a   : > { %v799_v60 = vmul.f32 %v5006_v42, %v798_v53  ;;  %vm821_vm5 = vcmp.eq.f32.partialorder %v820_v24, 8.507059e+37 }
 0x13b   : > { %2342 = vmatpush.bf16.msra.mxu2 %v6035_v20  ;;  %2371 = vmatpush.bf16.msra.mxu3 %v6037_v23 }
 0x13c   : > { %v5008_v58 = vpop.eup %5007  ;;  %v800_v1 = vadd.f32 %v5006_v42, %v799_v60 }
 0x13d   : > { %v5010_v2 = vpop.eup %5009  ;;  %v720_v7 = vadd.f32 1.0, %v5008_v58 }
 0x13e   : > { %v804_v13 = vsel %vm803_vm12, %v5006_v42, %v800_v1  ;;  %v812_v14 = vmul.f32 %v5010_v2, %v719_v44  ;;  %vm817_vm1 = vweird.f32 %v5010_v2 }
 0x13f   : > { %5011 = vrcp.f32 %v720_v7  ;;  %v809_v16 = vsel %vm806_vm13, %v808_v9, %v804_v13  ;;  %2343 = vmatpush.bf16.msra.mxu2 %v6041_v29  ;;  %2372 = vmatpush.bf16.msra.mxu3 %v6044_v33  ;;  %vm818_vm3 = vmor %vm816_vm2, %vm817_vm1  ;;  %v837_v26 = vand.u32 2147483648, %v720_v7  ;;  %v835_v30 = vand.u32 2147483647, %v720_v7 }
 0x140   : > { %vm854_vm15 = vcmp.gt.f32.partialorder %v809_v16, %v846_v11  ;;  %v813_v17 = vsub.f32 1.0, %v812_v14  ;;  %vm831_vm6 = vweird.f32 %v720_v7 }
 0x141   : > { %vm4482_vm0 = vmpackc.low %vm854_vm15, %vm853_vm14  ;;  %v838_v36 = vor.u32 1.1754944e-38, %v837_v26  ;;  %vm836_vm8 = vcmp.eq.f32.partialorder %v835_v30, 8.507059e+37 }
 0x142   : > { %4483 = vmatmul.msk.bf16.gmra.mxu2 %vm4482_vm0, %v5680_v50  ;;  %4491 = vmatmul.msk.bf16.gmra.mxu3 %vm4482_vm0, %v5680_v50  ;;  %v814_v18 = vmul.f32 %v5010_v2, %v813_v17 }
 0x144   : > { %v815_v19 = vadd.f32 %v5010_v2, %v814_v18 }
 0x145   : > { %v5012_v4 = vpop.eup %5011 }
 0x146   : > { %v827_v21 = vmul.f32 %v5012_v4, %v720_v7  ;;  %v819_v27 = vsel %vm818_vm3, %v5010_v2, %v815_v19  ;;  %vm832_vm4 = vweird.f32 %v5012_v4 }
 0x147   : > { %v824_v35 = vsel %vm821_vm5, %v823_v31, %v819_v27  ;;  %vm833_vm7 = vmor %vm831_vm6, %vm832_vm4 }
 0x148   : > { %v828_v25 = vsub.f32 1.0, %v827_v21  ;;  %vm855_vm9 = vcmp.gt.f32.partialorder %v824_v35, %v847_v32 }
 0x14a   : > { %v829_v28 = vmul.f32 %v5012_v4, %v828_v25 }
 0x14c   : > { %v830_v34 = vadd.f32 %v5012_v4, %v829_v28 }
 0x14e   : > { %v834_v38 = vsel %vm833_vm7, %v5012_v4, %v830_v34 }
 0x14f   : > { %v839_v39 = vsel %vm836_vm8, %v838_v36, %v834_v38 }
 0x150   : > { %vm856_vm10 = vcmp.gt.f32.partialorder %v839_v39, %v848_v37 }
 0x151   : > { %vm4484_vm11 = vmpackc.low %vm856_vm10, %vm855_vm9 }
 0x152   : > { %4485 = vmatmul.msk.bf16.gmra.mxu2 %vm4484_vm11, %v5680_v50  ;;  %4493 = vmatmul.msk.bf16.gmra.mxu3 %vm4484_vm11, %v5680_v50 }
 0x1a5   : > { %v982_v42 = vpop.f32.mrf.mxu2  ;;  %v1011_v44 = vpop.f32.mrf.mxu3 }
 0x1a6   : > { %v983_v46 = vadd.f32 %v982_v42, %v6158_v40  ;;  %v1012_v47 = vadd.f32 %v1011_v44, %v6160_v41 }
 0x1a8   : > { %v1031_v48 = vsub.f32 0.0, %v983_v46  ;;  %v1032_v52 = vsub.f32 0.0, %v1012_v47 }
 0x1aa   : > { %v1047_v53 = vmul.f32 1.442695, %v1031_v48  ;;  %v1049_v54 = vmul.f32 1.442695, %v1032_v52 }
 0x1ac   : > { %5013 = vpow2.f32 %v1047_v53 }
 0x1ad   : > { %5015 = vpow2.f32 %v1049_v54  ;;  %v984_v56 = vpop.f32.mrf.mxu2  ;;  %v1013_v59 = vpop.f32.mrf.mxu3 }
 0x1ae   : > { %v985_v60 = vadd.f32 %v984_v56, %v6158_v40  ;;  %v1014_v62 = vadd.f32 %v1013_v59, %v6160_v41 }
 0x1b0   : > { %v1033_v0 = vsub.f32 0.0, %v985_v60  ;;  %v1034_v58 = vsub.f32 0.0, %v1014_v62 }
 0x1b2   : > { %v5014_v1 = vpop.eup %5013  ;;  %v1051_v2 = vmul.f32 1.442695, %v1033_v0  ;;  %v1053_v9 = vmul.f32 1.442695, %v1034_v58 }
 0x1b3   : > { %v5016_v7 = vpop.eup %5015  ;;  %v1079_v8 = vadd.f32 1.0, %v5014_v1 }
 0x1b4   : > { %v6166_v10 = vadd.f32 1.0, %v5016_v7  ;;  %5017 = vpow2.f32 %v1051_v2 }
 0x1b5   : > { %5019 = vrcp.f32 %v1079_v8  ;;  %v987_v11 = vpop.f32.mrf.mxu2  ;;  %v1016_v13 = vpop.f32.mrf.mxu3  ;;  %v1104_v4 = vand.u32 2147483647, %v1079_v8  ;;  %v1106_v26 = vand.u32 2147483648, %v1079_v8  ;;  %vm1100_vm12 = vweird.f32 %v1079_v8 }
 0x1b6   : > { %5021 = vrcp.f32 %v6166_v10  ;;  %v988_v14 = vadd.f32 %v987_v11, %v6158_v40  ;;  %v1017_v16 = vadd.f32 %v1016_v13, %v6160_v41  ;;  %vm1115_vm13 = vweird.f32 %v6166_v10 }
 0x1b7   : > { %5023 = vpow2.f32 %v1053_v9  ;;  %vm6182_vm14 = vcmp.eq.f32.partialorder %v1104_v4, 8.507059e+37  ;;  %v1119_v32 = vand.u32 2147483647, %v6166_v10  ;;  %v1121_v37 = vand.u32 2147483648, %v6166_v10 }
 0x1b8   : > { %v1035_v17 = vsub.f32 0.0, %v988_v14  ;;  %v1036_v18 = vsub.f32 0.0, %v1017_v16  ;;  %v1107_v44 = vor.u32 1.1754944e-38, %v1106_v26 }
 0x1b9   : > { %vm6200_vm1 = vcmp.eq.f32.partialorder %v1119_v32, 8.507059e+37  ;;  %v1122_v58 = vor.u32 1.1754944e-38, %v1121_v37 }
 0x1ba   : > { %v5018_v19 = vpop.eup %5017  ;;  %v1055_v21 = vmul.f32 1.442695, %v1035_v17  ;;  %v1057_v22 = vmul.f32 1.442695, %v1036_v18 }
 0x1bb   : > { %v6171_v24 = vpop.eup %5019  ;;  %v6173_v25 = vadd.f32 1.0, %v5018_v19 }
 0x1bc   : > { %v6175_v27 = vpop.eup %5021  ;;  %v1096_v28 = vmul.f32 %v6171_v24, %v1079_v8  ;;  %5025 = vpow2.f32 %v1055_v21  ;;  %vm1101_vm15 = vweird.f32 %v6171_v24 }
 0x1bd   : > { %v5024_v30 = vpop.eup %5023  ;;  %v1111_v31 = vmul.f32 %v6175_v27, %v6166_v10  ;;  %5027 = vrcp.f32 %v6173_v25  ;;  %v989_v34 = vpop.f32.mrf.mxu2  ;;  %v1136_v52 = vand.u32 2147483648, %v6173_v25  ;;  %v1134_v54 = vand.u32 2147483647, %v6173_v25  ;;  %vm6212_vm2 = vmor %vm1100_vm12, %vm1101_vm15 }
 0x1be   : > { %v1018_v35 = vpop.f32.mrf.mxu3  ;;  %v6188_v38 = vadd.f32 1.0, %v5024_v30  ;;  %5029 = vpow2.f32 %v1057_v22  ;;  %v990_v39 = vadd.f32 %v989_v34, %v6158_v40  ;;  %v1097_v42 = vsub.f32 1.0, %v1096_v28 }
 0x1bf   : > { %v1019_v5 = vadd.f32 %v1018_v35, %v6160_v41  ;;  %v1112_v46 = vsub.f32 1.0, %v1111_v31  ;;  %vm1116_vm0 = vweird.f32 %v6175_v27  ;;  %vm1130_vm3 = vweird.f32 %v6173_v25 }
 0x1c0   : > { %5031 = vrcp.f32 %v6188_v38  ;;  %v1037_v47 = vsub.f32 0.0, %v990_v39  ;;  %v1098_v53 = vmul.f32 %v6171_v24, %v1097_v42  ;;  %v1137_v16 = vor.u32 1.1754944e-38, %v1136_v52  ;;  %vm6224_vm4 = vmor %vm1115_vm13, %vm1116_vm0  ;;  %v6263_v39 = vld [vmem:[%s6250_s18 + $0x8] sm:$0xff] }
 0x1c1   : > { %v1038_v48 = vsub.f32 0.0, %v1019_v5  ;;  %v1113_v56 = vmul.f32 %v6175_v27, %v1112_v46  ;;  %v1149_v17 = vand.u32 2147483647, %v6188_v38  ;;  %vm6235_vm5 = vcmp.eq.f32.partialorder %v1134_v54, 8.507059e+37 }
 0x1c2   : > { %v5026_v59 = vpop.eup %5025  ;;  %v1059_v60 = vmul.f32 1.442695, %v1037_v47  ;;  %v1099_v7 = vadd.f32 %v6171_v24, %v1098_v53  ;;  %vm1145_vm7 = vweird.f32 %v6188_v38 }
 0x1c3   : > { %v1061_v62 = vmul.f32 1.442695, %v1038_v48  ;;  %v6204_v1 = vpop.eup %5027  ;;  %v6206_v2 = vadd.f32 1.0, %v5026_v59  ;;  %v1114_v11 = vadd.f32 %v6175_v27, %v1113_v56  ;;  %vm6267_vm9 = vcmp.eq.f32.partialorder %v1149_v17, 8.507059e+37 }
 0x1c4   : > { %v5030_v13 = vpop.eup %5029  ;;  %5033 = vpow2.f32 %v1059_v60  ;;  %v1126_v14 = vmul.f32 %v6204_v1, %v6173_v25  ;;  %v1103_v21 = vsel %vm6212_vm2, %v6171_v24, %v1099_v7  ;;  %v1335_v24 = vld [vmem:[%s6250_s18] sm:$0xff]  ;;  %vm1131_vm6 = vweird.f32 %v6204_v1  ;;  %v1337_v60 = vld [vmem:[%s6250_s18 + $0x10] sm:$0xff] }
 0x1c5   : > { %5035 = vrcp.f32 %v6206_v2  ;;  %v6230_v18 = vadd.f32 1.0, %v5030_v13  ;;  %v992_v4 = vpop.f32.mrf.mxu2  ;;  %v1118_v10 = vsel %vm6224_vm4, %v6175_v27, %v1114_v11  ;;  %v1108_v31 = vsel %vm6182_vm14, %v1107_v44, %v1103_v21  ;;  %vm1132_vm12 = vmor %vm1130_vm3, %vm1131_vm6 }
 0x1c6   : > { %v1021_v19 = vpop.f32.mrf.mxu3  ;;  %v6242_v26 = vpop.eup %5031  ;;  %5037 = vpow2.f32 %v1061_v62  ;;  %v993_v28 = vadd.f32 %v992_v4, %v6158_v40  ;;  %v1127_v34 = vsub.f32 1.0, %v1126_v14  ;;  %v1151_v27 = vand.u32 2147483648, %v6188_v38 }
 0x1c7   : > { %v1022_v30 = vadd.f32 %v1021_v19, %v6160_v41  ;;  %v6258_v37 = vsel %vm6200_vm1, %v1122_v58, %v1118_v10  ;;  %v1141_v36 = vmul.f32 %v6242_v26, %v6188_v38  ;;  %5039 = vrcp.f32 %v6230_v18  ;;  %v1338_v10 = vld [vmem:[%s6250_s18 + $0x18] sm:$0xff] }
 0x1c8   : > { %v1039_v35 = vsub.f32 0.0, %v993_v28  ;;  %v1128_v5 = vmul.f32 %v6204_v1, %v1127_v34  ;;  %vm1351_vm8 = vcmp.gt.f32.partialorder %v1108_v31, %v1335_v24  ;;  %vm1146_vm10 = vweird.f32 %v6242_v26 }
 0x1c9   : > { %v1040_v32 = vsub.f32 0.0, %v1022_v30  ;;  %v1142_v48 = vsub.f32 1.0, %v1141_v36  ;;  %v1152_v56 = vor.u32 1.1754944e-38, %v1151_v27  ;;  %vm1352_vm11 = vcmp.gt.f32.partialorder %v6258_v37, %v6263_v39  ;;  %vm6304_vm15 = vmor %vm1145_vm7, %vm1146_vm10  ;;  %v5461_v36 = vld [vmem:[#allocation7 + $0x38] sm:$0xff] }
 0x1ca   : > { %v5034_v44 = vpop.eup %5033  ;;  %v1063_v46 = vmul.f32 1.442695, %v1039_v35  ;;  %v1129_v54 = vadd.f32 %v6204_v1, %v1128_v5  ;;  %vm1160_vm13 = vweird.f32 %v6206_v2  ;;  %v1166_v25 = vand.u32 2147483648, %v6206_v2 }
 0x1cb   : > { %v1065_v47 = vmul.f32 1.442695, %v1040_v32  ;;  %v6272_v52 = vpop.eup %5035  ;;  %v6274_v53 = vadd.f32 1.0, %v5034_v44  ;;  %v1143_v62 = vmul.f32 %v6242_v26, %v1142_v48  ;;  %v1164_v21 = vand.u32 2147483647, %v6206_v2 }
 0x1cc   : > { %v5038_v59 = vpop.eup %5037  ;;  %5041 = vpow2.f32 %v1063_v46  ;;  %v1156_v0 = vmul.f32 %v6272_v52, %v6206_v2  ;;  %v1133_v11 = vsel %vm1132_vm12, %v6204_v1, %v1129_v54  ;;  %vm1161_vm1 = vweird.f32 %v6272_v52  ;;  %v1341_v46 = vld [vmem:[%s6250_s18 + $0x30] sm:$0xff] }
 0x1cd   : > { %5043 = vrcp.f32 %v6274_v53  ;;  %v6289_v58 = vadd.f32 1.0, %v5038_v59  ;;  %v994_v7 = vpop.f32.mrf.mxu2  ;;  %v1138_v8 = vsel %vm6235_vm5, %v1137_v16, %v1133_v11  ;;  %v6297_v17 = vpop.eup %5039  ;;  %v1144_v4 = vadd.f32 %v6242_v26, %v1143_v62  ;;  %vm6334_vm4 = vmor %vm1160_vm13, %vm1161_vm1  ;;  %v5462_v11 = vld [vmem:[#allocation7 + $0x78] sm:$0xff] }
 0x1ce   : > { %v1023_v9 = vpop.f32.mrf.mxu3  ;;  %5045 = vpow2.f32 %v1065_v47  ;;  %v995_v13 = vadd.f32 %v994_v7, %v6158_v40  ;;  %vm1353_vm14 = vcmp.gt.f32.partialorder %v1138_v8, %v1337_v60  ;;  %v1157_v19 = vsub.f32 1.0, %v1156_v0 }
 0x1cf   : > { %v1024_v14 = vadd.f32 %v1023_v9, %v6160_v41  ;;  %5047 = vrcp.f32 %v6289_v58  ;;  %vm4510_vm0 = vmpackc.low %vm1353_vm14, %vm1351_vm8  ;;  %v1148_v38 = vsel %vm6304_vm15, %v6242_v26, %v1144_v4  ;;  %v1194_v30 = vand.u32 2147483647, %v6274_v53 }
 0x1d0   : > { %v1041_v22 = vsub.f32 0.0, %v995_v13  ;;  %4511 = vmatmul.msk.bf16.vlgmr.msrb.gmra.mxu0 %vm4510_vm0, %v5680_v50  ;;  %v1158_v28 = vmul.f32 %v6272_v52, %v1157_v19  ;;  %v1196_v34 = vand.u32 2147483648, %v6274_v53  ;;  %vm1175_vm2 = vweird.f32 %v6230_v18 }
 0x1d1   : > { %v1042_v16 = vsub.f32 0.0, %v1024_v14  ;;  %v1153_v35 = vsel %vm6267_vm9, %v1152_v56, %v1148_v38  ;;  %v1171_v32 = vmul.f32 %v6297_v17, %v6230_v18  ;;  %2771 = vmatpush.bf16.msrb.mxu0 %v5461_v36  ;;  %vm6338_vm5 = vcmp.eq.f32.partialorder %v1164_v21, 8.507059e+37  ;;  %v1339_v14 = vld [vmem:[%s6250_s18 + $0x20] sm:$0xff] }
 0x1d2   : > { %v5042_v27 = vpop.eup %5041  ;;  %v1067_v31 = vmul.f32 1.442695, %v1041_v22  ;;  %vm1354_vm3 = vcmp.gt.f32.partialorder %v1153_v35, %v1338_v10  ;;  %v1159_v44 = vadd.f32 %v6272_v52, %v1158_v28  ;;  %v1167_v48 = vor.u32 1.1754944e-38, %v1166_v25 }
 0x1d3   : > { %v1069_v24 = vmul.f32 1.442695, %v1042_v16  ;;  %v6325_v26 = vpop.eup %5043  ;;  %v6327_v5 = vadd.f32 1.0, %v5042_v27  ;;  %vm4518_vm6 = vmpackc.low %vm1354_vm3, %vm1352_vm11  ;;  %vm1190_vm7 = vweird.f32 %v6274_v53  ;;  %vm6353_vm9 = vcmp.eq.f32.partialorder %v1194_v30, 8.507059e+37  ;;  %v5464_v27 = vld [vmem:[#allocation7 + $0x70] sm:$0xff] }
 0x1d4   : > { %v5046_v47 = vpop.eup %5045  ;;  %5049 = vpow2.f32 %v1067_v31  ;;  %v1186_v54 = vmul.f32 %v6325_v26, %v6274_v53  ;;  %4519 = vmatmul.msk.bf16.vlgmr.msrb.gmra.mxu1 %vm4518_vm6, %v5680_v50  ;;  %v1163_v59 = vsel %vm6334_vm4, %v6272_v52, %v1159_v44  ;;  %vm1191_vm8 = vweird.f32 %v6325_v26  ;;  %v5463_v52 = vld [vmem:[#allocation7 + $0x30] sm:$0xff]  ;;  %v5465_v31 = vld [vmem:[#allocation7 + $0x28] sm:$0xff] }
 0x1d5   : > { %v997_v2 = vpop.f32.mrf.mxu2  ;;  %v1197_v39 = vor.u32 1.1754944e-38, %v1196_v34  ;;  %v1172_v60 = vsub.f32 1.0, %v1171_v32  ;;  %v6357_v62 = vpop.eup %5047  ;;  %v6359_v0 = vadd.f32 1.0, %v5046_v47  ;;  %5051 = vpow2.f32 %v1069_v24  ;;  %2800 = vmatpush.bf16.msrb.mxu1 %v5462_v11  ;;  %2772 = vmatpush.bf16.msrb.mxu0 %v5463_v52  ;;  %vm6392_vm13 = vmor %vm1190_vm7, %vm1191_vm8  ;;  %v5466_v11 = vld [vmem:[#allocation7 + $0x68] sm:$0xff]  ;;  %v5467_v52 = vld [vmem:[#allocation7 + $0x20] sm:$0xff] }
 0x1d6   : > { %v1026_v56 = vpop.f32.mrf.mxu3  ;;  %v998_v7 = vadd.f32 %v997_v2, %v6158_v40  ;;  %5053 = vrcp.f32 %v6327_v5  ;;  %v1168_v25 = vsel %vm6338_vm5, %v1167_v48, %v1163_v59  ;;  %v1187_v13 = vsub.f32 1.0, %v1186_v54 }
 0x1d7   : > { %v1027_v9 = vadd.f32 %v1026_v56, %v6160_v41  ;;  %v1173_v8 = vmul.f32 %v6297_v17, %v1172_v60  ;;  %vm1176_vm10 = vweird.f32 %v6297_v17  ;;  %v1179_v19 = vand.u32 2147483647, %v6230_v18 }
 0x1d8   : > { %v1043_v4 = vsub.f32 0.0, %v998_v7  ;;  %v1188_v21 = vmul.f32 %v6325_v26, %v1187_v13  ;;  %v1181_v16 = vand.u32 2147483648, %v6230_v18  ;;  %v1201_v10 = vmul.f32 %v6357_v62, %v6289_v58  ;;  %vm6378_vm12 = vmor %vm1175_vm2, %vm1176_vm10 }
 0x1d9   : > { %v1044_v1 = vsub.f32 0.0, %v1027_v9  ;;  %v1174_v22 = vadd.f32 %v6297_v17, %v1173_v8  ;;  %5055 = vrcp.f32 %v6359_v0  ;;  %vm1355_vm11 = vcmp.gt.f32.partialorder %v1168_v25, %v1339_v14  ;;  %2801 = vmatpush.bf16.msrb.mxu1 %v5464_v27  ;;  %2773 = vmatpush.bf16.msrb.mxu0 %v5465_v31  ;;  %v1340_v9 = vld [vmem:[%s6250_s18 + $0x28] sm:$0xff] }
 0x1da   : > { %v5050_v38 = vpop.eup %5049  ;;  %v1071_v28 = vmul.f32 1.442695, %v1043_v4  ;;  %v1189_v35 = vadd.f32 %v6325_v26, %v1188_v21  ;;  %v1182_v36 = vor.u32 1.1754944e-38, %v1181_v16  ;;  %vm1180_vm14 = vcmp.eq.f32.partialorder %v1179_v19, 8.507059e+37  ;;  %v1342_v19 = vld [vmem:[%s6250_s18 + $0x38] sm:$0xff] }
 0x1db   : > { %v1073_v30 = vmul.f32 1.442695, %v1044_v1  ;;  %v6382_v24 = vadd.f32 1.0, %v5050_v38  ;;  %v1178_v32 = vsel %vm6378_vm12, %v6297_v17, %v1174_v22  ;;  %v5052_v44 = vpop.eup %5051  ;;  %v1202_v42 = vsub.f32 1.0, %v1201_v10  ;;  %v5468_v38 = vld [vmem:[#allocation7 + $0x60] sm:$0xff]  ;;  %v1345_v1 = vld [vmem:[%s6250_s18 + $0x50] sm:$0xff] }
 0x1dc   : > { %5057 = vpow2.f32 %v1071_v28  ;;  %v1209_v47 = vand.u32 2147483647, %v6289_v58  ;;  %v6398_v48 = vpop.eup %5053  ;;  %v6401_v17 = vadd.f32 1.0, %v5052_v44  ;;  %v1193_v53 = vsel %vm6392_vm13, %v6325_v26, %v1189_v35  ;;  %v5469_v28 = vld [vmem:[#allocation7 + $0x18] sm:$0xff] }
 0x1dd   : > { %5059 = vrcp.f32 %v6382_v24  ;;  %v999_v54 = vpop.f32.mrf.mxu2  ;;  %v1183_v56 = vsel %vm1180_vm14, %v1182_v36, %v1178_v32  ;;  %v1198_v7 = vsel %vm6353_vm9, %v1197_v39, %v1193_v53  ;;  %2802 = vmatpush.bf16.msrb.mxu1 %v5466_v11  ;;  %2774 = vmatpush.bf16.msrb.mxu0 %v5467_v52  ;;  %v1203_v13 = vmul.f32 %v6357_v62, %v1202_v42  ;;  %v5470_v42 = vld [vmem:[#allocation7 + $0x58] sm:$0xff]  ;;  %v1343_v52 = vld [vmem:[%s6250_s18 + $0x40] sm:$0xff] }
 0x1de   : > { %v1028_v2 = vpop.f32.mrf.mxu3  ;;  %5061 = vpow2.f32 %v1073_v30  ;;  %v1000_v59 = vadd.f32 %v999_v54, %v6158_v40  ;;  %vm1357_vm15 = vcmp.gt.f32.partialorder %v1198_v7, %v1341_v46  ;;  %vm1205_vm0 = vweird.f32 %v6289_v58 }
 0x1df   : > { %v1029_v60 = vadd.f32 %v1028_v2, %v6160_v41  ;;  %vm1206_vm1 = vweird.f32 %v6357_v62  ;;  %v6414_v26 = vpop.eup %5055  ;;  %5063 = vrcp.f32 %v6401_v17  ;;  %vm4512_vm2 = vmpackc.low %vm1357_vm15, %vm1355_vm11  ;;  %v1211_v39 = vand.u32 2147483648, %v6289_v58 }
 0x1e0   : > { %v1045_v8 = vsub.f32 0.0, %v1000_v59  ;;  %4513 = vmatmul.msk.bf16.gmra.mxu0 %vm4512_vm2, %v5680_v50  ;;  %v1204_v4 = vadd.f32 %v6357_v62, %v1203_v13  ;;  %vm6421_vm3 = vcmp.eq.f32.partialorder %v1209_v47, 8.507059e+37  ;;  %vm1356_vm4 = vcmp.gt.f32.partialorder %v1183_v56, %v1340_v9  ;;  %vm1207_vm5 = vmor %vm1205_vm0, %vm1206_vm1  ;;  %v5471_v47 = vld [vmem:[#allocation7 + $0x10] sm:$0xff] }
 0x1e1   : > { %v1046_v37 = vsub.f32 0.0, %v1029_v60  ;;  %v1216_v21 = vmul.f32 %v6398_v48, %v6327_v5  ;;  %v1212_v25 = vor.u32 1.1754944e-38, %v1211_v39  ;;  %v1226_v14 = vand.u32 2147483648, %v6327_v5  ;;  %2803 = vmatpush.bf16.msrb.mxu1 %v5468_v38  ;;  %2775 = vmatpush.bf16.msrb.mxu0 %v5469_v28  ;;  %v5473_v39 = vld [vmem:[#allocation7 + $0x8] sm:$0xff] }
 0x1e2   : > { %v5058_v22 = vpop.eup %5057  ;;  %v1075_v16 = vmul.f32 1.442695, %v1045_v8  ;;  %v1208_v27 = vsel %vm1207_vm5, %v6357_v62, %v1204_v4  ;;  %v1224_v35 = vand.u32 2147483647, %v6327_v5  ;;  %vm1221_vm6 = vweird.f32 %v6398_v48 }
 0x1e3   : > { %v1077_v10 = vmul.f32 1.442695, %v1046_v37  ;;  %v6433_v30 = vpop.eup %5059  ;;  %v6435_v34 = vadd.f32 1.0, %v5058_v22  ;;  %v1217_v31 = vsub.f32 1.0, %v1216_v21  ;;  %v1213_v58 = vsel %vm6421_vm3, %v1212_v25, %v1208_v27  ;;  %v5472_v37 = vld [vmem:[#allocation7 + $0x50] sm:$0xff] }
 0x1e4   : > { %v5062_v32 = vpop.eup %5061  ;;  %5065 = vpow2.f32 %v1075_v16  ;;  %v1246_v36 = vmul.f32 %v6433_v30, %v6382_v24  ;;  %vm1358_vm7 = vcmp.gt.f32.partialorder %v1213_v58, %v1342_v19  ;;  %vm1220_vm9 = vweird.f32 %v6327_v5 }
 0x1e5   : > { %5067 = vrcp.f32 %v6435_v34  ;;  %v6445_v44 = vadd.f32 1.0, %v5062_v32  ;;  %v1218_v62 = vmul.f32 %v6398_v48, %v1217_v31  ;;  %v6448_v18 = vpop.eup %5063  ;;  %vm4520_vm8 = vmpackc.low %vm1358_vm7, %vm1356_vm4  ;;  %2804 = vmatpush.bf16.msrb.mxu1 %v5470_v42  ;;  %2776 = vmatpush.bf16.msrb.mxu0 %v5471_v47  ;;  %vm1225_vm10 = vcmp.eq.f32.partialorder %v1224_v35, 8.507059e+37  ;;  %v5474_v31 = vld [vmem:[#allocation7 + $0x48] sm:$0xff]  ;;  %v5475_v35 = vld [vmem:[#allocation7] sm:$0xff] }
 0x1e6   : > { %5069 = vpow2.f32 %v1077_v10  ;;  %v1247_v46 = vsub.f32 1.0, %v1246_v36  ;;  %4521 = vmatmul.msk.bf16.gmra.mxu1 %vm4520_vm8, %v5680_v50  ;;  %v1227_v2 = vor.u32 1.1754944e-38, %v1226_v14  ;;  %vm1251_vm11 = vweird.f32 %v6433_v30  ;;  %vm1222_vm12 = vmor %vm1220_vm9, %vm1221_vm6 }
 0x1e7   : > { %v1219_v54 = vadd.f32 %v6398_v48, %v1218_v62  ;;  %v1254_v5 = vand.u32 2147483647, %v6382_v24  ;;  %v1256_v56 = vand.u32 2147483648, %v6382_v24  ;;  %v1231_v59 = vmul.f32 %v6414_v26, %v6359_v0 }
 0x1e8   : > { %v1248_v53 = vmul.f32 %v6433_v30, %v1247_v46  ;;  %5071 = vrcp.f32 %v6445_v44  ;;  %vm1250_vm13 = vweird.f32 %v6382_v24  ;;  %vm1235_vm14 = vweird.f32 %v6359_v0 }
 0x1e9   : > { %v1223_v60 = vsel %vm1222_vm12, %v6398_v48, %v1219_v54  ;;  %v1232_v13 = vsub.f32 1.0, %v1231_v59  ;;  %v1239_v8 = vand.u32 2147483647, %v6359_v0  ;;  %2805 = vmatpush.bf16.msrb.mxu1 %v5472_v37  ;;  %2777 = vmatpush.bf16.msrb.mxu0 %v5473_v39  ;;  %vm1252_vm15 = vmor %vm1250_vm13, %vm1251_vm11  ;;  %v1257_v24 = vor.u32 1.1754944e-38, %v1256_v56  ;;  %v1344_v54 = vld [vmem:[%s6250_s18 + $0x48] sm:$0xff]  ;;  %v1346_v59 = vld [vmem:[%s6250_s18 + $0x58] sm:$0xff] }
 0x1ea   : > { %v5066_v7 = vpop.eup %5065  ;;  %v1228_v9 = vsel %vm1225_vm10, %v1227_v2, %v1223_v60  ;;  %v1249_v11 = vadd.f32 %v6433_v30, %v1248_v53  ;;  %vm1236_vm0 = vweird.f32 %v6414_v26  ;;  %v1241_v19 = vand.u32 2147483648, %v6359_v0 }
 0x1eb   : > { %v6469_v4 = vpop.eup %5067  ;;  %v6471_v48 = vadd.f32 1.0, %v5066_v7  ;;  %vm1255_vm1 = vcmp.eq.f32.partialorder %v1254_v5, 8.507059e+37  ;;  %v1233_v16 = vmul.f32 %v6414_v26, %v1232_v13  ;;  %v1261_v10 = vmul.f32 %v6448_v18, %v6401_v17  ;;  %vm6488_vm4 = vmor %vm1235_vm14, %vm1236_vm0  ;;  %v5476_v5 = vld [vmem:[#allocation7 + $0x40] sm:$0xff] }
 0x1ec   : > { %v5070_v21 = vpop.eup %5069  ;;  %v1253_v22 = vsel %vm1252_vm15, %v6433_v30, %v1249_v11  ;;  %vm1359_vm2 = vcmp.gt.f32.partialorder %v1228_v9, %v1343_v52  ;;  %vm6492_vm5 = vcmp.eq.f32.partialorder %v1239_v8, 8.507059e+37  ;;  %v1242_v58 = vor.u32 1.1754944e-38, %v1241_v19 }
 0x1ed   : > { %5073 = vrcp.f32 %v6471_v48  ;;  %v6483_v25 = vadd.f32 1.0, %v5070_v21  ;;  %v1258_v14 = vsel %vm1255_vm1, %v1257_v24, %v1253_v22  ;;  %v1234_v38 = vadd.f32 %v6414_v26, %v1233_v16  ;;  %2806 = vmatpush.bf16.msrb.mxu1 %v5474_v31  ;;  %2778 = vmatpush.bf16.msrb.mxu0 %v5475_v35 }
 0x1ee   : > { %vm1361_vm3 = vcmp.gt.f32.partialorder %v1258_v14, %v1345_v1  ;;  %v1262_v27 = vsub.f32 1.0, %v1261_v10  ;;  %v6496_v32 = vpop.eup %5071  ;;  %v1269_v0 = vand.u32 2147483647, %v6401_v17  ;;  %v1271_v36 = vand.u32 2147483648, %v6401_v17 }
 0x1ef   : > { %vm4514_vm6 = vmpackc.low %vm1361_vm3, %vm1359_vm2  ;;  %v1276_v62 = vmul.f32 %v6469_v4, %v6435_v34  ;;  %5075 = vrcp.f32 %v6483_v25  ;;  %v1238_v46 = vsel %vm6488_vm4, %v6414_v26, %v1234_v38  ;;  %vm1266_vm7 = vweird.f32 %v6448_v18 }
 0x1f0   : > { %v1263_v42 = vmul.f32 %v6448_v18, %v1262_v27  ;;  %4515 = vmatmul.msk.bf16.gmra.mxu0 %vm4514_vm6, %v5680_v50  ;;  %v1243_v47 = vsel %vm6492_vm5, %v1242_v58, %v1238_v46  ;;  %vm1265_vm8 = vweird.f32 %v6401_v17  ;;  %vm1280_vm9 = vweird.f32 %v6435_v34  ;;  %v1349_v27 = vld [vmem:[%s6250_s18 + $0x70] sm:$0xff] }
 0x1f1   : > { %v1277_v2 = vsub.f32 1.0, %v1276_v62  ;;  %2807 = vmatpush.bf16.msrb.mxu1 %v5476_v5  ;;  %vm1267_vm10 = vmor %vm1265_vm8, %vm1266_vm7  ;;  %vm1270_vm11 = vcmp.eq.f32.partialorder %v1269_v0, 8.507059e+37  ;;  %v1272_v56 = vor.u32 1.1754944e-38, %v1271_v36  ;;  %vm1281_vm12 = vweird.f32 %v6469_v4  ;;  %v1350_v5 = vld [vmem:[%s6250_s18 + $0x78] sm:$0xff] }
 0x1f2   : > { %v1264_v53 = vadd.f32 %v6448_v18, %v1263_v42  ;;  %vm1360_vm13 = vcmp.gt.f32.partialorder %v1243_v47, %v1344_v54  ;;  %v1284_v9 = vand.u32 2147483647, %v6435_v34  ;;  %v1286_v13 = vand.u32 2147483648, %v6435_v34  ;;  %vm6526_vm15 = vmor %vm1280_vm9, %vm1281_vm12 }
 0x1f3   : > { %v5074_v26 = vpop.eup %5073  ;;  %v1278_v60 = vmul.f32 %v6469_v4, %v1277_v2  ;;  %v1314_v8 = vand.u32 2147483647, %v6471_v48  ;;  %v1316_v24 = vand.u32 2147483648, %v6471_v48  ;;  %v1291_v1 = vmul.f32 %v6496_v32, %v6445_v44 }
 0x1f4   : > { %v1268_v7 = vsel %vm1267_vm10, %v6448_v18, %v1264_v53  ;;  %v1306_v17 = vmul.f32 %v5074_v26, %v6471_v48  ;;  %vm1310_vm1 = vweird.f32 %v6471_v48  ;;  %vm1311_vm2 = vweird.f32 %v5074_v26 }
 0x1f5   : > { %v1273_v11 = vsel %vm1270_vm11, %v1272_v56, %v1268_v7  ;;  %v1279_v52 = vadd.f32 %v6469_v4, %v1278_v60  ;;  %v5076_v37 = vpop.eup %5075  ;;  %v1292_v21 = vsub.f32 1.0, %v1291_v1  ;;  %vm1285_vm3 = vcmp.eq.f32.partialorder %v1284_v9, 8.507059e+37  ;;  %vm1312_vm6 = vmor %vm1310_vm1, %vm1311_vm2 }
 0x1f6   : > { %vm1362_vm14 = vcmp.gt.f32.partialorder %v1273_v11, %v1346_v59  ;;  %v1307_v18 = vsub.f32 1.0, %v1306_v17  ;;  %v1287_v22 = vor.u32 1.1754944e-38, %v1286_v13  ;;  %vm6538_vm4 = vcmp.eq.f32.partialorder %v1314_v8, 8.507059e+37  ;;  %v1348_v59 = vld [vmem:[%s6250_s18 + $0x68] sm:$0xff] }
 0x1f7   : > { %vm4522_vm0 = vmpackc.low %vm1362_vm14, %vm1360_vm13  ;;  %v1283_v34 = vsel %vm6526_vm15, %v6469_v4, %v1279_v52  ;;  %v1321_v10 = vmul.f32 %v5076_v37, %v6483_v25  ;;  %v1317_v38 = vor.u32 1.1754944e-38, %v1316_v24  ;;  %v1293_v28 = vmul.f32 %v6496_v32, %v1292_v21  ;;  %v1347_v4 = vld [vmem:[%s6250_s18 + $0x60] sm:$0xff] }
 0x1f8   : > { %4523 = vmatmul.msk.bf16.gmra.mxu1 %vm4522_vm0, %v5680_v50  ;;  %v1308_v19 = vmul.f32 %v5074_v26, %v1307_v18  ;;  %vm1296_vm5 = vweird.f32 %v6496_v32  ;;  %v1288_v30 = vsel %vm1285_vm3, %v1287_v22, %v1283_v34  ;;  %vm1295_vm7 = vweird.f32 %v6445_v44 }
 0x1f9   : > { %v1301_v31 = vand.u32 2147483648, %v6445_v44  ;;  %v1322_v35 = vsub.f32 1.0, %v1321_v10  ;;  %v1294_v0 = vadd.f32 %v6496_v32, %v1293_v28  ;;  %v1299_v36 = vand.u32 2147483647, %v6445_v44  ;;  %vm6556_vm8 = vmor %vm1295_vm7, %vm1296_vm5 }
 0x1fa   : > { %v1309_v14 = vadd.f32 %v5074_v26, %v1308_v19  ;;  %v1331_v62 = vand.u32 2147483648, %v6483_v25  ;;  %vm1326_vm9 = vweird.f32 %v5076_v37  ;;  %v1329_v47 = vand.u32 2147483647, %v6483_v25 }
 0x1fb   : > { %v1323_v42 = vmul.f32 %v5076_v37, %v1322_v35  ;;  %vm1363_vm10 = vcmp.gt.f32.partialorder %v1288_v30, %v1347_v4  ;;  %v1298_v44 = vsel %vm6556_vm8, %v6496_v32, %v1294_v0  ;;  %v1302_v54 = vor.u32 1.1754944e-38, %v1301_v31 }
 0x1fc   : > { %v1313_v58 = vsel %vm1312_vm6, %v5074_v26, %v1309_v14  ;;  %vm1325_vm13 = vweird.f32 %v6483_v25  ;;  %vm1300_vm14 = vcmp.eq.f32.partialorder %v1299_v36, 8.507059e+37  ;;  %v1332_v53 = vor.u32 1.1754944e-38, %v1331_v62  ;;  %v6572_v25 = vld [vmem:[%s8129_s4] ss:$0 sm:$0xff] }
 0x1fd   : > { %v1318_v46 = vsel %vm6538_vm4, %v1317_v38, %v1313_v58  ;;  %v1324_v2 = vadd.f32 %v5076_v37, %v1323_v42  ;;  %vm1327_vm15 = vmor %vm1325_vm13, %vm1326_vm9  ;;  %v1303_v26 = vsel %vm1300_vm14, %v1302_v54, %v1298_v44  ;;  %vm1330_vm0 = vcmp.eq.f32.partialorder %v1329_v47, 8.507059e+37 }
 0x1fe   : > { %vm1365_vm11 = vcmp.gt.f32.partialorder %v1318_v46, %v1349_v27  ;;  %vm1364_vm2 = vcmp.gt.f32.partialorder %v1303_v26, %v1348_v59 }
 0x1ff   : > { %vm4516_vm12 = vmpackc.low %vm1365_vm11, %vm1363_vm10  ;;  %v1328_v56 = vsel %vm1327_vm15, %v5076_v37, %v1324_v2 }
 0x200   : > { %4517 = vmatmul.msk.bf16.gmra.mxu0 %vm4516_vm12, %v5680_v50  ;;  %v1333_v60 = vsel %vm1330_vm0, %v1332_v53, %v1328_v56 }
 0x201   : > { %vm1366_vm1 = vcmp.gt.f32.partialorder %v1333_v60, %v1350_v5 }
 0x202   : > { %vm4524_vm3 = vmpackc.low %vm1366_vm1, %vm1364_vm2 }
 0x208   : > { %4525 = vmatmul.msk.bf16.gmra.mxu1 %vm4524_vm3, %v5680_v50 }
 0x24d   : > { %v1416_v32 = vpop.f32.mrf.mxu0 }
 0x24e   : > { %v1417_v7 = vadd.f32 %v6572_v25, %v1416_v32 }
 0x251   : > { %v1445_v9 = vpop.f32.mrf.mxu1 }
 0x252   : > { %v1446_v17 = vadd.f32 %v1445_v9, %v1417_v7 }
 0x254   : > { %v1465_v11 = vsub.f32 0.0, %v1446_v17 }
 0x255   : > { %v1418_v52 = vpop.f32.mrf.mxu0 }
 0x256   : > { %v1473_v13 = vmul.f32 1.442695, %v1465_v11  ;;  %v1419_v8 = vadd.f32 %v6572_v25, %v1418_v52 }
 0x258   : > { %5077 = vpow2.f32 %v1473_v13 }
 0x259   : > { %v1447_v37 = vpop.f32.mrf.mxu1 }
 0x25a   : > { %v1448_v39 = vadd.f32 %v1447_v37, %v1419_v8 }
 0x25c   : > { %v1466_v18 = vsub.f32 0.0, %v1448_v39 }
 0x25d   : > { %v1421_v24 = vpop.f32.mrf.mxu0 }
 0x25e   : > { %v5078_v1 = vpop.eup %5077  ;;  %v1475_v34 = vmul.f32 1.442695, %v1466_v18  ;;  %v1422_v21 = vadd.f32 %v6572_v25, %v1421_v24  ;;  %v4526_v18 = vld [vmem:[%s5891_s20 + $0x40] sm:$0xff]  ;;  %v4527_v24 = vld [vmem:[%s5891_s20 + $0x48] sm:$0xff] }
 0x25f   : > { %v1489_v19 = vadd.f32 1.0, %v5078_v1 }
 0x260   : > { %5079 = vpow2.f32 %v1475_v34 }
 0x261   : > { %5081 = vrcp.f32 %v1489_v19  ;;  %v1508_v5 = vand.u32 2147483648, %v1489_v19  ;;  %vm1502_vm5 = vweird.f32 %v1489_v19  ;;  %v1506_v26 = vand.u32 2147483647, %v1489_v19 }
 0x263   : > { %v1450_v22 = vpop.f32.mrf.mxu1  ;;  %v1509_v52 = vor.u32 1.1754944e-38, %v1508_v5  ;;  %vm1507_vm8 = vcmp.eq.f32.partialorder %v1506_v26, 8.507059e+37 }
 0x264   : > { %v1451_v16 = vadd.f32 %v1450_v22, %v1422_v21 }
 0x265   : > { %v1423_v10 = vpop.f32.mrf.mxu0 }
 0x266   : > { %v5080_v14 = vpop.eup %5079  ;;  %v1467_v38 = vsub.f32 0.0, %v1451_v16  ;;  %v1424_v31 = vadd.f32 %v6572_v25, %v1423_v10 }
 0x267   : > { %v5082_v28 = vpop.eup %5081  ;;  %v1490_v30 = vadd.f32 1.0, %v5080_v14 }
 0x268   : > { %v1498_v4 = vmul.f32 %v5082_v28, %v1489_v19  ;;  %v1477_v27 = vmul.f32 1.442695, %v1467_v38  ;;  %vm1503_vm4 = vweird.f32 %v5082_v28 }
 0x269   : > { %5083 = vrcp.f32 %v1490_v30  ;;  %vm1504_vm6 = vmor %vm1502_vm5, %vm1503_vm4  ;;  %v1523_v59 = vand.u32 2147483648, %v1490_v30  ;;  %v1521_v9 = vand.u32 2147483647, %v1490_v30  ;;  %vm1517_vm9 = vweird.f32 %v1490_v30 }
 0x26a   : > { %5085 = vpow2.f32 %v1477_v27  ;;  %v1499_v35 = vsub.f32 1.0, %v1498_v4 }
 0x26b   : > { %v1452_v58 = vpop.f32.mrf.mxu1  ;;  %v1524_v39 = vor.u32 1.1754944e-38, %v1523_v59  ;;  %vm1522_vm11 = vcmp.eq.f32.partialorder %v1521_v9, 8.507059e+37 }
 0x26c   : > { %v1453_v0 = vadd.f32 %v1452_v58, %v1424_v31  ;;  %v1500_v36 = vmul.f32 %v5082_v28, %v1499_v35 }
 0x26d   : > { %v1426_v62 = vpop.f32.mrf.mxu0 }
 0x26e   : > { %v1468_v46 = vsub.f32 0.0, %v1453_v0  ;;  %v1501_v44 = vadd.f32 %v5082_v28, %v1500_v36  ;;  %v1427_v53 = vadd.f32 %v6572_v25, %v1426_v62 }
 0x26f   : > { %v5084_v48 = vpop.eup %5083 }
 0x270   : > { %v5086_v42 = vpop.eup %5085  ;;  %v1479_v47 = vmul.f32 1.442695, %v1468_v46  ;;  %v1513_v54 = vmul.f32 %v5084_v48, %v1490_v30  ;;  %v1505_v32 = vsel %vm1504_vm6, %v5082_v28, %v1501_v44  ;;  %vm1518_vm7 = vweird.f32 %v5084_v48 }
 0x271   : > { %v6578_v2 = vadd.f32 1.0, %v5086_v42  ;;  %v1510_v37 = vsel %vm1507_vm8, %v1509_v52, %v1505_v32  ;;  %vm1519_vm10 = vmor %vm1517_vm9, %vm1518_vm7 }
 0x272   : > { %5087 = vpow2.f32 %v1479_v47  ;;  %v1514_v56 = vsub.f32 1.0, %v1513_v54  ;;  %vm1626_vm12 = vcmp.gt.f32.partialorder %v1510_v37, %v4526_v18  ;;  %v4528_v37 = vld [vmem:[%s5891_s20 + $0x50] sm:$0xff] }
 0x273   : > { %5089 = vrcp.f32 %v6578_v2  ;;  %v1538_v42 = vand.u32 2147483648, %v6578_v2  ;;  %vm1532_vm0 = vweird.f32 %v6578_v2  ;;  %v1536_v44 = vand.u32 2147483647, %v6578_v2 }
 0x274   : > { %v1515_v7 = vmul.f32 %v5084_v48, %v1514_v56 }
 0x275   : > { %v1455_v60 = vpop.f32.mrf.mxu1  ;;  %v1428_v11 = vpop.f32.mrf.mxu0  ;;  %vm1537_vm3 = vcmp.eq.f32.partialorder %v1536_v44, 8.507059e+37 }
 0x276   : > { %v1456_v17 = vadd.f32 %v1455_v60, %v1427_v53  ;;  %v1516_v13 = vadd.f32 %v5084_v48, %v1515_v7  ;;  %v1429_v16 = vadd.f32 %v6572_v25, %v1428_v11  ;;  %v1539_v7 = vor.u32 1.1754944e-38, %v1538_v42 }
 0x278   : > { %v1469_v8 = vsub.f32 0.0, %v1456_v17  ;;  %v5088_v1 = vpop.eup %5087  ;;  %v1520_v34 = vsel %vm1519_vm10, %v5084_v48, %v1516_v13 }
 0x279   : > { %v5090_v19 = vpop.eup %5089  ;;  %v6584_v21 = vadd.f32 1.0, %v5088_v1  ;;  %v1525_v10 = vsel %vm1522_vm11, %v1524_v39, %v1520_v34  ;;  %v4529_v39 = vld [vmem:[%s5891_s20 + $0x58] sm:$0xff] }
 0x27a   : > { %v1481_v22 = vmul.f32 1.442695, %v1469_v8  ;;  %vm1627_vm13 = vcmp.gt.f32.partialorder %v1525_v10, %v4527_v24  ;;  %v1528_v14 = vmul.f32 %v5090_v19, %v6578_v2  ;;  %vm1533_vm15 = vweird.f32 %v5090_v19 }
 0x27b   : > { %5091 = vrcp.f32 %v6584_v21  ;;  %vm4542_vm14 = vmpackc.low %vm1627_vm13, %vm1626_vm12  ;;  %v1553_v26 = vand.u32 2147483648, %v6584_v21  ;;  %v1551_v60 = vand.u32 2147483647, %v6584_v21  ;;  %vm1547_vm4 = vweird.f32 %v6584_v21 }
 0x27c   : > { %5093 = vpow2.f32 %v1481_v22  ;;  %4543 = vmatmul.msk.bf16.vlgmr.msrb.gmra.mxu2 %vm4542_vm14, %v5680_v50  ;;  %4551 = vmatmul.msk.bf16.vlgmr.msrb.gmra.mxu3 %vm4542_vm14, %v5680_v50  ;;  %v1529_v28 = vsub.f32 1.0, %v1528_v14  ;;  %vm6603_vm1 = vmor %vm1532_vm0, %vm1533_vm15 }
 0x27d   : > { %v1457_v38 = vpop.f32.mrf.mxu1  ;;  %v1431_v4 = vpop.f32.mrf.mxu0  ;;  %3018 = vmatpush.bf16.msrb.mxu2 %v5993_v43  ;;  %3047 = vmatpush.bf16.msrb.mxu3 %v5995_v45  ;;  %v1554_v8 = vor.u32 1.1754944e-38, %v1553_v26  ;;  %vm1552_vm6 = vcmp.eq.f32.partialorder %v1551_v60, 8.507059e+37 }
 0x27e   : > { %v1458_v30 = vadd.f32 %v1457_v38, %v1429_v16  ;;  %v1530_v27 = vmul.f32 %v5090_v19, %v1529_v28  ;;  %v1432_v0 = vadd.f32 %v6572_v25, %v1431_v4 }
 0x280   : > { %v1470_v31 = vsub.f32 0.0, %v1458_v30  ;;  %v1531_v62 = vadd.f32 %v5090_v19, %v1530_v27 }
 0x281   : > { %v5092_v35 = vpop.eup %5091  ;;  %3019 = vmatpush.bf16.msrb.mxu2 %v5999_v49  ;;  %3048 = vmatpush.bf16.msrb.mxu3 %v6001_v51 }
 0x282   : > { %v1483_v58 = vmul.f32 1.442695, %v1470_v31  ;;  %v5094_v36 = vpop.eup %5093  ;;  %v1543_v46 = vmul.f32 %v5092_v35, %v6584_v21  ;;  %v1535_v59 = vsel %vm6603_vm1, %v5090_v19, %v1531_v62  ;;  %vm1548_vm2 = vweird.f32 %v5092_v35 }
 0x283   : > { %v6597_v48 = vadd.f32 1.0, %v5094_v36  ;;  %v1540_v13 = vsel %vm1537_vm3, %v1539_v7, %v1535_v59  ;;  %vm1549_vm5 = vmor %vm1547_vm4, %vm1548_vm2  ;;  %v4531_v59 = vld [vmem:[%s5891_s20 + $0x68] sm:$0xff] }
 0x284   : > { %5095 = vpow2.f32 %v1483_v58  ;;  %v1544_v54 = vsub.f32 1.0, %v1543_v46  ;;  %vm1628_vm7 = vcmp.gt.f32.partialorder %v1540_v13, %v4528_v37 }
 0x285   : > { %v1460_v47 = vpop.f32.mrf.mxu1  ;;  %5097 = vrcp.f32 %v6597_v48  ;;  %3020 = vmatpush.bf16.msrb.mxu2 %v6005_v55  ;;  %3049 = vmatpush.bf16.msrb.mxu3 %v6007_v57  ;;  %v1433_v56 = vpop.f32.mrf.mxu0  ;;  %v1568_v31 = vand.u32 2147483648, %v6597_v48  ;;  %vm1562_vm11 = vweird.f32 %v6597_v48 }
 0x286   : > { %v1461_v53 = vadd.f32 %v1460_v47, %v1432_v0  ;;  %v1545_v2 = vmul.f32 %v5092_v35, %v1544_v54  ;;  %v1434_v52 = vadd.f32 %v6572_v25, %v1433_v56  ;;  %v4530_v56 = vld [vmem:[%s5891_s20 + $0x60] sm:$0xff] }
 0x287   : > { %v1569_v47 = vor.u32 1.1754944e-38, %v1568_v31 }
 0x288   : > { %v1471_v32 = vsub.f32 0.0, %v1461_v53  ;;  %v1546_v9 = vadd.f32 %v5092_v35, %v1545_v2 }
 0x289   : > { %3021 = vmatpush.bf16.msrb.mxu2 %v6011_v61  ;;  %3050 = vmatpush.bf16.msrb.mxu3 %v6013_v63 }
 0x28a   : > { %v5096_v17 = vpop.eup %5095  ;;  %v1485_v11 = vmul.f32 1.442695, %v1471_v32  ;;  %v1550_v24 = vsel %vm1549_vm5, %v5092_v35, %v1546_v9  ;;  %v1566_v35 = vand.u32 2147483647, %v6597_v48 }
 0x28b   : > { %v1494_v18 = vadd.f32 1.0, %v5096_v17  ;;  %v5098_v1 = vpop.eup %5097  ;;  %v1555_v34 = vsel %vm1552_vm6, %v1554_v8, %v1550_v24 }
 0x28c   : > { %5099 = vpow2.f32 %v1485_v11  ;;  %vm1629_vm8 = vcmp.gt.f32.partialorder %v1555_v34, %v4529_v39  ;;  %v1558_v25 = vmul.f32 %v5098_v1, %v6597_v48  ;;  %vm1563_vm10 = vweird.f32 %v5098_v1 }
 0x28d   : > { %5101 = vrcp.f32 %v1494_v18  ;;  %v1462_v19 = vpop.f32.mrf.mxu1  ;;  %vm4544_vm9 = vmpackc.low %vm1629_vm8, %vm1628_vm7  ;;  %3022 = vmatpush.bf16.msrb.mxu2 %v6017_v3  ;;  %3051 = vmatpush.bf16.msrb.mxu3 %v6024_v6  ;;  %v1583_v36 = vand.u32 2147483648, %v1494_v18  ;;  %v1581_v42 = vand.u32 2147483647, %v1494_v18  ;;  %vm1567_vm14 = vcmp.eq.f32.partialorder %v1566_v35, 8.507059e+37 }
 0x28e   : > { %v1463_v21 = vadd.f32 %v1462_v19, %v1434_v52  ;;  %4545 = vmatmul.msk.bf16.gmra.mxu2 %vm4544_vm9, %v5680_v50  ;;  %4553 = vmatmul.msk.bf16.gmra.mxu3 %vm4544_vm9, %v5680_v50  ;;  %v1559_v22 = vsub.f32 1.0, %v1558_v25  ;;  %vm6631_vm12 = vmor %vm1562_vm11, %vm1563_vm10  ;;  %vm1577_vm15 = vweird.f32 %v1494_v18 }
 0x28f   : > { %v1584_v26 = vor.u32 1.1754944e-38, %v1583_v36  ;;  %vm1582_vm1 = vcmp.eq.f32.partialorder %v1581_v42, 8.507059e+37 }
 0x290   : > { %v1472_v16 = vsub.f32 0.0, %v1463_v21  ;;  %v1560_v10 = vmul.f32 %v5098_v1, %v1559_v22  ;;  %v4532_v22 = vld [vmem:[%s5891_s20 + $0x70] sm:$0xff] }
 0x291   : > { %3023 = vmatpush.bf16.msrb.mxu2 %v6028_v12  ;;  %3052 = vmatpush.bf16.msrb.mxu3 %v6031_v15 }
 0x292   : > { %v5100_v14 = vpop.eup %5099  ;;  %v1487_v38 = vmul.f32 1.442695, %v1472_v16  ;;  %v1561_v4 = vadd.f32 %v5098_v1, %v1560_v10  ;;  %v4533_v16 = vld [vmem:[%s5891_s20 + $0x78] sm:$0xff] }
 0x293   : > { %v5102_v28 = vpop.eup %5101  ;;  %v1495_v30 = vadd.f32 1.0, %v5100_v14 }
 0x294   : > { %5103 = vpow2.f32 %v1487_v38  ;;  %v1573_v27 = vmul.f32 %v5102_v28, %v1494_v18  ;;  %v1565_v62 = vsel %vm6631_vm12, %v5098_v1, %v1561_v4  ;;  %vm1578_vm13 = vweird.f32 %v5102_v28 }
 0x295   : > { %5105 = vrcp.f32 %v1495_v30  ;;  %3024 = vmatpush.bf16.msrb.mxu2 %v6035_v20  ;;  %3053 = vmatpush.bf16.msrb.mxu3 %v6037_v23  ;;  %v1570_v5 = vsel %vm1567_vm14, %v1569_v47, %v1565_v62  ;;  %vm1579_vm0 = vmor %vm1577_vm15, %vm1578_vm13  ;;  %v1598_v13 = vand.u32 2147483648, %v1495_v30  ;;  %vm1592_vm6 = vweird.f32 %v1495_v30 }
 0x296   : > { %v1574_v58 = vsub.f32 1.0, %v1573_v27  ;;  %vm1630_vm2 = vcmp.gt.f32.partialorder %v1570_v5, %v4530_v56  ;;  %v1596_v8 = vand.u32 2147483647, %v1495_v30 }
 0x297   : > { %v1599_v34 = vor.u32 1.1754944e-38, %v1598_v13 }
 0x298   : > { %v1575_v46 = vmul.f32 %v5102_v28, %v1574_v58  ;;  %vm1597_vm9 = vcmp.eq.f32.partialorder %v1596_v8, 8.507059e+37 }
 0x299   : > { %3025 = vmatpush.bf16.msrb.mxu2 %v6041_v29  ;;  %3054 = vmatpush.bf16.msrb.mxu3 %v6044_v33 }
 0x29a   : > { %v5104_v48 = vpop.eup %5103  ;;  %v1576_v44 = vadd.f32 %v5102_v28, %v1575_v46 }
 0x29b   : > { %v5106_v54 = vpop.eup %5105  ;;  %v1496_v53 = vadd.f32 1.0, %v5104_v48 }
 0x29c   : > { %v1580_v2 = vsel %vm1579_vm0, %v5102_v28, %v1576_v44  ;;  %v1588_v60 = vmul.f32 %v5106_v54, %v1495_v30  ;;  %vm1593_vm5 = vweird.f32 %v5106_v54 }
 0x29d   : > { %5107 = vrcp.f32 %v1496_v53  ;;  %v1585_v32 = vsel %vm1582_vm1, %v1584_v26, %v1580_v2  ;;  %vm1594_vm7 = vmor %vm1592_vm6, %vm1593_vm5  ;;  %v1613_v39 = vand.u32 2147483648, %v1496_v53  ;;  %v1611_v1 = vand.u32 2147483647, %v1496_v53 }
 0x29e   : > { %vm1631_vm3 = vcmp.gt.f32.partialorder %v1585_v32, %v4531_v59  ;;  %v1589_v7 = vsub.f32 1.0, %v1588_v60  ;;  %vm1607_vm10 = vweird.f32 %v1496_v53 }
 0x29f   : > { %vm4546_vm4 = vmpackc.low %vm1631_vm3, %vm1630_vm2  ;;  %v1614_v21 = vor.u32 1.1754944e-38, %v1613_v39  ;;  %vm1612_vm12 = vcmp.eq.f32.partialorder %v1611_v1, 8.507059e+37 }
 0x2a0   : > { %4547 = vmatmul.msk.bf16.gmra.mxu2 %vm4546_vm4, %v5680_v50  ;;  %4555 = vmatmul.msk.bf16.gmra.mxu3 %vm4546_vm4, %v5680_v50  ;;  %v1590_v9 = vmul.f32 %v5106_v54, %v1589_v7 }
 0x2a2   : > { %v1591_v11 = vadd.f32 %v5106_v54, %v1590_v9 }
 0x2a3   : > { %v5108_v17 = vpop.eup %5107 }
 0x2a4   : > { %v1603_v52 = vmul.f32 %v5108_v17, %v1496_v53  ;;  %v1595_v18 = vsel %vm1594_vm7, %v5106_v54, %v1591_v11  ;;  %vm1608_vm8 = vweird.f32 %v5108_v17 }
 0x2a5   : > { %v1600_v25 = vsel %vm1597_vm9, %v1599_v34, %v1595_v18  ;;  %vm1609_vm11 = vmor %vm1607_vm10, %vm1608_vm8 }
 0x2a6   : > { %v1604_v37 = vsub.f32 1.0, %v1603_v52  ;;  %vm1632_vm13 = vcmp.gt.f32.partialorder %v1600_v25, %v4532_v22 }
 0x2a8   : > { %v1605_v24 = vmul.f32 %v5108_v17, %v1604_v37 }
 0x2aa   : > { %v1606_v19 = vadd.f32 %v5108_v17, %v1605_v24 }
 0x2ac   : > { %v1610_v10 = vsel %vm1609_vm11, %v5108_v17, %v1606_v19 }
 0x2ad   : > { %v1615_v14 = vsel %vm1612_vm12, %v1614_v21, %v1610_v10 }
 0x2ae   : > { %vm1633_vm14 = vcmp.gt.f32.partialorder %v1615_v14, %v4533_v16 }
 0x2af   : > { %vm4548_vm15 = vmpackc.low %vm1633_vm14, %vm1632_vm13 }
 0x2b0   : > { %4549 = vmatmul.msk.bf16.gmra.mxu2 %vm4548_vm15, %v5680_v50  ;;  %4557 = vmatmul.msk.bf16.gmra.mxu3 %vm4548_vm15, %v5680_v50 }
 0x2ff   : > { %v1663_v38 = vpop.f32.mrf.mxu2  ;;  %v1692_v28 = vpop.f32.mrf.mxu3 }
 0x300   : > { %v1664_v30 = vadd.f32 %v1663_v38, %v6158_v40  ;;  %v1693_v4 = vadd.f32 %v1692_v28, %v6160_v41 }
 0x302   : > { %v1712_v27 = vsub.f32 0.0, %v1664_v30  ;;  %v1713_v31 = vsub.f32 0.0, %v1693_v4  ;;  %v4560_v4 = vld [vmem:[%s6250_s18 + $0x90] sm:$0xff] }
 0x304   : > { %v1728_v35 = vmul.f32 1.442695, %v1712_v27  ;;  %v1730_v58 = vmul.f32 1.442695, %v1713_v31 }
 0x306   : > { %5109 = vpow2.f32 %v1728_v35 }
 0x307   : > { %5111 = vpow2.f32 %v1730_v58  ;;  %v1665_v0 = vpop.f32.mrf.mxu2  ;;  %v1694_v36 = vpop.f32.mrf.mxu3 }
 0x308   : > { %v1666_v62 = vadd.f32 %v1665_v0, %v6158_v40  ;;  %v1695_v46 = vadd.f32 %v1694_v36, %v6160_v41 }
 0x30a   : > { %v1714_v42 = vsub.f32 0.0, %v1666_v62  ;;  %v1715_v47 = vsub.f32 0.0, %v1695_v46 }
 0x30c   : > { %v5110_v48 = vpop.eup %5109  ;;  %v1732_v44 = vmul.f32 1.442695, %v1714_v42  ;;  %v1734_v5 = vmul.f32 1.442695, %v1715_v47 }
 0x30d   : > { %v5112_v54 = vpop.eup %5111  ;;  %v1760_v53 = vadd.f32 1.0, %v5110_v48 }
 0x30e   : > { %v1761_v26 = vadd.f32 1.0, %v5112_v54  ;;  %5113 = vpow2.f32 %v1732_v44 }
 0x30f   : > { %5115 = vrcp.f32 %v1760_v53  ;;  %vm1781_vm0 = vweird.f32 %v1760_v53  ;;  %v1785_v52 = vand.u32 2147483647, %v1760_v53  ;;  %v1787_v18 = vand.u32 2147483648, %v1760_v53 }
 0x310   : > { %5117 = vrcp.f32 %v1761_v26  ;;  %vm1796_vm1 = vweird.f32 %v1761_v26  ;;  %v1800_v34 = vand.u32 2147483647, %v1761_v26  ;;  %v1802_v21 = vand.u32 2147483648, %v1761_v26 }
 0x311   : > { %5119 = vpow2.f32 %v1734_v5  ;;  %v1668_v56 = vpop.f32.mrf.mxu2  ;;  %v1697_v59 = vpop.f32.mrf.mxu3  ;;  %vm6670_vm3 = vcmp.eq.f32.partialorder %v1785_v52, 8.507059e+37  ;;  %v1788_v36 = vor.u32 1.1754944e-38, %v1787_v18  ;;  %v4558_v18 = vld [vmem:[%s6250_s18 + $0x80] sm:$0xff] }
 0x312   : > { %v1669_v2 = vadd.f32 %v1668_v56, %v6158_v40  ;;  %v1698_v60 = vadd.f32 %v1697_v59, %v6160_v41  ;;  %vm6687_vm7 = vcmp.eq.f32.partialorder %v1800_v34, 8.507059e+37  ;;  %v1803_v48 = vor.u32 1.1754944e-38, %v1802_v21 }
 0x314   : > { %v5114_v32 = vpop.eup %5113  ;;  %v1716_v7 = vsub.f32 0.0, %v1669_v2  ;;  %v1717_v9 = vsub.f32 0.0, %v1698_v60 }
 0x315   : > { %v6653_v17 = vpop.eup %5115  ;;  %v6655_v11 = vadd.f32 1.0, %v5114_v32 }
 0x316   : > { %v6657_v13 = vpop.eup %5117  ;;  %v1777_v8 = vmul.f32 %v6653_v17, %v1760_v53  ;;  %v1736_v37 = vmul.f32 1.442695, %v1716_v7  ;;  %v1738_v39 = vmul.f32 1.442695, %v1717_v9  ;;  %vm1782_vm2 = vweird.f32 %v6653_v17 }
 0x317   : > { %v5120_v24 = vpop.eup %5119  ;;  %v1792_v1 = vmul.f32 %v6657_v13, %v1761_v26  ;;  %5121 = vrcp.f32 %v6655_v11  ;;  %v1815_v14 = vand.u32 2147483647, %v6655_v11  ;;  %v1817_v27 = vand.u32 2147483648, %v6655_v11  ;;  %vm6681_vm5 = vmor %vm1781_vm0, %vm1782_vm2 }
 0x318   : > { %v1778_v19 = vsub.f32 1.0, %v1777_v8  ;;  %v6662_v25 = vadd.f32 1.0, %v5120_v24  ;;  %5123 = vpow2.f32 %v1736_v37  ;;  %vm1797_vm4 = vweird.f32 %v6657_v13 }
 0x319   : > { %v1793_v22 = vsub.f32 1.0, %v1792_v1  ;;  %5125 = vpow2.f32 %v1738_v39  ;;  %v1670_v16 = vpop.f32.mrf.mxu2  ;;  %v1699_v10 = vpop.f32.mrf.mxu3  ;;  %vm1811_vm6 = vweird.f32 %v6655_v11  ;;  %vm6695_vm8 = vcmp.eq.f32.partialorder %v1815_v14, 8.507059e+37  ;;  %vm6702_vm9 = vmor %vm1796_vm1, %vm1797_vm4  ;;  %v4559_v14 = vld [vmem:[%s6250_s18 + $0x88] sm:$0xff] }
 0x31a   : > { %5127 = vrcp.f32 %v6662_v25  ;;  %v1671_v38 = vadd.f32 %v1670_v16, %v6158_v40  ;;  %v1700_v28 = vadd.f32 %v1699_v10, %v6160_v41  ;;  %v1779_v30 = vmul.f32 %v6653_v17, %v1778_v19 }
 0x31b   : > { %v1794_v31 = vmul.f32 %v6657_v13, %v1793_v22  ;;  %v1830_v2 = vand.u32 2147483647, %v6662_v25  ;;  %v1818_v9 = vor.u32 1.1754944e-38, %v1817_v27  ;;  %vm1826_vm10 = vweird.f32 %v6662_v25 }
 0x31c   : > { %v1718_v35 = vsub.f32 0.0, %v1671_v38  ;;  %v1719_v58 = vsub.f32 0.0, %v1700_v28  ;;  %v1780_v0 = vadd.f32 %v6653_v17, %v1779_v30 }
 0x31d   : > { %v5122_v62 = vpop.eup %5121  ;;  %v1795_v42 = vadd.f32 %v6657_v13, %v1794_v31  ;;  %vm6726_vm12 = vcmp.eq.f32.partialorder %v1830_v2, 8.507059e+37 }
 0x31e   : > { %v5124_v44 = vpop.eup %5123  ;;  %v1807_v54 = vmul.f32 %v5122_v62, %v6655_v11  ;;  %v1740_v5 = vmul.f32 1.442695, %v1718_v35  ;;  %v1784_v53 = vsel %vm6681_vm5, %v6653_v17, %v1780_v0  ;;  %v1742_v7 = vmul.f32 1.442695, %v1719_v58 }
 0x31f   : > { %v5126_v60 = vpop.eup %5125  ;;  %v6707_v32 = vadd.f32 1.0, %v5124_v44  ;;  %v1799_v17 = vsel %vm6702_vm9, %v6657_v13, %v1795_v42  ;;  %v1789_v39 = vsel %vm6670_vm3, %v1788_v36, %v1784_v53  ;;  %v1832_v13 = vand.u32 2147483648, %v6662_v25  ;;  %v4561_v53 = vld [vmem:[%s6250_s18 + $0x98] sm:$0xff] }
 0x320   : > { %v6712_v52 = vpop.eup %5127  ;;  %v1808_v8 = vsub.f32 1.0, %v1807_v54  ;;  %v6714_v26 = vadd.f32 1.0, %v5126_v60  ;;  %5129 = vpow2.f32 %v1740_v5  ;;  %vm1812_vm11 = vweird.f32 %v5122_v62 }
 0x321   : > { %v1822_v37 = vmul.f32 %v6712_v52, %v6662_v25  ;;  %5131 = vrcp.f32 %v6707_v32  ;;  %v1804_v19 = vsel %vm6687_vm7, %v1803_v48, %v1799_v17  ;;  %vm2033_vm13 = vcmp.gt.f32.partialorder %v1789_v39, %v4558_v18  ;;  %vm1813_vm15 = vmor %vm1811_vm6, %vm1812_vm11  ;;  %v5478_v18 = vld [vmem:[#allocation7 + $0x38] sm:$0xff] }
 0x322   : > { %v1809_v34 = vmul.f32 %v5122_v62, %v1808_v8  ;;  %5133 = vpow2.f32 %v1742_v7  ;;  %vm1827_vm14 = vweird.f32 %v6712_v52  ;;  %v1833_v31 = vor.u32 1.1754944e-38, %v1832_v13 }
 0x323   : > { %v1673_v24 = vpop.f32.mrf.mxu2  ;;  %v1702_v1 = vpop.f32.mrf.mxu3  ;;  %v1823_v22 = vsub.f32 1.0, %v1822_v37  ;;  %5135 = vrcp.f32 %v6714_v26  ;;  %vm2034_vm0 = vcmp.gt.f32.partialorder %v1804_v19, %v4559_v14  ;;  %vm1841_vm1 = vweird.f32 %v6707_v32  ;;  %vm6752_vm3 = vmor %vm1826_vm10, %vm1827_vm14 }
 0x324   : > { %v1674_v16 = vadd.f32 %v1673_v24, %v6158_v40  ;;  %v1703_v10 = vadd.f32 %v1702_v1, %v6160_v41  ;;  %v1810_v38 = vadd.f32 %v5122_v62, %v1809_v34  ;;  %v1845_v0 = vand.u32 2147483647, %v6707_v32 }
 0x325   : > { %v1824_v27 = vmul.f32 %v6712_v52, %v1823_v22  ;;  %v1847_v54 = vand.u32 2147483648, %v6707_v32  ;;  %v1860_v25 = vand.u32 2147483647, %v6714_v26 }
 0x326   : > { %v1720_v28 = vsub.f32 0.0, %v1674_v16  ;;  %v1721_v30 = vsub.f32 0.0, %v1703_v10  ;;  %v5130_v35 = vpop.eup %5129  ;;  %v1814_v58 = vsel %vm1813_vm15, %v5122_v62, %v1810_v38  ;;  %vm6786_vm9 = vcmp.eq.f32.partialorder %v1845_v0, 8.507059e+37  ;;  %v5483_v38 = vld [vmem:[#allocation7 + $0x68] sm:$0xff] }
 0x327   : > { %v6741_v36 = vpop.eup %5131  ;;  %v6743_v46 = vadd.f32 1.0, %v5130_v35  ;;  %v1819_v11 = vsel %vm6695_vm8, %v1818_v9, %v1814_v58  ;;  %v1825_v48 = vadd.f32 %v6712_v52, %v1824_v27  ;;  %vm1856_vm8 = vweird.f32 %v6714_v26  ;;  %v5480_v27 = vld [vmem:[#allocation7 + $0x30] sm:$0xff] }
 0x328   : > { %v1744_v42 = vmul.f32 1.442695, %v1720_v28  ;;  %v1746_v47 = vmul.f32 1.442695, %v1721_v30  ;;  %vm2035_vm2 = vcmp.gt.f32.partialorder %v1819_v11, %v4560_v4  ;;  %v1837_v44 = vmul.f32 %v6741_v36, %v6707_v32  ;;  %v5134_v5 = vpop.eup %5133  ;;  %v5479_v4 = vld [vmem:[#allocation7 + $0x78] sm:$0xff] }
 0x329   : > { %5137 = vrcp.f32 %v6743_v46  ;;  %vm4590_vm4 = vmpackc.low %vm2035_vm2, %vm2033_vm13  ;;  %vm1842_vm5 = vweird.f32 %v6741_v36  ;;  %v1877_v56 = vand.u32 2147483648, %v6743_v46  ;;  %v6765_v59 = vpop.eup %5135  ;;  %v6767_v2 = vadd.f32 1.0, %v5134_v5 }
 0x32a   : > { %5139 = vpow2.f32 %v1744_v42  ;;  %4591 = vmatmul.msk.bf16.vlgmr.msra.gmra.mxu0 %vm4590_vm4, %v5680_v50  ;;  %v1829_v9 = vsel %vm6752_vm3, %v6712_v52, %v1825_v48  ;;  %v1838_v17 = vsub.f32 1.0, %v1837_v44  ;;  %v1875_v24 = vand.u32 2147483647, %v6743_v46  ;;  %vm6797_vm11 = vmor %vm1841_vm1, %vm1842_vm5 }
 0x32b   : > { %v1675_v60 = vpop.f32.mrf.mxu2  ;;  %v1704_v7 = vpop.f32.mrf.mxu3  ;;  %5141 = vpow2.f32 %v1746_v47  ;;  %v1834_v39 = vsel %vm6726_vm12, %v1833_v31, %v1829_v9  ;;  %3453 = vmatpush.bf16.msra.mxu0 %v5478_v18  ;;  %v1852_v34 = vmul.f32 %v6765_v59, %v6714_v26  ;;  %v1848_v16 = vor.u32 1.1754944e-38, %v1847_v54  ;;  %v5481_v9 = vld [vmem:[#allocation7 + $0x70] sm:$0xff] }
 0x32c   : > { %v1676_v8 = vadd.f32 %v1675_v60, %v6158_v40  ;;  %v1705_v37 = vadd.f32 %v1704_v7, %v6160_v41  ;;  %5143 = vrcp.f32 %v6767_v2  ;;  %vm2036_vm6 = vcmp.gt.f32.partialorder %v1834_v39, %v4561_v53 }
 0x32d   : > { %v1839_v13 = vmul.f32 %v6741_v36, %v1838_v17  ;;  %vm4598_vm7 = vmpackc.low %vm2036_vm6, %vm2034_vm0  ;;  %vm1871_vm10 = vweird.f32 %v6743_v46  ;;  %v6801_v28 = vor.u32 1.1754944e-38, %v1877_v56  ;;  %v1853_v30 = vsub.f32 1.0, %v1852_v34  ;;  %v4562_v56 = vld [vmem:[%s6250_s18 + $0xa0] sm:$0xff]  ;;  %v5482_v17 = vld [vmem:[#allocation7 + $0x28] sm:$0xff] }
 0x32e   : > { %v1722_v1 = vsub.f32 0.0, %v1676_v8  ;;  %v1723_v52 = vsub.f32 0.0, %v1705_v37  ;;  %4599 = vmatmul.msk.bf16.vlgmr.msra.gmra.mxu1 %vm4598_vm7, %v5680_v50  ;;  %vm6808_vm12 = vcmp.eq.f32.partialorder %v1875_v24, 8.507059e+37  ;;  %vm1857_vm13 = vweird.f32 %v6765_v59 }
 0x32f   : > { %v1840_v21 = vadd.f32 %v6741_v36, %v1839_v13  ;;  %v6791_v10 = vpop.eup %5137  ;;  %3482 = vmatpush.bf16.msra.mxu1 %v5479_v4  ;;  %3454 = vmatpush.bf16.msra.mxu0 %v5480_v27  ;;  %vm6813_vm14 = vcmp.eq.f32.partialorder %v1860_v25, 8.507059e+37  ;;  %v1862_v11 = vand.u32 2147483648, %v6714_v26  ;;  %vm1886_vm0 = vweird.f32 %v6767_v2  ;;  %vm6841_vm2 = vmor %vm1856_vm8, %vm1857_vm13 }
 0x330   : > { %v1748_v19 = vmul.f32 1.442695, %v1722_v1  ;;  %v1750_v14 = vmul.f32 1.442695, %v1723_v52  ;;  %v5140_v31 = vpop.eup %5139  ;;  %v1867_v58 = vmul.f32 %v6791_v10, %v6743_v46  ;;  %vm1872_vm15 = vweird.f32 %v6791_v10 }
 0x331   : > { %v1844_v35 = vsel %vm6797_vm11, %v6741_v36, %v1840_v21  ;;  %v5142_v42 = vpop.eup %5141  ;;  %v6817_v47 = vadd.f32 1.0, %v5140_v31  ;;  %v1854_v36 = vmul.f32 %v6765_v59, %v1853_v30  ;;  %v1863_v24 = vor.u32 1.1754944e-38, %v1862_v11  ;;  %vm6852_vm3 = vmor %vm1871_vm10, %vm1872_vm15  ;;  %v5484_v30 = vld [vmem:[#allocation7 + $0x20] sm:$0xff] }
 0x332   : > { %5145 = vpow2.f32 %v1748_v19  ;;  %v6821_v48 = vpop.eup %5143  ;;  %v6823_v62 = vadd.f32 1.0, %v5142_v42  ;;  %v1849_v5 = vsel %vm6786_vm9, %v1848_v16, %v1844_v35  ;;  %v1868_v53 = vsub.f32 1.0, %v1867_v58  ;;  %v4564_v16 = vld [vmem:[%s6250_s18 + $0xb0] sm:$0xff] }
 0x333   : > { %5147 = vpow2.f32 %v1750_v14  ;;  %v1678_v44 = vpop.f32.mrf.mxu2  ;;  %v1707_v54 = vpop.f32.mrf.mxu3  ;;  %v1855_v7 = vadd.f32 %v6765_v59, %v1854_v36  ;;  %3483 = vmatpush.bf16.msra.mxu1 %v5481_v9  ;;  %3455 = vmatpush.bf16.msra.mxu0 %v5482_v17  ;;  %v1882_v37 = vmul.f32 %v6821_v48, %v6767_v2  ;;  %vm2037_vm1 = vcmp.gt.f32.partialorder %v1849_v5, %v4562_v56 }
 0x334   : > { %5149 = vrcp.f32 %v6817_v47  ;;  %v1679_v25 = vadd.f32 %v1678_v44, %v6158_v40  ;;  %v1708_v60 = vadd.f32 %v1707_v54, %v6160_v41  ;;  %v1869_v8 = vmul.f32 %v6791_v10, %v1868_v53 }
 0x335   : > { %5151 = vrcp.f32 %v6823_v62  ;;  %v1859_v52 = vsel %vm6841_vm2, %v6765_v59, %v1855_v7  ;;  %v1883_v34 = vsub.f32 1.0, %v1882_v37  ;;  %vm1887_vm4 = vweird.f32 %v6821_v48  ;;  %v5485_v7 = vld [vmem:[#allocation7 + $0x60] sm:$0xff] }
 0x336   : > { %v1724_v39 = vsub.f32 0.0, %v1679_v25  ;;  %v1725_v18 = vsub.f32 0.0, %v1708_v60  ;;  %v1870_v1 = vadd.f32 %v6791_v10, %v1869_v8  ;;  %v1890_v19 = vand.u32 2147483647, %v6767_v2  ;;  %vm6881_vm6 = vmor %vm1886_vm0, %vm1887_vm4  ;;  %v4563_v25 = vld [vmem:[%s6250_s18 + $0xa8] sm:$0xff]  ;;  %v4565_v60 = vld [vmem:[%s6250_s18 + $0xb8] sm:$0xff] }
 0x337   : > { %v1892_v14 = vand.u32 2147483648, %v6767_v2  ;;  %3484 = vmatpush.bf16.msra.mxu1 %v5483_v38  ;;  %3456 = vmatpush.bf16.msra.mxu0 %v5484_v30  ;;  %v1884_v31 = vmul.f32 %v6821_v48, %v1883_v34  ;;  %v1864_v36 = vsel %vm6813_vm14, %v1863_v24, %v1859_v52  ;;  %v5486_v2 = vld [vmem:[#allocation7 + $0x18] sm:$0xff]  ;;  %v1907_v52 = vand.u32 2147483648, %v6817_v47  ;;  %v5488_v34 = vld [vmem:[#allocation7 + $0x10] sm:$0xff] }
 0x338   : > { %v5146_v21 = vpop.eup %5145  ;;  %v1752_v22 = vmul.f32 1.442695, %v1724_v39  ;;  %v1754_v27 = vmul.f32 1.442695, %v1725_v18  ;;  %v1874_v46 = vsel %vm6852_vm3, %v6791_v10, %v1870_v1  ;;  %vm1891_vm8 = vcmp.eq.f32.partialorder %v1890_v19, 8.507059e+37 }
 0x339   : > { %v5148_v59 = vpop.eup %5147  ;;  %v6860_v4 = vadd.f32 1.0, %v5146_v21  ;;  %v1879_v42 = vsel %vm6808_vm12, %v6801_v28, %v1874_v46  ;;  %v1885_v44 = vadd.f32 %v6821_v48, %v1884_v31  ;;  %v1893_v53 = vor.u32 1.1754944e-38, %v1892_v14 }
 0x33a   : > { %v6866_v35 = vpop.eup %5149  ;;  %v6868_v58 = vadd.f32 1.0, %v5148_v59  ;;  %5153 = vpow2.f32 %v1752_v22  ;;  %vm2039_vm5 = vcmp.gt.f32.partialorder %v1879_v42, %v4564_v16  ;;  %v1905_v39 = vand.u32 2147483647, %v6817_v47 }
 0x33b   : > { %5155 = vrcp.f32 %v6860_v4  ;;  %v1680_v11 = vpop.f32.mrf.mxu2  ;;  %v1709_v10 = vpop.f32.mrf.mxu3  ;;  %v1897_v28 = vmul.f32 %v6866_v35, %v6817_v47  ;;  %vm4592_vm7 = vmpackc.low %vm2039_vm5, %vm2037_vm1  ;;  %3485 = vmatpush.bf16.msra.mxu1 %v5485_v7  ;;  %3457 = vmatpush.bf16.msra.mxu0 %v5486_v2  ;;  %v1889_v17 = vsel %vm6881_vm6, %v6821_v48, %v1885_v44  ;;  %vm2038_vm9 = vcmp.gt.f32.partialorder %v1864_v36, %v4563_v25  ;;  %v5487_v48 = vld [vmem:[#allocation7 + $0x58] sm:$0xff] }
 0x33c   : > { %5157 = vrcp.f32 %v6868_v58  ;;  %v1681_v32 = vadd.f32 %v1680_v11, %v6158_v40  ;;  %v1710_v0 = vadd.f32 %v1709_v10, %v6160_v41  ;;  %v6893_v9 = vpop.eup %5151  ;;  %4593 = vmatmul.msk.bf16.gmra.mxu0 %vm4592_vm7, %v5680_v50  ;;  %v1894_v37 = vsel %vm1891_vm8, %v1893_v53, %v1889_v17  ;;  %v5489_v11 = vld [vmem:[#allocation7 + $0x50] sm:$0xff]  ;;  %v5490_v10 = vld [vmem:[#allocation7 + $0x8] sm:$0xff] }
 0x33d   : > { %5159 = vpow2.f32 %v1754_v27  ;;  %v1898_v8 = vsub.f32 1.0, %v1897_v28  ;;  %vm2040_vm10 = vcmp.gt.f32.partialorder %v1894_v37, %v4565_v60  ;;  %vm1902_vm12 = vweird.f32 %v6866_v35  ;;  %v5492_v37 = vld [vmem:[#allocation7] sm:$0xff] }
 0x33e   : > { %v1726_v5 = vsub.f32 0.0, %v1681_v32  ;;  %v1727_v56 = vsub.f32 0.0, %v1710_v0  ;;  %vm4600_vm11 = vmpackc.low %vm2040_vm10, %vm2038_vm9  ;;  %v1937_v16 = vand.u32 2147483648, %v6860_v4  ;;  %v1912_v19 = vmul.f32 %v6893_v9, %v6823_v62 }
 0x33f   : > { %v1899_v18 = vmul.f32 %v6866_v35, %v1898_v8  ;;  %3486 = vmatpush.bf16.msra.mxu1 %v5487_v48  ;;  %3458 = vmatpush.bf16.msra.mxu0 %v5488_v34  ;;  %vm1901_vm13 = vweird.f32 %v6817_v47  ;;  %vm6915_vm14 = vcmp.eq.f32.partialorder %v1905_v39, 8.507059e+37  ;;  %vm1931_vm0 = vweird.f32 %v6860_v4  ;;  %v4566_v8 = vld [vmem:[%s6250_s18 + $0xc0] sm:$0xff] }
 0x340   : > { %v5154_v13 = vpop.eup %5153  ;;  %v1756_v24 = vmul.f32 1.442695, %v1726_v5  ;;  %v1758_v1 = vmul.f32 1.442695, %v1727_v56  ;;  %4601 = vmatmul.msk.bf16.gmra.mxu1 %vm4600_vm11, %v5680_v50  ;;  %vm6924_vm15 = vmor %vm1901_vm13, %vm1902_vm12  ;;  %v1935_v47 = vand.u32 2147483647, %v6860_v4  ;;  %vm1917_vm2 = vweird.f32 %v6893_v9 }
 0x341   : > { %v6903_v21 = vpop.eup %5155  ;;  %v6905_v22 = vadd.f32 1.0, %v5154_v13  ;;  %v1900_v26 = vadd.f32 %v6866_v35, %v1899_v18  ;;  %v1913_v46 = vsub.f32 1.0, %v1912_v19  ;;  %v1908_v44 = vor.u32 1.1754944e-38, %v1907_v52  ;;  %v5491_v56 = vld [vmem:[#allocation7 + $0x48] sm:$0xff] }
 0x342   : > { %v6912_v14 = vpop.eup %5157  ;;  %5161 = vpow2.f32 %v1756_v24  ;;  %v1927_v30 = vmul.f32 %v6903_v21, %v6860_v4  ;;  %vm1932_vm1 = vweird.f32 %v6903_v21  ;;  %v1938_v54 = vor.u32 1.1754944e-38, %v1937_v16  ;;  %v4568_v4 = vld [vmem:[%s6250_s18 + $0xd0] sm:$0xff] }
 0x343   : > { %v5160_v59 = vpop.eup %5159  ;;  %5163 = vrcp.f32 %v6905_v22  ;;  %v1904_v42 = vsel %vm6924_vm15, %v6866_v35, %v1900_v26  ;;  %3487 = vmatpush.bf16.msra.mxu1 %v5489_v11  ;;  %3459 = vmatpush.bf16.msra.mxu0 %v5490_v10  ;;  %v1914_v28 = vmul.f32 %v6893_v9, %v1913_v46  ;;  %v1922_v35 = vand.u32 2147483648, %v6823_v62  ;;  %vm6953_vm4 = vmor %vm1931_vm0, %vm1932_vm1  ;;  %v4567_v46 = vld [vmem:[%s6250_s18 + $0xc8] sm:$0xff] }
 0x344   : > { %v6930_v31 = vadd.f32 1.0, %v5160_v59  ;;  %5165 = vpow2.f32 %v1758_v1  ;;  %v1928_v36 = vsub.f32 1.0, %v1927_v30  ;;  %v1909_v0 = vsel %vm6915_vm14, %v1908_v44, %v1904_v42  ;;  %v5493_v59 = vld [vmem:[#allocation7 + $0x40] sm:$0xff] }
 0x345   : > { %vm6943_vm3 = vcmp.eq.f32.partialorder %v1935_v47, 8.507059e+37  ;;  %v1915_v25 = vadd.f32 %v6893_v9, %v1914_v28  ;;  %v1942_v60 = vmul.f32 %v6912_v14, %v6868_v58  ;;  %vm1916_vm5 = vweird.f32 %v6823_v62 }
 0x346   : > { %5167 = vrcp.f32 %v6930_v31  ;;  %v1929_v32 = vmul.f32 %v6903_v21, %v1928_v36  ;;  %v1920_v5 = vand.u32 2147483647, %v6823_v62  ;;  %vm1947_vm6 = vweird.f32 %v6912_v14  ;;  %vm6968_vm7 = vmor %vm1916_vm5, %vm1917_vm2  ;;  %v4569_v36 = vld [vmem:[%s6250_s18 + $0xd8] sm:$0xff] }
 0x347   : > { %3488 = vmatpush.bf16.msra.mxu1 %v5491_v56  ;;  %3460 = vmatpush.bf16.msra.mxu0 %v5492_v37  ;;  %v1923_v24 = vor.u32 1.1754944e-38, %v1922_v35  ;;  %v1943_v1 = vsub.f32 1.0, %v1942_v60  ;;  %v1950_v62 = vand.u32 2147483647, %v6868_v58  ;;  %v1919_v34 = vsel %vm6968_vm7, %v6893_v9, %v1915_v25 }
 0x348   : > { %v5162_v7 = vpop.eup %5161  ;;  %v1930_v2 = vadd.f32 %v6903_v21, %v1929_v32  ;;  %v1952_v26 = vand.u32 2147483648, %v6868_v58  ;;  %vm2041_vm8 = vcmp.gt.f32.partialorder %v1909_v0, %v4566_v8  ;;  %vm1921_vm10 = vcmp.eq.f32.partialorder %v1920_v5, 8.507059e+37 }
 0x349   : > { %v6961_v39 = vpop.eup %5163  ;;  %v6963_v18 = vadd.f32 1.0, %v5162_v7  ;;  %v1944_v30 = vmul.f32 %v6912_v14, %v1943_v1  ;;  %v1924_v27 = vsel %vm1921_vm10, %v1923_v24, %v1919_v34  ;;  %vm1946_vm12 = vweird.f32 %v6868_v58 }
 0x34a   : > { %v5166_v52 = vpop.eup %5165  ;;  %v1934_v48 = vsel %vm6953_vm4, %v6903_v21, %v1930_v2  ;;  %v1957_v16 = vmul.f32 %v6961_v39, %v6905_v22  ;;  %vm1948_vm13 = vmor %vm1946_vm12, %vm1947_vm6  ;;  %v1953_v42 = vor.u32 1.1754944e-38, %v1952_v26  ;;  %vm1951_vm14 = vcmp.eq.f32.partialorder %v1950_v62, 8.507059e+37 }
 0x34b   : > { %5169 = vrcp.f32 %v6963_v18  ;;  %v6983_v19 = vadd.f32 1.0, %v5166_v52  ;;  %v1939_v38 = vsel %vm6943_vm3, %v1938_v54, %v1934_v48  ;;  %3489 = vmatpush.bf16.msra.mxu1 %v5493_v59  ;;  %v1945_v47 = vadd.f32 %v6912_v14, %v1944_v30  ;;  %v4570_v52 = vld [vmem:[%s6250_s18 + $0xe0] sm:$0xff] }
 0x34c   : > { %v6988_v21 = vpop.eup %5167  ;;  %vm2043_vm9 = vcmp.gt.f32.partialorder %v1939_v38, %v4568_v4  ;;  %v1958_v9 = vsub.f32 1.0, %v1957_v16  ;;  %vm2042_vm15 = vcmp.gt.f32.partialorder %v1924_v27, %v4567_v46  ;;  %vm1962_vm0 = vweird.f32 %v6961_v39  ;;  %v4572_v38 = vld [vmem:[%s6250_s18 + $0xf0] sm:$0xff] }
 0x34d   : > { %5171 = vrcp.f32 %v6983_v19  ;;  %vm4594_vm11 = vmpackc.low %vm2043_vm9, %vm2041_vm8  ;;  %v1949_v10 = vsel %vm1948_vm13, %v6912_v14, %v1945_v47  ;;  %v1972_v44 = vmul.f32 %v6988_v21, %v6930_v31  ;;  %v1965_v32 = vand.u32 2147483647, %v6905_v22 }
 0x34e   : > { %4595 = vmatmul.msk.bf16.gmra.mxu0 %vm4594_vm11, %v5680_v50  ;;  %v1959_v11 = vmul.f32 %v6961_v39, %v1958_v9  ;;  %v1954_v54 = vsel %vm1951_vm14, %v1953_v42, %v1949_v10  ;;  %v1967_v35 = vand.u32 2147483648, %v6905_v22  ;;  %vm1961_vm3 = vweird.f32 %v6905_v22 }
 0x34f   : > { %vm2044_vm1 = vcmp.gt.f32.partialorder %v1954_v54, %v4569_v36  ;;  %v1973_v0 = vsub.f32 1.0, %v1972_v44  ;;  %vm7009_vm4 = vmor %vm1961_vm3, %vm1962_vm0  ;;  %vm1991_vm5 = vweird.f32 %v6963_v18  ;;  %v1995_v60 = vand.u32 2147483647, %v6963_v18  ;;  %v4571_v36 = vld [vmem:[%s6250_s18 + $0xe8] sm:$0xff] }
 0x350   : > { %v1960_v58 = vadd.f32 %v6961_v39, %v1959_v11  ;;  %vm4602_vm2 = vmpackc.low %vm2044_vm1, %vm2042_vm15  ;;  %v1997_v17 = vand.u32 2147483648, %v6963_v18  ;;  %vm1966_vm6 = vcmp.eq.f32.partialorder %v1965_v32, 8.507059e+37  ;;  %v1968_v5 = vor.u32 1.1754944e-38, %v1967_v35 }
 0x351   : > { %v5170_v28 = vpop.eup %5169  ;;  %4603 = vmatmul.msk.bf16.gmra.mxu1 %vm4602_vm2, %v5680_v50  ;;  %v1974_v7 = vmul.f32 %v6988_v21, %v1973_v0  ;;  %vm1977_vm7 = vweird.f32 %v6988_v21  ;;  %v1982_v4 = vand.u32 2147483648, %v6930_v31  ;;  %vm1976_vm9 = vweird.f32 %v6930_v31 }
 0x352   : > { %v1987_v14 = vmul.f32 %v5170_v28, %v6963_v18  ;;  %v1964_v2 = vsel %vm7009_vm4, %v6961_v39, %v1960_v58  ;;  %vm1992_vm8 = vweird.f32 %v5170_v28  ;;  %v1980_v39 = vand.u32 2147483647, %v6930_v31  ;;  %vm7028_vm10 = vmor %vm1976_vm9, %vm1977_vm7  ;;  %v4573_v18 = vld [vmem:[%s6250_s18 + $0xf8] sm:$0xff] }
 0x353   : > { %v5172_v53 = vpop.eup %5171  ;;  %v1975_v56 = vadd.f32 %v6988_v21, %v1974_v7  ;;  %v1969_v24 = vsel %vm1966_vm6, %v1968_v5, %v1964_v2  ;;  %v2012_v1 = vand.u32 2147483648, %v6983_v19  ;;  %v2010_v26 = vand.u32 2147483647, %v6983_v19  ;;  %vm1993_vm12 = vmor %vm1991_vm5, %vm1992_vm8 }
 0x354   : > { %v1988_v22 = vsub.f32 1.0, %v1987_v14  ;;  %v2002_v8 = vmul.f32 %v5172_v53, %v6983_v19  ;;  %vm2007_vm11 = vweird.f32 %v5172_v53  ;;  %vm1996_vm13 = vcmp.eq.f32.partialorder %v1995_v60, 8.507059e+37 }
 0x355   : > { %v1998_v16 = vor.u32 1.1754944e-38, %v1997_v17  ;;  %v1979_v31 = vsel %vm7028_vm10, %v6988_v21, %v1975_v56  ;;  %v1983_v9 = vor.u32 1.1754944e-38, %v1982_v4  ;;  %vm2006_vm14 = vweird.f32 %v6983_v19  ;;  %v7047_v21 = vld [vmem:[%s8129_s4] ss:$0 sm:$0xff] }
 0x356   : > { %v1989_v37 = vmul.f32 %v5170_v28, %v1988_v22  ;;  %v2003_v13 = vsub.f32 1.0, %v2002_v8  ;;  %vm2045_vm15 = vcmp.gt.f32.partialorder %v1969_v24, %v4570_v52  ;;  %vm1981_vm0 = vcmp.eq.f32.partialorder %v1980_v39, 8.507059e+37  ;;  %vm2008_vm1 = vmor %vm2006_vm14, %vm2007_vm11 }
 0x357   : > { %v2013_v47 = vor.u32 1.1754944e-38, %v2012_v1  ;;  %v1984_v46 = vsel %vm1981_vm0, %v1983_v9, %v1979_v31  ;;  %vm2011_vm3 = vcmp.eq.f32.partialorder %v2010_v26, 8.507059e+37 }
 0x358   : > { %v1990_v62 = vadd.f32 %v5170_v28, %v1989_v37  ;;  %v2004_v34 = vmul.f32 %v5172_v53, %v2003_v13  ;;  %vm2046_vm6 = vcmp.gt.f32.partialorder %v1984_v46, %v4571_v36 }
 0x35a   : > { %v1994_v30 = vsel %vm1993_vm12, %v5170_v28, %v1990_v62  ;;  %v2005_v59 = vadd.f32 %v5172_v53, %v2004_v34 }
 0x35b   : > { %v1999_v27 = vsel %vm1996_vm13, %v1998_v16, %v1994_v30 }
 0x35c   : > { %vm2047_vm2 = vcmp.gt.f32.partialorder %v1999_v27, %v4572_v38  ;;  %v2009_v42 = vsel %vm2008_vm1, %v5172_v53, %v2005_v59 }
 0x35d   : > { %vm4596_vm4 = vmpackc.low %vm2047_vm2, %vm2045_vm15  ;;  %v2014_v11 = vsel %vm2011_vm3, %v2013_v47, %v2009_v42 }
 0x35e   : > { %4597 = vmatmul.msk.bf16.gmra.mxu0 %vm4596_vm4, %v5680_v50  ;;  %vm2048_vm5 = vcmp.gt.f32.partialorder %v2014_v11, %v4573_v18 }
 0x35f   : > { %vm4604_vm7 = vmpackc.low %vm2048_vm5, %vm2046_vm6 }
 0x361   : > { %4605 = vmatmul.msk.bf16.gmra.mxu1 %vm4604_vm7, %v5680_v50 }
 0x3a7   : > { %v2098_v19 = vpop.f32.mrf.mxu0 }
 0x3a8   : > { %v2099_v10 = vadd.f32 %v7047_v21, %v2098_v19 }
 0x3ab   : > { %v2127_v44 = vpop.f32.mrf.mxu1 }
 0x3ac   : > { %v2128_v54 = vadd.f32 %v2127_v44, %v2099_v10 }
 0x3ae   : > { %v2147_v58 = vsub.f32 0.0, %v2128_v54 }
 0x3af   : > { %v2100_v28 = vpop.f32.mrf.mxu0 }
 0x3b0   : > { %v2155_v32 = vmul.f32 1.442695, %v2147_v58  ;;  %v2101_v35 = vadd.f32 %v7047_v21, %v2100_v28 }
 0x3b2   : > { %5173 = vpow2.f32 %v2155_v32 }
 0x3b3   : > { %v2129_v0 = vpop.f32.mrf.mxu1 }
 0x3b4   : > { %v2130_v14 = vadd.f32 %v2129_v0, %v2101_v35  ;;  %v4606_v35 = vld [vmem:[%s5891_s20 + $0x80] sm:$0xff] }
 0x3b6   : > { %v2148_v53 = vsub.f32 0.0, %v2130_v14  ;;  %v4607_v14 = vld [vmem:[%s5891_s20 + $0x88] sm:$0xff] }
 0x3b8   : > { %v5174_v25 = vpop.eup %5173  ;;  %v2157_v60 = vmul.f32 1.442695, %v2148_v53 }
 0x3b9   : > { %v2171_v7 = vadd.f32 1.0, %v5174_v25  ;;  %v2103_v2 = vpop.f32.mrf.mxu0 }
 0x3ba   : > { %5175 = vpow2.f32 %v2157_v60  ;;  %v2104_v22 = vadd.f32 %v7047_v21, %v2103_v2 }
 0x3bb   : > { %5177 = vrcp.f32 %v2171_v7  ;;  %v2190_v27 = vand.u32 2147483648, %v2171_v7  ;;  %vm2184_vm9 = vweird.f32 %v2171_v7  ;;  %v2188_v18 = vand.u32 2147483647, %v2171_v7 }
 0x3bd   : > { %v2132_v17 = vpop.f32.mrf.mxu1  ;;  %v2191_v19 = vor.u32 1.1754944e-38, %v2190_v27  ;;  %vm2189_vm12 = vcmp.eq.f32.partialorder %v2188_v18, 8.507059e+37 }
 0x3be   : > { %v2133_v8 = vadd.f32 %v2132_v17, %v2104_v22 }
 0x3c0   : > { %v5176_v5 = vpop.eup %5175  ;;  %v2149_v56 = vsub.f32 0.0, %v2133_v8 }
 0x3c1   : > { %v5178_v37 = vpop.eup %5177  ;;  %v2172_v4 = vadd.f32 1.0, %v5176_v5  ;;  %v2105_v13 = vpop.f32.mrf.mxu0 }
 0x3c2   : > { %v2180_v24 = vmul.f32 %v5178_v37, %v2171_v7  ;;  %v2159_v39 = vmul.f32 1.442695, %v2149_v56  ;;  %v2106_v1 = vadd.f32 %v7047_v21, %v2105_v13  ;;  %vm2185_vm8 = vweird.f32 %v5178_v37 }
 0x3c3   : > { %5179 = vrcp.f32 %v2172_v4  ;;  %vm2186_vm10 = vmor %vm2184_vm9, %vm2185_vm8  ;;  %v2205_v11 = vand.u32 2147483648, %v2172_v4  ;;  %v2203_v44 = vand.u32 2147483647, %v2172_v4  ;;  %vm2199_vm13 = vweird.f32 %v2172_v4 }
 0x3c4   : > { %v2181_v62 = vsub.f32 1.0, %v2180_v24  ;;  %5181 = vpow2.f32 %v2159_v39 }
 0x3c5   : > { %v2134_v52 = vpop.f32.mrf.mxu1  ;;  %v2206_v0 = vor.u32 1.1754944e-38, %v2205_v11  ;;  %vm2204_vm15 = vcmp.eq.f32.partialorder %v2203_v44, 8.507059e+37 }
 0x3c6   : > { %v2135_v48 = vadd.f32 %v2134_v52, %v2106_v1  ;;  %v2182_v34 = vmul.f32 %v5178_v37, %v2181_v62 }
 0x3c8   : > { %v2150_v26 = vsub.f32 0.0, %v2135_v48  ;;  %v2183_v38 = vadd.f32 %v5178_v37, %v2182_v34 }
 0x3c9   : > { %v5180_v16 = vpop.eup %5179 }
 0x3ca   : > { %v5182_v31 = vpop.eup %5181  ;;  %v2195_v30 = vmul.f32 %v5180_v16, %v2172_v4  ;;  %v2161_v9 = vmul.f32 1.442695, %v2150_v26  ;;  %v2187_v36 = vsel %vm2186_vm10, %v5178_v37, %v2183_v38  ;;  %vm2200_vm11 = vweird.f32 %v5180_v16 }
 0x3cb   : > { %v2108_v59 = vpop.f32.mrf.mxu0  ;;  %v7053_v47 = vadd.f32 1.0, %v5182_v31  ;;  %v2192_v28 = vsel %vm2189_vm12, %v2191_v19, %v2187_v36  ;;  %vm2201_vm14 = vmor %vm2199_vm13, %vm2200_vm11 }
 0x3cc   : > { %v2196_v46 = vsub.f32 1.0, %v2195_v30  ;;  %5183 = vpow2.f32 %v2161_v9  ;;  %v2109_v42 = vadd.f32 %v7047_v21, %v2108_v59  ;;  %vm2308_vm0 = vcmp.gt.f32.partialorder %v2192_v28, %v4606_v35 }
 0x3cd   : > { %5185 = vrcp.f32 %v7053_v47  ;;  %vm2214_vm4 = vweird.f32 %v7053_v47  ;;  %v2218_v38 = vand.u32 2147483647, %v7053_v47 }
 0x3ce   : > { %v2197_v10 = vmul.f32 %v5180_v16, %v2196_v46  ;;  %v2137_v54 = vpop.f32.mrf.mxu1 }
 0x3cf   : > { %v2138_v58 = vadd.f32 %v2137_v54, %v2109_v42  ;;  %vm2219_vm7 = vcmp.eq.f32.partialorder %v2218_v38, 8.507059e+37 }
 0x3d0   : > { %v2198_v32 = vadd.f32 %v5180_v16, %v2197_v10  ;;  %v4609_v10 = vld [vmem:[%s5891_s20 + $0x98] sm:$0xff] }
 0x3d1   : > { %v2151_v25 = vsub.f32 0.0, %v2138_v58 }
 0x3d2   : > { %v5184_v53 = vpop.eup %5183  ;;  %v2202_v7 = vsel %vm2201_vm14, %v5180_v16, %v2198_v32 }
 0x3d3   : > { %v2110_v60 = vpop.f32.mrf.mxu0  ;;  %v5186_v2 = vpop.eup %5185  ;;  %v7059_v22 = vadd.f32 1.0, %v5184_v53  ;;  %v2207_v17 = vsel %vm2204_vm15, %v2206_v0, %v2202_v7  ;;  %v2163_v8 = vmul.f32 1.442695, %v2151_v25 }
 0x3d4   : > { %v2111_v5 = vadd.f32 %v7047_v21, %v2110_v60  ;;  %vm2309_vm1 = vcmp.gt.f32.partialorder %v2207_v17, %v4607_v14  ;;  %v2210_v56 = vmul.f32 %v5186_v2, %v7053_v47  ;;  %vm2215_vm3 = vweird.f32 %v5186_v2 }
 0x3d5   : > { %5187 = vrcp.f32 %v7059_v22  ;;  %vm4622_vm2 = vmpackc.low %vm2309_vm1, %vm2308_vm0  ;;  %v2233_v30 = vand.u32 2147483647, %v7059_v22  ;;  %v2235_v9 = vand.u32 2147483648, %v7059_v22  ;;  %vm2229_vm8 = vweird.f32 %v7059_v22 }
 0x3d6   : > { %5189 = vpow2.f32 %v2163_v8  ;;  %4623 = vmatmul.msk.bf16.vlgmr.msra.gmra.mxu2 %vm4622_vm2, %v5680_v50  ;;  %4631 = vmatmul.msk.bf16.vlgmr.msra.gmra.mxu3 %vm4622_vm2, %v5680_v50  ;;  %v2211_v37 = vsub.f32 1.0, %v2210_v56  ;;  %v2139_v4 = vpop.f32.mrf.mxu1  ;;  %vm7079_vm5 = vmor %vm2214_vm4, %vm2215_vm3 }
 0x3d7   : > { %3700 = vmatpush.bf16.msra.mxu2 %v5993_v43  ;;  %3729 = vmatpush.bf16.msra.mxu3 %v5995_v45  ;;  %v2140_v13 = vadd.f32 %v2139_v4, %v2111_v5  ;;  %v2220_v45 = vand.u32 2147483648, %v7053_v47  ;;  %v2236_v19 = vor.u32 1.1754944e-38, %v2235_v9  ;;  %vm2234_vm10 = vcmp.eq.f32.partialorder %v2233_v30, 8.507059e+37 }
 0x3d8   : > { %v2212_v24 = vmul.f32 %v5186_v2, %v2211_v37 }
 0x3d9   : > { %v2152_v39 = vsub.f32 0.0, %v2140_v13  ;;  %v2221_v18 = vor.u32 1.1754944e-38, %v2220_v45 }
 0x3da   : > { %v2213_v26 = vadd.f32 %v5186_v2, %v2212_v24 }
 0x3db   : > { %v2113_v1 = vpop.f32.mrf.mxu0  ;;  %v5188_v62 = vpop.eup %5187  ;;  %3701 = vmatpush.bf16.msra.mxu2 %v5999_v49  ;;  %3730 = vmatpush.bf16.msra.mxu3 %v6001_v51  ;;  %v2165_v48 = vmul.f32 1.442695, %v2152_v39 }
 0x3dc   : > { %v5190_v52 = vpop.eup %5189  ;;  %v2114_v34 = vadd.f32 %v7047_v21, %v2113_v1  ;;  %v2225_v16 = vmul.f32 %v5188_v62, %v7059_v22  ;;  %v2217_v27 = vsel %vm7079_vm5, %v5186_v2, %v2213_v26  ;;  %vm2230_vm6 = vweird.f32 %v5188_v62 }
 0x3dd   : > { %v7072_v43 = vadd.f32 1.0, %v5190_v52  ;;  %5191 = vpow2.f32 %v2165_v48  ;;  %v2222_v11 = vsel %vm2219_vm7, %v2221_v18, %v2217_v27  ;;  %vm2231_vm9 = vmor %vm2229_vm8, %vm2230_vm6  ;;  %v4611_v52 = vld [vmem:[%s5891_s20 + $0xa8] sm:$0xff] }
 0x3de   : > { %v2226_v31 = vsub.f32 1.0, %v2225_v16  ;;  %v2142_v49 = vpop.f32.mrf.mxu1 }
 0x3df   : > { %5193 = vrcp.f32 %v7072_v43  ;;  %3702 = vmatpush.bf16.msra.mxu2 %v6005_v55  ;;  %3731 = vmatpush.bf16.msra.mxu3 %v6007_v57  ;;  %v2143_v59 = vadd.f32 %v2142_v49, %v2114_v34  ;;  %v4608_v55 = vld [vmem:[%s5891_s20 + $0x90] sm:$0xff]  ;;  %v2250_v22 = vand.u32 2147483648, %v7072_v43  ;;  %vm2244_vm15 = vweird.f32 %v7072_v43 }
 0x3e0   : > { %v2227_v47 = vmul.f32 %v5188_v62, %v2226_v31  ;;  %vm2310_vm11 = vcmp.gt.f32.partialorder %v2222_v11, %v4608_v55 }
 0x3e1   : > { %v2153_v46 = vsub.f32 0.0, %v2143_v59  ;;  %v2251_v37 = vor.u32 1.1754944e-38, %v2250_v22 }
 0x3e2   : > { %v2228_v36 = vadd.f32 %v5188_v62, %v2227_v47 }
 0x3e3   : > { %v2115_v42 = vpop.f32.mrf.mxu0  ;;  %3703 = vmatpush.bf16.msra.mxu2 %v6011_v61  ;;  %3732 = vmatpush.bf16.msra.mxu3 %v6013_v63  ;;  %v5192_v57 = vpop.eup %5191  ;;  %v2167_v44 = vmul.f32 1.442695, %v2153_v46 }
 0x3e4   : > { %v2116_v54 = vadd.f32 %v7047_v21, %v2115_v42  ;;  %v2232_v58 = vsel %vm2231_vm9, %v5188_v62, %v2228_v36  ;;  %v2176_v32 = vadd.f32 1.0, %v5192_v57  ;;  %v4610_v62 = vld [vmem:[%s5891_s20 + $0xa0] sm:$0xff]  ;;  %v4612_v42 = vld [vmem:[%s5891_s20 + $0xb0] sm:$0xff]  ;;  %v4613_v36 = vld [vmem:[%s5891_s20 + $0xb8] sm:$0xff] }
 0x3e5   : > { %v5194_v28 = vpop.eup %5193  ;;  %v2237_v35 = vsel %vm2234_vm10, %v2236_v19, %v2232_v58  ;;  %5195 = vpow2.f32 %v2167_v44 }
 0x3e6   : > { %vm2311_vm12 = vcmp.gt.f32.partialorder %v2237_v35, %v4609_v10  ;;  %v2240_v0 = vmul.f32 %v5194_v28, %v7072_v43  ;;  %5197 = vrcp.f32 %v2176_v32  ;;  %v2144_v14 = vpop.f32.mrf.mxu1  ;;  %vm2245_vm14 = vweird.f32 %v5194_v28 }
 0x3e7   : > { %vm4624_vm13 = vmpackc.low %vm2311_vm12, %vm2310_vm11  ;;  %3704 = vmatpush.bf16.msra.mxu2 %v6017_v3  ;;  %3733 = vmatpush.bf16.msra.mxu3 %v6024_v6  ;;  %v2145_v61 = vadd.f32 %v2144_v14, %v2116_v54  ;;  %v2265_v8 = vand.u32 2147483648, %v2176_v32  ;;  %vm2259_vm3 = vweird.f32 %v2176_v32 }
 0x3e8   : > { %4625 = vmatmul.msk.bf16.gmra.mxu2 %vm4624_vm13, %v5680_v50  ;;  %4633 = vmatmul.msk.bf16.gmra.mxu3 %vm4624_vm13, %v5680_v50  ;;  %v2241_v63 = vsub.f32 1.0, %v2240_v0  ;;  %vm7107_vm0 = vmor %vm2244_vm15, %vm2245_vm14 }
 0x3e9   : > { %v2154_v21 = vsub.f32 0.0, %v2145_v61  ;;  %v2266_v1 = vor.u32 1.1754944e-38, %v2265_v8 }
 0x3ea   : > { %v2242_v53 = vmul.f32 %v5194_v28, %v2241_v63 }
 0x3eb   : > { %3705 = vmatpush.bf16.msra.mxu2 %v6028_v12  ;;  %3734 = vmatpush.bf16.msra.mxu3 %v6031_v15  ;;  %v5196_v25 = vpop.eup %5195  ;;  %v2169_v60 = vmul.f32 1.442695, %v2154_v21  ;;  %v2248_v12 = vand.u32 2147483647, %v7072_v43 }
 0x3ec   : > { %v5198_v7 = vpop.eup %5197  ;;  %v2177_v2 = vadd.f32 1.0, %v5196_v25  ;;  %v2243_v3 = vadd.f32 %v5194_v28, %v2242_v53 }
 0x3ed   : > { %5199 = vpow2.f32 %v2169_v60  ;;  %v2255_v6 = vmul.f32 %v5198_v7, %v2176_v32  ;;  %vm2260_vm1 = vweird.f32 %v5198_v7  ;;  %vm2249_vm2 = vcmp.eq.f32.partialorder %v2248_v12, 8.507059e+37 }
 0x3ee   : > { %5201 = vrcp.f32 %v2177_v2  ;;  %v2247_v5 = vsel %vm7107_vm0, %v5194_v28, %v2243_v3  ;;  %vm2261_vm4 = vmor %vm2259_vm3, %vm2260_vm1  ;;  %v2280_v38 = vand.u32 2147483648, %v2177_v2  ;;  %vm2274_vm10 = vweird.f32 %v2177_v2 }
 0x3ef   : > { %3706 = vmatpush.bf16.msra.mxu2 %v6035_v20  ;;  %3735 = vmatpush.bf16.msra.mxu3 %v6037_v23  ;;  %v2256_v15 = vsub.f32 1.0, %v2255_v6  ;;  %v2263_v20 = vand.u32 2147483647, %v2176_v32  ;;  %v2252_v39 = vsel %vm2249_vm2, %v2251_v37, %v2247_v5  ;;  %v2278_v31 = vand.u32 2147483647, %v2177_v2 }
 0x3f0   : > { %vm2312_vm6 = vcmp.gt.f32.partialorder %v2252_v39, %v4610_v62  ;;  %v2281_v27 = vor.u32 1.1754944e-38, %v2280_v38 }
 0x3f1   : > { %v2257_v56 = vmul.f32 %v5198_v7, %v2256_v15  ;;  %vm2264_vm5 = vcmp.eq.f32.partialorder %v2263_v20, 8.507059e+37  ;;  %vm2279_vm13 = vcmp.eq.f32.partialorder %v2278_v31, 8.507059e+37 }
 0x3f3   : > { %3707 = vmatpush.bf16.msra.mxu2 %v6041_v29  ;;  %3736 = vmatpush.bf16.msra.mxu3 %v6044_v33  ;;  %v5200_v23 = vpop.eup %5199  ;;  %v2258_v4 = vadd.f32 %v5198_v7, %v2257_v56 }
 0x3f4   : > { %v5202_v13 = vpop.eup %5201  ;;  %v2178_v24 = vadd.f32 1.0, %v5200_v23 }
 0x3f5   : > { %v2262_v48 = vsel %vm2261_vm4, %v5198_v7, %v2258_v4  ;;  %v2270_v34 = vmul.f32 %v5202_v13, %v2177_v2  ;;  %vm2275_vm9 = vweird.f32 %v5202_v13 }
 0x3f6   : > { %5203 = vrcp.f32 %v2178_v24  ;;  %v2267_v26 = vsel %vm2264_vm5, %v2266_v1, %v2262_v48  ;;  %vm2276_vm11 = vmor %vm2274_vm10, %vm2275_vm9  ;;  %v2295_v51 = vand.u32 2147483648, %v2178_v24  ;;  %v2293_v59 = vand.u32 2147483647, %v2178_v24 }
 0x3f7   : > { %vm2313_vm7 = vcmp.gt.f32.partialorder %v2267_v26, %v4611_v52  ;;  %v2271_v29 = vsub.f32 1.0, %v2270_v34  ;;  %vm2289_vm14 = vweird.f32 %v2178_v24 }
 0x3f8   : > { %vm4626_vm8 = vmpackc.low %vm2313_vm7, %vm2312_vm6  ;;  %v2296_v46 = vor.u32 1.1754944e-38, %v2295_v51  ;;  %vm2294_vm0 = vcmp.eq.f32.partialorder %v2293_v59, 8.507059e+37 }
 0x3f9   : > { %4627 = vmatmul.msk.bf16.gmra.mxu2 %vm4626_vm8, %v5680_v50  ;;  %4635 = vmatmul.msk.bf16.gmra.mxu3 %vm4626_vm8, %v5680_v50  ;;  %v2272_v33 = vmul.f32 %v5202_v13, %v2271_v29 }
 0x3fb   : > { %v2273_v43 = vadd.f32 %v5202_v13, %v2272_v33 }
 0x3fc   : > { %v5204_v16 = vpop.eup %5203 }
 0x3fd   : > { %v2285_v45 = vmul.f32 %v5204_v16, %v2178_v24  ;;  %v2277_v30 = vsel %vm2276_vm11, %v5202_v13, %v2273_v43  ;;  %vm2290_vm12 = vweird.f32 %v5204_v16 }
 0x3fe   : > { %v2282_v18 = vsel %vm2279_vm13, %v2281_v27, %v2277_v30  ;;  %vm2291_vm15 = vmor %vm2289_vm14, %vm2290_vm12 }
 0x3ff   : > { %v2286_v49 = vsub.f32 1.0, %v2285_v45  ;;  %vm2314_vm1 = vcmp.gt.f32.partialorder %v2282_v18, %v4612_v42 }
 0x401   : > { %v2287_v9 = vmul.f32 %v5204_v16, %v2286_v49 }
 0x403   : > { %v2288_v47 = vadd.f32 %v5204_v16, %v2287_v9 }
 0x405   : > { %v2292_v11 = vsel %vm2291_vm15, %v5204_v16, %v2288_v47 }
 0x406   : > { %v2297_v19 = vsel %vm2294_vm0, %v2296_v46, %v2292_v11 }
 0x407   : > { %vm2315_vm2 = vcmp.gt.f32.partialorder %v2297_v19, %v4613_v36 }
 0x408   : > { %vm4628_vm3 = vmpackc.low %vm2315_vm2, %vm2314_vm1 }
 0x409   : > { %4629 = vmatmul.msk.bf16.gmra.mxu2 %vm4628_vm3, %v5680_v50  ;;  %4637 = vmatmul.msk.bf16.gmra.mxu3 %vm4628_vm3, %v5680_v50 }
 0x459   : > { %v2345_v55 = vpop.f32.mrf.mxu2  ;;  %v2374_v10 = vpop.f32.mrf.mxu3 }
 0x45a   : > { %v2346_v57 = vadd.f32 %v2345_v55, %v6158_v40  ;;  %v2375_v44 = vadd.f32 %v2374_v10, %v6160_v41 }
 0x45c   : > { %v2394_v54 = vsub.f32 0.0, %v2346_v57  ;;  %v2395_v58 = vsub.f32 0.0, %v2375_v44 }
 0x45e   : > { %v2410_v28 = vmul.f32 1.442695, %v2394_v54  ;;  %v2412_v32 = vmul.f32 1.442695, %v2395_v58 }
 0x460   : > { %5205 = vpow2.f32 %v2410_v28 }
 0x461   : > { %5207 = vpow2.f32 %v2412_v32  ;;  %v2347_v35 = vpop.f32.mrf.mxu2  ;;  %v2376_v0 = vpop.f32.mrf.mxu3 }
 0x462   : > { %v2348_v14 = vadd.f32 %v2347_v35, %v6158_v40  ;;  %v2377_v61 = vadd.f32 %v2376_v0, %v6160_v41 }
 0x464   : > { %v2396_v63 = vsub.f32 0.0, %v2348_v14  ;;  %v2397_v21 = vsub.f32 0.0, %v2377_v61 }
 0x466   : > { %v5206_v53 = vpop.eup %5205  ;;  %v2414_v25 = vmul.f32 1.442695, %v2396_v63  ;;  %v2416_v2 = vmul.f32 1.442695, %v2397_v21 }
 0x467   : > { %v5208_v60 = vpop.eup %5207  ;;  %v2442_v7 = vadd.f32 1.0, %v5206_v53 }
 0x468   : > { %v2443_v3 = vadd.f32 1.0, %v5208_v60  ;;  %5209 = vpow2.f32 %v2414_v25  ;;  %v4638_v60 = vld [vmem:[%s6250_s18 + $0x100] sm:$0xff] }
 0x469   : > { %5211 = vrcp.f32 %v2442_v7  ;;  %vm2463_vm4 = vweird.f32 %v2442_v7  ;;  %v2467_v37 = vand.u32 2147483647, %v2442_v7  ;;  %v2469_v39 = vand.u32 2147483648, %v2442_v7 }
 0x46a   : > { %5213 = vrcp.f32 %v2443_v3  ;;  %vm2478_vm5 = vweird.f32 %v2443_v3  ;;  %v2482_v52 = vand.u32 2147483647, %v2443_v3  ;;  %v2484_v26 = vand.u32 2147483648, %v2443_v3 }
 0x46b   : > { %5215 = vpow2.f32 %v2416_v2  ;;  %v2350_v6 = vpop.f32.mrf.mxu2  ;;  %v2379_v22 = vpop.f32.mrf.mxu3  ;;  %vm7142_vm7 = vcmp.eq.f32.partialorder %v2467_v37, 8.507059e+37  ;;  %v2470_v30 = vor.u32 1.1754944e-38, %v2469_v39 }
 0x46c   : > { %v2351_v12 = vadd.f32 %v2350_v6, %v6158_v40  ;;  %v2380_v15 = vadd.f32 %v2379_v22, %v6160_v41  ;;  %vm7156_vm11 = vcmp.eq.f32.partialorder %v2482_v52, 8.507059e+37  ;;  %v2485_v11 = vor.u32 1.1754944e-38, %v2484_v26  ;;  %v4639_v6 = vld [vmem:[%s6250_s18 + $0x108] sm:$0xff] }
 0x46e   : > { %v5210_v17 = vpop.eup %5209  ;;  %v2398_v8 = vsub.f32 0.0, %v2351_v12  ;;  %v2399_v5 = vsub.f32 0.0, %v2380_v15 }
 0x46f   : > { %v5212_v56 = vpop.eup %5211  ;;  %v7129_v20 = vadd.f32 1.0, %v5210_v17 }
 0x470   : > { %v7131_v23 = vpop.eup %5213  ;;  %v2459_v4 = vmul.f32 %v5212_v56, %v2442_v7  ;;  %v2418_v13 = vmul.f32 1.442695, %v2398_v8  ;;  %v2420_v24 = vmul.f32 1.442695, %v2399_v5  ;;  %vm2464_vm6 = vweird.f32 %v5212_v56 }
 0x471   : > { %v5216_v1 = vpop.eup %5215  ;;  %v2474_v62 = vmul.f32 %v7131_v23, %v2443_v3  ;;  %5217 = vrcp.f32 %v7129_v20  ;;  %v2497_v43 = vand.u32 2147483647, %v7129_v20  ;;  %vm2479_vm8 = vweird.f32 %v7131_v23  ;;  %vm7150_vm9 = vmor %vm2463_vm4, %vm2464_vm6 }
 0x472   : > { %v2460_v48 = vsub.f32 1.0, %v2459_v4  ;;  %v7135_v34 = vadd.f32 1.0, %v5216_v1  ;;  %5219 = vpow2.f32 %v2418_v13  ;;  %v2499_v47 = vand.u32 2147483648, %v7129_v20  ;;  %vm7170_vm13 = vmor %vm2478_vm5, %vm2479_vm8 }
 0x473   : > { %v2475_v29 = vsub.f32 1.0, %v2474_v62  ;;  %5221 = vpow2.f32 %v2420_v24  ;;  %v2352_v33 = vpop.f32.mrf.mxu2  ;;  %v2381_v16 = vpop.f32.mrf.mxu3  ;;  %vm2493_vm10 = vweird.f32 %v7129_v20  ;;  %vm7163_vm12 = vcmp.eq.f32.partialorder %v2497_v43, 8.507059e+37 }
 0x474   : > { %v2461_v45 = vmul.f32 %v5212_v56, %v2460_v48  ;;  %5223 = vrcp.f32 %v7135_v34  ;;  %v2353_v38 = vadd.f32 %v2352_v33, %v6158_v40  ;;  %v2382_v31 = vadd.f32 %v2381_v16, %v6160_v41 }
 0x475   : > { %v2476_v49 = vmul.f32 %v7131_v23, %v2475_v29  ;;  %v2512_v0 = vand.u32 2147483647, %v7135_v34  ;;  %v2500_v21 = vor.u32 1.1754944e-38, %v2499_v47  ;;  %v2514_v7 = vand.u32 2147483648, %v7135_v34 }
 0x476   : > { %v2400_v9 = vsub.f32 0.0, %v2353_v38  ;;  %v2401_v59 = vsub.f32 0.0, %v2382_v31  ;;  %v2462_v27 = vadd.f32 %v5212_v56, %v2461_v45  ;;  %vm2508_vm15 = vweird.f32 %v7135_v34  ;;  %v4641_v38 = vld [vmem:[%s6250_s18 + $0x118] sm:$0xff] }
 0x477   : > { %v5218_v18 = vpop.eup %5217  ;;  %v2477_v42 = vadd.f32 %v7131_v23, %v2476_v49  ;;  %vm7193_vm0 = vcmp.eq.f32.partialorder %v2512_v0, 8.507059e+37  ;;  %v2515_v4 = vor.u32 1.1754944e-38, %v2514_v7 }
 0x478   : > { %v5220_v19 = vpop.eup %5219  ;;  %v2489_v55 = vmul.f32 %v5218_v18, %v7129_v20  ;;  %v2422_v10 = vmul.f32 1.442695, %v2400_v9  ;;  %v2466_v57 = vsel %vm7150_vm9, %v5212_v56, %v2462_v27  ;;  %v2424_v32 = vmul.f32 1.442695, %v2401_v59 }
 0x479   : > { %v5222_v58 = vpop.eup %5221  ;;  %v7174_v28 = vadd.f32 1.0, %v5220_v19  ;;  %v2481_v35 = vsel %vm7170_vm13, %v7131_v23, %v2477_v42  ;;  %v2471_v25 = vsel %vm7142_vm7, %v2470_v30, %v2466_v57  ;;  %vm2494_vm14 = vweird.f32 %v5218_v18  ;;  %v4640_v23 = vld [vmem:[%s6250_s18 + $0x110] sm:$0xff] }
 0x47a   : > { %v5224_v14 = vpop.eup %5223  ;;  %v2490_v61 = vsub.f32 1.0, %v2489_v55  ;;  %v7180_v63 = vadd.f32 1.0, %v5222_v58  ;;  %5225 = vpow2.f32 %v2422_v10  ;;  %v2486_v3 = vsel %vm7156_vm11, %v2485_v11, %v2481_v35  ;;  %vm2495_vm2 = vmor %vm2493_vm10, %vm2494_vm14 }
 0x47b   : > { %v2504_v53 = vmul.f32 %v5224_v14, %v7135_v34  ;;  %5227 = vrcp.f32 %v7174_v28  ;;  %vm2715_vm1 = vcmp.gt.f32.partialorder %v2471_v25, %v4638_v60  ;;  %vm2509_vm3 = vweird.f32 %v5224_v14 }
 0x47c   : > { %v2491_v2 = vmul.f32 %v5218_v18, %v2490_v61  ;;  %5229 = vrcp.f32 %v7180_v63  ;;  %v2355_v12 = vpop.f32.mrf.mxu2  ;;  %v2384_v15 = vpop.f32.mrf.mxu3  ;;  %vm2716_vm4 = vcmp.gt.f32.partialorder %v2486_v3, %v4639_v6  ;;  %vm2523_vm5 = vweird.f32 %v7174_v28  ;;  %vm2510_vm7 = vmor %vm2508_vm15, %vm2509_vm3 }
 0x47d   : > { %v2505_v22 = vsub.f32 1.0, %v2504_v53  ;;  %5231 = vpow2.f32 %v2424_v32  ;;  %v2356_v8 = vadd.f32 %v2355_v12, %v6158_v40  ;;  %v2385_v5 = vadd.f32 %v2384_v15, %v6160_v41 }
 0x47e   : > { %v2492_v56 = vadd.f32 %v5218_v18, %v2491_v2  ;;  %v2527_v62 = vand.u32 2147483647, %v7174_v28  ;;  %v2529_v29 = vand.u32 2147483648, %v7174_v28  ;;  %v2542_v30 = vand.u32 2147483647, %v7180_v63 }
 0x47f   : > { %v2506_v37 = vmul.f32 %v5224_v14, %v2505_v22  ;;  %v2402_v24 = vsub.f32 0.0, %v2356_v8  ;;  %v2403_v39 = vsub.f32 0.0, %v2385_v5  ;;  %vm2538_vm13 = vweird.f32 %v7180_v63 }
 0x480   : > { %v5226_v13 = vpop.eup %5225  ;;  %v2496_v1 = vsel %vm2495_vm2, %v5218_v18, %v2492_v56  ;;  %v2530_v54 = vor.u32 1.1754944e-38, %v2529_v29  ;;  %v2544_v25 = vand.u32 2147483648, %v7180_v63 }
 0x481   : > { %v7204_v52 = vpop.eup %5227  ;;  %v7206_v48 = vadd.f32 1.0, %v5226_v13  ;;  %v2501_v20 = vsel %vm7163_vm12, %v2500_v21, %v2496_v1  ;;  %v2507_v26 = vadd.f32 %v5224_v14, %v2506_v37  ;;  %v2426_v43 = vmul.f32 1.442695, %v2402_v24  ;;  %v4642_v13 = vld [vmem:[%s6250_s18 + $0x120] sm:$0xff] }
 0x482   : > { %v7211_v33 = vpop.eup %5229  ;;  %v2519_v16 = vmul.f32 %v7204_v52, %v7174_v28  ;;  %v2428_v45 = vmul.f32 1.442695, %v2403_v39  ;;  %vm2717_vm6 = vcmp.gt.f32.partialorder %v2501_v20, %v4640_v23  ;;  %vm2524_vm10 = vweird.f32 %v7204_v52 }
 0x483   : > { %v5232_v31 = vpop.eup %5231  ;;  %v2534_v49 = vmul.f32 %v7211_v33, %v7180_v63  ;;  %5233 = vrcp.f32 %v7206_v48  ;;  %vm4670_vm8 = vmpackc.low %vm2717_vm6, %vm2715_vm1  ;;  %v2511_v51 = vsel %vm2510_vm7, %v5224_v14, %v2507_v26  ;;  %v2557_v18 = vand.u32 2147483647, %v7206_v48  ;;  %v4644_v63 = vld [vmem:[%s6250_s18 + $0x130] sm:$0xff] }
 0x484   : > { %v7224_v9 = vadd.f32 1.0, %v5232_v31  ;;  %5235 = vpow2.f32 %v2426_v43  ;;  %4671 = vmatmul.msk.bf16.vlgmr.msrb.gmra.mxu0 %vm4670_vm8, %v5680_v50  ;;  %v2516_v34 = vsel %vm7193_vm0, %v2515_v4, %v2511_v51  ;;  %v2520_v59 = vsub.f32 1.0, %v2519_v16  ;;  %v2357_v27 = vpop.f32.mrf.mxu2  ;;  %v2386_v47 = vpop.f32.mrf.mxu3  ;;  %vm7248_vm14 = vmor %vm2523_vm5, %vm2524_vm10 }
 0x485   : > { %5237 = vpow2.f32 %v2428_v45  ;;  %vm2718_vm9 = vcmp.gt.f32.partialorder %v2516_v34, %v4641_v38  ;;  %v2358_v46 = vadd.f32 %v2357_v27, %v6158_v40  ;;  %v2387_v42 = vadd.f32 %v2386_v47, %v6160_v41 }
 0x486   : > { %5239 = vrcp.f32 %v7224_v9  ;;  %vm4678_vm11 = vmpackc.low %vm2718_vm9, %vm2716_vm4  ;;  %v2521_v36 = vmul.f32 %v7204_v52, %v2520_v59  ;;  %vm7237_vm12 = vcmp.eq.f32.partialorder %v2527_v62, 8.507059e+37  ;;  %v2559_v19 = vand.u32 2147483648, %v7206_v48 }
 0x487   : > { %4679 = vmatmul.msk.bf16.vlgmr.msrb.gmra.mxu1 %vm4678_vm11, %v5680_v50  ;;  %v2535_v55 = vsub.f32 1.0, %v2534_v49  ;;  %v2404_v10 = vsub.f32 0.0, %v2358_v46  ;;  %v2405_v57 = vsub.f32 0.0, %v2387_v42  ;;  %vm2553_vm15 = vweird.f32 %v7206_v48  ;;  %v4643_v46 = vld [vmem:[%s6250_s18 + $0x128] sm:$0xff] }
 0x488   : > { %v2522_v44 = vadd.f32 %v7204_v52, %v2521_v36  ;;  %vm2539_vm0 = vweird.f32 %v7211_v33  ;;  %vm7255_vm1 = vcmp.eq.f32.partialorder %v2542_v30, 8.507059e+37  ;;  %vm7263_vm2 = vcmp.eq.f32.partialorder %v2557_v18, 8.507059e+37 }
 0x489   : > { %v5234_v58 = vpop.eup %5233  ;;  %v2536_v35 = vmul.f32 %v7211_v33, %v2535_v55  ;;  %v2430_v21 = vmul.f32 1.442695, %v2404_v10  ;;  %v2432_v2 = vmul.f32 1.442695, %v2405_v57  ;;  %v2560_v3 = vor.u32 1.1754944e-38, %v2559_v19  ;;  %vm7289_vm5 = vmor %vm2538_vm13, %vm2539_vm0  ;;  %v4645_v57 = vld [vmem:[%s6250_s18 + $0x138] sm:$0xff] }
 0x48a   : > { %v5236_v14 = vpop.eup %5235  ;;  %v2549_v61 = vmul.f32 %v5234_v58, %v7206_v48  ;;  %v2526_v28 = vsel %vm7248_vm14, %v7204_v52, %v2522_v44  ;;  %vm2568_vm3 = vweird.f32 %v7224_v9  ;;  %vm2554_vm4 = vweird.f32 %v5234_v58 }
 0x48b   : > { %v5238_v60 = vpop.eup %5237  ;;  %v7268_v7 = vadd.f32 1.0, %v5236_v14  ;;  %v2537_v6 = vadd.f32 %v7211_v33, %v2536_v35  ;;  %5241 = vpow2.f32 %v2430_v21  ;;  %v2531_v56 = vsel %vm7237_vm12, %v2530_v54, %v2526_v28  ;;  %vm2555_vm6 = vmor %vm2553_vm15, %vm2554_vm4 }
 0x48c   : > { %v7271_v22 = vpop.eup %5239  ;;  %v7273_v12 = vadd.f32 1.0, %v5238_v60  ;;  %v2550_v15 = vsub.f32 1.0, %v2549_v61  ;;  %v2360_v8 = vpop.f32.mrf.mxu2  ;;  %v2572_v62 = vand.u32 2147483647, %v7224_v9  ;;  %v2545_v29 = vor.u32 1.1754944e-38, %v2544_v25 }
 0x48d   : > { %v2564_v17 = vmul.f32 %v7271_v22, %v7224_v9  ;;  %5243 = vrcp.f32 %v7268_v7  ;;  %v2389_v5 = vpop.f32.mrf.mxu3  ;;  %v2361_v37 = vadd.f32 %v2360_v8, %v6158_v40  ;;  %v2541_v39 = vsel %vm7289_vm5, %v7211_v33, %v2537_v6 }
 0x48e   : > { %5245 = vrcp.f32 %v7273_v12  ;;  %v2390_v23 = vadd.f32 %v2389_v5, %v6160_v41  ;;  %v2551_v4 = vmul.f32 %v5234_v58, %v2550_v15  ;;  %vm2719_vm7 = vcmp.gt.f32.partialorder %v2531_v56, %v4642_v13 }
 0x48f   : > { %5247 = vpow2.f32 %v2432_v2  ;;  %v2565_v1 = vsub.f32 1.0, %v2564_v17  ;;  %v2406_v52 = vsub.f32 0.0, %v2361_v37  ;;  %vm2569_vm8 = vweird.f32 %v7271_v22 }
 0x490   : > { %v2407_v20 = vsub.f32 0.0, %v2390_v23  ;;  %v2552_v26 = vadd.f32 %v5234_v58, %v2551_v4  ;;  %v2574_v43 = vand.u32 2147483648, %v7224_v9  ;;  %v2546_v49 = vsel %vm7255_vm1, %v2545_v29, %v2541_v39  ;;  %vm7325_vm11 = vmor %vm2568_vm3, %vm2569_vm8 }
 0x491   : > { %v2566_v16 = vmul.f32 %v7271_v22, %v2565_v1  ;;  %v5242_v33 = vpop.eup %5241  ;;  %v2434_v45 = vmul.f32 1.442695, %v2406_v52  ;;  %vm7313_vm9 = vcmp.eq.f32.partialorder %v2572_v62, 8.507059e+37  ;;  %v2587_v42 = vand.u32 2147483647, %v7268_v7 }
 0x492   : > { %v2436_v38 = vmul.f32 1.442695, %v2407_v20  ;;  %v2556_v31 = vsel %vm2555_vm6, %v5234_v58, %v2552_v26  ;;  %v7308_v48 = vadd.f32 1.0, %v5242_v33  ;;  %v2575_v10 = vor.u32 1.1754944e-38, %v2574_v43  ;;  %v4652_v26 = vld [vmem:[%s6250_s18 + $0x170] sm:$0xff] }
 0x493   : > { %v7306_v51 = vpop.eup %5243  ;;  %v2561_v30 = vsel %vm7263_vm2, %v2560_v3, %v2556_v31  ;;  %v2567_v34 = vadd.f32 %v7271_v22, %v2566_v16  ;;  %5249 = vpow2.f32 %v2434_v45  ;;  %vm2720_vm13 = vcmp.gt.f32.partialorder %v2546_v49, %v4643_v46 }
 0x494   : > { %v7317_v27 = vpop.eup %5245  ;;  %v2579_v47 = vmul.f32 %v7306_v51, %v7268_v7  ;;  %vm2721_vm10 = vcmp.gt.f32.partialorder %v2561_v30, %v4644_v63  ;;  %5251 = vrcp.f32 %v7308_v48  ;;  %v2362_v19 = vpop.f32.mrf.mxu2  ;;  %v2589_v0 = vand.u32 2147483648, %v7268_v7 }
 0x495   : > { %v5248_v36 = vpop.eup %5247  ;;  %v2594_v11 = vmul.f32 %v7317_v27, %v7273_v12  ;;  %v2391_v55 = vpop.f32.mrf.mxu3  ;;  %vm4672_vm12 = vmpackc.low %vm2721_vm10, %vm2719_vm7  ;;  %v2571_v9 = vsel %vm7325_vm11, %v7271_v22, %v2567_v34  ;;  %5253 = vpow2.f32 %v2436_v38  ;;  %v2363_v54 = vadd.f32 %v2362_v19, %v6158_v40 }
 0x496   : > { %v7339_v44 = vadd.f32 1.0, %v5248_v36  ;;  %v2392_v58 = vadd.f32 %v2391_v55, %v6160_v41  ;;  %4673 = vmatmul.msk.bf16.gmra.mxu0 %vm4672_vm12, %v5680_v50  ;;  %v2576_v32 = vsel %vm7313_vm9, %v2575_v10, %v2571_v9  ;;  %v2580_v35 = vsub.f32 1.0, %v2579_v47  ;;  %v4647_v9 = vld [vmem:[%s6250_s18 + $0x148] sm:$0xff]  ;;  %v4649_v10 = vld [vmem:[%s6250_s18 + $0x158] sm:$0xff] }
 0x497   : > { %v2408_v14 = vsub.f32 0.0, %v2363_v54  ;;  %vm2722_vm14 = vcmp.gt.f32.partialorder %v2576_v32, %v4645_v57  ;;  %vm2583_vm0 = vweird.f32 %v7268_v7  ;;  %vm2584_vm1 = vweird.f32 %v7306_v51  ;;  %v4646_v7 = vld [vmem:[%s6250_s18 + $0x140] sm:$0xff] }
 0x498   : > { %5255 = vrcp.f32 %v7339_v44  ;;  %v2409_v61 = vsub.f32 0.0, %v2392_v58  ;;  %vm4680_vm15 = vmpackc.low %vm2722_vm14, %vm2720_vm13  ;;  %v2581_v21 = vmul.f32 %v7306_v51, %v2580_v35  ;;  %vm7351_vm2 = vcmp.eq.f32.partialorder %v2587_v42, 8.507059e+37 }
 0x499   : > { %v5250_v53 = vpop.eup %5249  ;;  %v2438_v25 = vmul.f32 1.442695, %v2408_v14  ;;  %4681 = vmatmul.msk.bf16.gmra.mxu1 %vm4680_vm15, %v5680_v50  ;;  %vm2613_vm3 = vweird.f32 %v7308_v48  ;;  %v2595_v2 = vsub.f32 1.0, %v2594_v11  ;;  %v2590_v15 = vor.u32 1.1754944e-38, %v2589_v0  ;;  %vm2585_vm4 = vmor %vm2583_vm0, %vm2584_vm1 }
 0x49a   : > { %v2440_v60 = vmul.f32 1.442695, %v2409_v61  ;;  %v5252_v3 = vpop.eup %5251  ;;  %v7357_v6 = vadd.f32 1.0, %v5250_v53  ;;  %v2582_v22 = vadd.f32 %v7306_v51, %v2581_v21  ;;  %v2617_v17 = vand.u32 2147483647, %v7308_v48 }
 0x49b   : > { %v5254_v8 = vpop.eup %5253  ;;  %v2609_v5 = vmul.f32 %v5252_v3, %v7308_v48  ;;  %5257 = vpow2.f32 %v2438_v25  ;;  %v2619_v56 = vand.u32 2147483648, %v7308_v48  ;;  %v2596_v37 = vmul.f32 %v7317_v27, %v2595_v2 }
 0x49c   : > { %5259 = vrcp.f32 %v7357_v6  ;;  %v7369_v23 = vadd.f32 1.0, %v5254_v8  ;;  %v2586_v4 = vsel %vm2585_vm4, %v7306_v51, %v2582_v22  ;;  %vm2599_vm5 = vweird.f32 %v7317_v27 }
 0x49d   : > { %5261 = vpow2.f32 %v2440_v60  ;;  %v2591_v24 = vsel %vm7351_vm2, %v2590_v15, %v2586_v4  ;;  %v2610_v39 = vsub.f32 1.0, %v2609_v5  ;;  %v2597_v1 = vadd.f32 %v7317_v27, %v2596_v37 }
 0x49e   : > { %v5256_v13 = vpop.eup %5255  ;;  %5263 = vrcp.f32 %v7369_v23  ;;  %vm2598_vm6 = vweird.f32 %v7273_v12  ;;  %v2602_v52 = vand.u32 2147483647, %v7273_v12  ;;  %vm2614_vm7 = vweird.f32 %v5252_v3 }
 0x49f   : > { %v2624_v62 = vmul.f32 %v5256_v13, %v7339_v44  ;;  %v2611_v20 = vmul.f32 %v5252_v3, %v2610_v39  ;;  %vm7381_vm8 = vcmp.eq.f32.partialorder %v2617_v17, 8.507059e+37  ;;  %vm7385_vm9 = vmor %vm2598_vm6, %vm2599_vm5  ;;  %v2604_v63 = vand.u32 2147483648, %v7273_v12  ;;  %v4648_v12 = vld [vmem:[%s6250_s18 + $0x150] sm:$0xff] }
 0x4a0   : > { %v2620_v16 = vor.u32 1.1754944e-38, %v2619_v56  ;;  %vm2723_vm10 = vcmp.gt.f32.partialorder %v2591_v24, %v4646_v7  ;;  %v2601_v43 = vsel %vm7385_vm9, %v7317_v27, %v2597_v1  ;;  %vm2603_vm11 = vcmp.eq.f32.partialorder %v2602_v52, 8.507059e+37  ;;  %vm2615_vm12 = vmor %vm2613_vm3, %vm2614_vm7 }
 0x4a1   : > { %v2625_v33 = vsub.f32 1.0, %v2624_v62  ;;  %v5258_v45 = vpop.eup %5257  ;;  %v2612_v38 = vadd.f32 %v5252_v3, %v2611_v20  ;;  %v2605_v31 = vor.u32 1.1754944e-38, %v2604_v63  ;;  %v2634_v49 = vand.u32 2147483648, %v7339_v44  ;;  %v4650_v20 = vld [vmem:[%s6250_s18 + $0x160] sm:$0xff] }
 0x4a2   : > { %v7394_v51 = vpop.eup %5259  ;;  %v7396_v30 = vadd.f32 1.0, %v5258_v45  ;;  %vm2629_vm13 = vweird.f32 %v5256_v13  ;;  %v2632_v59 = vand.u32 2147483647, %v7339_v44  ;;  %vm2628_vm14 = vweird.f32 %v7339_v44 }
 0x4a3   : > { %v2626_v34 = vmul.f32 %v5256_v13, %v2625_v33  ;;  %v5262_v27 = vpop.eup %5261  ;;  %v2639_v47 = vmul.f32 %v7394_v51, %v7357_v6  ;;  %v2616_v18 = vsel %vm2615_vm12, %v5252_v3, %v2612_v38  ;;  %v2606_v46 = vsel %vm2603_vm11, %v2605_v31, %v2601_v43  ;;  %vm2630_vm0 = vmor %vm2628_vm14, %vm2629_vm13  ;;  %v4651_v38 = vld [vmem:[%s6250_s18 + $0x168] sm:$0xff]  ;;  %v4653_v31 = vld [vmem:[%s6250_s18 + $0x178] sm:$0xff] }
 0x4a4   : > { %v7406_v42 = vpop.eup %5263  ;;  %5265 = vrcp.f32 %v7396_v30  ;;  %v7409_v48 = vadd.f32 1.0, %v5262_v27  ;;  %v2621_v36 = vsel %vm7381_vm8, %v2620_v16, %v2616_v18  ;;  %v2635_v55 = vor.u32 1.1754944e-38, %v2634_v49 }
 0x4a5   : > { %v2627_v11 = vadd.f32 %v5256_v13, %v2626_v34  ;;  %v2654_v19 = vmul.f32 %v7406_v42, %v7369_v23  ;;  %vm2725_vm15 = vcmp.gt.f32.partialorder %v2621_v36, %v4648_v12  ;;  %v2640_v57 = vsub.f32 1.0, %v2639_v47  ;;  %v7471_v12 = vld [vmem:[%s8129_s4] ss:$0 sm:$0xff] }
 0x4a6   : > { %5267 = vrcp.f32 %v7409_v48  ;;  %vm4674_vm1 = vmpackc.low %vm2725_vm15, %vm2723_vm10  ;;  %vm2633_vm2 = vcmp.eq.f32.partialorder %v2632_v59, 8.507059e+37  ;;  %vm2724_vm3 = vcmp.gt.f32.partialorder %v2606_v46, %v4647_v9  ;;  %v2647_v35 = vand.u32 2147483647, %v7357_v6 }
 0x4a7   : > { %v2631_v44 = vsel %vm2630_vm0, %v5256_v13, %v2627_v11  ;;  %4675 = vmatmul.msk.bf16.gmra.mxu0 %vm4674_vm1, %v5680_v50  ;;  %v2641_v58 = vmul.f32 %v7394_v51, %v2640_v57  ;;  %v2655_v32 = vsub.f32 1.0, %v2654_v19  ;;  %vm2644_vm6 = vweird.f32 %v7394_v51 }
 0x4a8   : > { %v2636_v54 = vsel %vm2633_vm2, %v2635_v55, %v2631_v44  ;;  %vm2643_vm7 = vweird.f32 %v7357_v6  ;;  %v2649_v53 = vand.u32 2147483648, %v7357_v6  ;;  %vm2659_vm8 = vweird.f32 %v7406_v42 }
 0x4a9   : > { %vm2726_vm4 = vcmp.gt.f32.partialorder %v2636_v54, %v4649_v10  ;;  %v2656_v14 = vmul.f32 %v7406_v42, %v2655_v32  ;;  %v2642_v21 = vadd.f32 %v7394_v51, %v2641_v58  ;;  %vm7432_vm9 = vcmp.eq.f32.partialorder %v2647_v35, 8.507059e+37  ;;  %vm7437_vm10 = vmor %vm2643_vm7, %vm2644_vm6 }
 0x4aa   : > { %vm4682_vm5 = vmpackc.low %vm2726_vm4, %vm2724_vm3  ;;  %v5266_v0 = vpop.eup %5265  ;;  %v2677_v22 = vand.u32 2147483647, %v7396_v30  ;;  %v2679_v17 = vand.u32 2147483648, %v7396_v30  ;;  %vm2658_vm11 = vweird.f32 %v7369_v23  ;;  %v2662_v6 = vand.u32 2147483647, %v7369_v23 }
 0x4ab   : > { %4683 = vmatmul.msk.bf16.gmra.mxu1 %vm4682_vm5, %v5680_v50  ;;  %v2669_v61 = vmul.f32 %v5266_v0, %v7396_v30  ;;  %v2657_v25 = vadd.f32 %v7406_v42, %v2656_v14  ;;  %v2664_v8 = vand.u32 2147483648, %v7369_v23  ;;  %v2646_v5 = vsel %vm7437_vm10, %v7394_v51, %v2642_v21  ;;  %vm7448_vm13 = vmor %vm2658_vm11, %vm2659_vm8 }
 0x4ac   : > { %v5268_v28 = vpop.eup %5267  ;;  %vm2674_vm12 = vweird.f32 %v5266_v0  ;;  %v2650_v13 = vor.u32 1.1754944e-38, %v2649_v53  ;;  %vm2673_vm14 = vweird.f32 %v7396_v30  ;;  %v2694_v24 = vand.u32 2147483648, %v7409_v48 }
 0x4ad   : > { %v2684_v60 = vmul.f32 %v5268_v28, %v7409_v48  ;;  %v2670_v3 = vsub.f32 1.0, %v2669_v61  ;;  %v2661_v23 = vsel %vm7448_vm13, %v7406_v42, %v2657_v25  ;;  %vm2689_vm15 = vweird.f32 %v5268_v28  ;;  %vm2675_vm0 = vmor %vm2673_vm14, %vm2674_vm12 }
 0x4ae   : > { %v2692_v1 = vand.u32 2147483647, %v7409_v48  ;;  %v2651_v62 = vsel %vm7432_vm9, %v2650_v13, %v2646_v5  ;;  %vm2678_vm1 = vcmp.eq.f32.partialorder %v2677_v22, 8.507059e+37  ;;  %v2680_v52 = vor.u32 1.1754944e-38, %v2679_v17 }
 0x4af   : > { %v2671_v56 = vmul.f32 %v5266_v0, %v2670_v3  ;;  %v2685_v4 = vsub.f32 1.0, %v2684_v60  ;;  %v2665_v29 = vor.u32 1.1754944e-38, %v2664_v8  ;;  %vm2663_vm2 = vcmp.eq.f32.partialorder %v2662_v6, 8.507059e+37 }
 0x4b0   : > { %vm2688_vm3 = vweird.f32 %v7409_v48  ;;  %v2695_v45 = vor.u32 1.1754944e-38, %v2694_v24  ;;  %vm2727_vm5 = vcmp.gt.f32.partialorder %v2651_v62, %v4650_v20  ;;  %vm2693_vm7 = vcmp.eq.f32.partialorder %v2692_v1, 8.507059e+37 }
 0x4b1   : > { %v2672_v39 = vadd.f32 %v5266_v0, %v2671_v56  ;;  %v2686_v7 = vmul.f32 %v5268_v28, %v2685_v4  ;;  %v2666_v33 = vsel %vm2663_vm2, %v2665_v29, %v2661_v23  ;;  %vm2690_vm4 = vmor %vm2688_vm3, %vm2689_vm15 }
 0x4b2   : > { %vm2728_vm9 = vcmp.gt.f32.partialorder %v2666_v33, %v4651_v38 }
 0x4b3   : > { %v2676_v63 = vsel %vm2675_vm0, %v5266_v0, %v2672_v39  ;;  %v2687_v16 = vadd.f32 %v5268_v28, %v2686_v7 }
 0x4b4   : > { %v2681_v43 = vsel %vm2678_vm1, %v2680_v52, %v2676_v63 }
 0x4b5   : > { %vm2729_vm6 = vcmp.gt.f32.partialorder %v2681_v43, %v4652_v26  ;;  %v2691_v49 = vsel %vm2690_vm4, %v5268_v28, %v2687_v16  ;;  %v4686_v16 = vld [vmem:[%s5891_s20 + $0xc0] sm:$0xff]  ;;  %v4687_v43 = vld [vmem:[%s5891_s20 + $0xc8] sm:$0xff] }
 0x4b6   : > { %vm4676_vm8 = vmpackc.low %vm2729_vm6, %vm2727_vm5  ;;  %v2696_v51 = vsel %vm2693_vm7, %v2695_v45, %v2691_v49 }
 0x4b7   : > { %4677 = vmatmul.msk.bf16.gmra.mxu0 %vm4676_vm8, %v5680_v50  ;;  %vm2730_vm10 = vcmp.gt.f32.partialorder %v2696_v51, %v4653_v31 }
 0x4b8   : > { %vm4684_vm11 = vmpackc.low %vm2730_vm10, %vm2728_vm9 }
 0x4bb   : > { %4685 = vmatmul.msk.bf16.gmra.mxu1 %vm4684_vm11, %v5680_v50 }
 0x501   : > { %v2780_v30 = vpop.f32.mrf.mxu0 }
 0x502   : > { %v2781_v34 = vadd.f32 %v7471_v12, %v2780_v30 }
 0x504   : > { %v2809_v59 = vpop.f32.mrf.mxu1 }
 0x505   : > { %v2810_v27 = vadd.f32 %v2809_v59, %v2781_v34 }
 0x507   : > { %v2829_v47 = vsub.f32 0.0, %v2810_v27 }
 0x509   : > { %v2837_v18 = vmul.f32 1.442695, %v2829_v47  ;;  %v2782_v46 = vpop.f32.mrf.mxu0 }
 0x50a   : > { %v2783_v42 = vadd.f32 %v7471_v12, %v2782_v46 }
 0x50b   : > { %5269 = vpow2.f32 %v2837_v18 }
 0x50c   : > { %v2811_v48 = vpop.f32.mrf.mxu1 }
 0x50d   : > { %v2812_v36 = vadd.f32 %v2811_v48, %v2783_v42 }
 0x50f   : > { %v2830_v11 = vsub.f32 0.0, %v2812_v36 }
 0x511   : > { %v5270_v19 = vpop.eup %5269  ;;  %v2839_v55 = vmul.f32 1.442695, %v2830_v11 }
 0x512   : > { %v2853_v9 = vadd.f32 1.0, %v5270_v19 }
 0x513   : > { %5271 = vpow2.f32 %v2839_v55  ;;  %v2785_v10 = vpop.f32.mrf.mxu0 }
 0x514   : > { %5273 = vrcp.f32 %v2853_v9  ;;  %v2786_v57 = vadd.f32 %v7471_v12, %v2785_v10  ;;  %v2872_v5 = vand.u32 2147483648, %v2853_v9  ;;  %vm2866_vm13 = vweird.f32 %v2853_v9 }
 0x515   : > { %v2870_v13 = vand.u32 2147483647, %v2853_v9 }
 0x516   : > { %v2814_v44 = vpop.f32.mrf.mxu1  ;;  %v2873_v52 = vor.u32 1.1754944e-38, %v2872_v5 }
 0x517   : > { %v2815_v54 = vadd.f32 %v2814_v44, %v2786_v57  ;;  %vm2871_vm0 = vcmp.eq.f32.partialorder %v2870_v13, 8.507059e+37 }
 0x519   : > { %v5272_v58 = vpop.eup %5271  ;;  %v2831_v0 = vsub.f32 0.0, %v2815_v54 }
 0x51a   : > { %v5274_v32 = vpop.eup %5273  ;;  %v2854_v35 = vadd.f32 1.0, %v5272_v58 }
 0x51b   : > { %v2862_v14 = vmul.f32 %v5274_v32, %v2853_v9  ;;  %v2787_v61 = vpop.f32.mrf.mxu0  ;;  %v2841_v21 = vmul.f32 1.442695, %v2831_v0  ;;  %vm2867_vm12 = vweird.f32 %v5274_v32 }
 0x51c   : > { %5275 = vrcp.f32 %v2854_v35  ;;  %v2788_v28 = vadd.f32 %v7471_v12, %v2787_v61  ;;  %vm2868_vm14 = vmor %vm2866_vm13, %vm2867_vm12  ;;  %v2885_v24 = vand.u32 2147483647, %v2854_v35  ;;  %v2887_v39 = vand.u32 2147483648, %v2854_v35 }
 0x51d   : > { %v2863_v53 = vsub.f32 1.0, %v2862_v14  ;;  %5277 = vpow2.f32 %v2841_v21  ;;  %vm2881_vm1 = vweird.f32 %v2854_v35 }
 0x51e   : > { %v2816_v60 = vpop.f32.mrf.mxu1  ;;  %v2888_v63 = vor.u32 1.1754944e-38, %v2887_v39  ;;  %vm2886_vm3 = vcmp.eq.f32.partialorder %v2885_v24, 8.507059e+37 }
 0x51f   : > { %v2864_v25 = vmul.f32 %v5274_v32, %v2863_v53  ;;  %v2817_v2 = vadd.f32 %v2816_v60, %v2788_v28 }
 0x521   : > { %v2832_v22 = vsub.f32 0.0, %v2817_v2  ;;  %v2865_v17 = vadd.f32 %v5274_v32, %v2864_v25 }
 0x522   : > { %v5276_v3 = vpop.eup %5275 }
 0x523   : > { %v2877_v15 = vmul.f32 %v5276_v3, %v2854_v35  ;;  %v5278_v6 = vpop.eup %5277  ;;  %v2843_v8 = vmul.f32 1.442695, %v2832_v22  ;;  %v2869_v1 = vsel %vm2868_vm14, %v5274_v32, %v2865_v17  ;;  %vm2882_vm15 = vweird.f32 %v5276_v3 }
 0x524   : > { %v7477_v37 = vadd.f32 1.0, %v5278_v6  ;;  %v2790_v4 = vpop.f32.mrf.mxu0  ;;  %v2874_v29 = vsel %vm2871_vm0, %v2873_v52, %v2869_v1  ;;  %vm2883_vm2 = vmor %vm2881_vm1, %vm2882_vm15  ;;  %v4688_v6 = vld [vmem:[%s5891_s20 + $0xd0] sm:$0xff] }
 0x525   : > { %v2878_v56 = vsub.f32 1.0, %v2877_v15  ;;  %5279 = vpow2.f32 %v2843_v8  ;;  %v2791_v23 = vadd.f32 %v7471_v12, %v2790_v4  ;;  %vm2990_vm4 = vcmp.gt.f32.partialorder %v2874_v29, %v4686_v16  ;;  %v4689_v8 = vld [vmem:[%s5891_s20 + $0xd8] sm:$0xff] }
 0x526   : > { %5281 = vrcp.f32 %v7477_v37  ;;  %v2902_v54 = vand.u32 2147483648, %v7477_v37  ;;  %vm2896_vm8 = vweird.f32 %v7477_v37  ;;  %v2900_v32 = vand.u32 2147483647, %v7477_v37 }
 0x527   : > { %v2879_v7 = vmul.f32 %v5276_v3, %v2878_v56 }
 0x528   : > { %v2819_v62 = vpop.f32.mrf.mxu1  ;;  %v2903_v25 = vor.u32 1.1754944e-38, %v2902_v54  ;;  %vm2901_vm11 = vcmp.eq.f32.partialorder %v2900_v32, 8.507059e+37 }
 0x529   : > { %v2820_v20 = vadd.f32 %v2819_v62, %v2791_v23  ;;  %v2880_v26 = vadd.f32 %v5276_v3, %v2879_v7 }
 0x52b   : > { %v2833_v33 = vsub.f32 0.0, %v2820_v20  ;;  %v2884_v45 = vsel %vm2883_vm2, %v5276_v3, %v2880_v26  ;;  %v5280_v38 = vpop.eup %5279 }
 0x52c   : > { %v2889_v31 = vsel %vm2886_vm3, %v2888_v63, %v2884_v45  ;;  %v5282_v49 = vpop.eup %5281  ;;  %v2856_v51 = vadd.f32 1.0, %v5280_v38  ;;  %v2792_v34 = vpop.f32.mrf.mxu0 }
 0x52d   : > { %v2845_v30 = vmul.f32 1.442695, %v2833_v33  ;;  %vm2991_vm5 = vcmp.gt.f32.partialorder %v2889_v31, %v4687_v43  ;;  %v2892_v59 = vmul.f32 %v5282_v49, %v7477_v37  ;;  %v2793_v27 = vadd.f32 %v7471_v12, %v2792_v34 }
 0x52e   : > { %vm4702_vm6 = vmpackc.low %vm2991_vm5, %vm2990_vm4  ;;  %5283 = vrcp.f32 %v2856_v51  ;;  %vm2897_vm7 = vweird.f32 %v5282_v49  ;;  %v2917_v14 = vand.u32 2147483648, %v2856_v51  ;;  %v2915_v28 = vand.u32 2147483647, %v2856_v51 }
 0x52f   : > { %4703 = vmatmul.msk.bf16.vlgmr.msrb.gmra.mxu2 %vm4702_vm6, %v5680_v50  ;;  %4711 = vmatmul.msk.bf16.vlgmr.msrb.gmra.mxu3 %vm4702_vm6, %v5680_v50  ;;  %5285 = vpow2.f32 %v2845_v30  ;;  %v2893_v18 = vsub.f32 1.0, %v2892_v59  ;;  %vm2898_vm9 = vmor %vm2896_vm8, %vm2897_vm7  ;;  %vm2911_vm12 = vweird.f32 %v2856_v51 }
 0x530   : > { %v2821_v47 = vpop.f32.mrf.mxu1  ;;  %v2918_v17 = vor.u32 1.1754944e-38, %v2917_v14  ;;  %vm2916_vm14 = vcmp.eq.f32.partialorder %v2915_v28, 8.507059e+37 }
 0x531   : > { %v2822_v46 = vadd.f32 %v2821_v47, %v2793_v27  ;;  %v2894_v42 = vmul.f32 %v5282_v49, %v2893_v18 }
 0x533   : > { %v2834_v48 = vsub.f32 0.0, %v2822_v46  ;;  %v2895_v57 = vadd.f32 %v5282_v49, %v2894_v42  ;;  %v4690_v46 = vld [vmem:[%s5891_s20 + $0xe0] sm:$0xff]  ;;  %v4691_v42 = vld [vmem:[%s5891_s20 + $0xe8] sm:$0xff] }
 0x534   : > { %v5284_v36 = vpop.eup %5283  ;;  %v2795_v19 = vpop.f32.mrf.mxu0 }
 0x535   : > { %v2847_v11 = vmul.f32 1.442695, %v2834_v48  ;;  %v5286_v55 = vpop.eup %5285  ;;  %v2907_v9 = vmul.f32 %v5284_v36, %v2856_v51  ;;  %v2796_v10 = vadd.f32 %v7471_v12, %v2795_v19  ;;  %v2899_v61 = vsel %vm2898_vm9, %v5282_v49, %v2895_v57 }
 0x536   : > { %v7488_v44 = vadd.f32 1.0, %v5286_v55  ;;  %vm2912_vm10 = vweird.f32 %v5284_v36  ;;  %v2904_v15 = vsel %vm2901_vm11, %v2903_v25, %v2899_v61  ;;  %v4692_v25 = vld [vmem:[%s5891_s20 + $0xf0] sm:$0xff] }
 0x537   : > { %5287 = vpow2.f32 %v2847_v11  ;;  %v2908_v35 = vsub.f32 1.0, %v2907_v9  ;;  %vm2913_vm13 = vmor %vm2911_vm12, %vm2912_vm10  ;;  %vm2992_vm15 = vcmp.gt.f32.partialorder %v2904_v15, %v4688_v6 }
 0x538   : > { %v2824_v58 = vpop.f32.mrf.mxu1  ;;  %5289 = vrcp.f32 %v7488_v44  ;;  %v2932_v16 = vand.u32 2147483648, %v7488_v44  ;;  %vm2926_vm3 = vweird.f32 %v7488_v44  ;;  %v2930_v43 = vand.u32 2147483647, %v7488_v44 }
 0x539   : > { %v2825_v0 = vadd.f32 %v2824_v58, %v2796_v10  ;;  %v2909_v21 = vmul.f32 %v5284_v36, %v2908_v35 }
 0x53a   : > { %v2933_v51 = vor.u32 1.1754944e-38, %v2932_v16  ;;  %vm2931_vm6 = vcmp.eq.f32.partialorder %v2930_v43, 8.507059e+37 }
 0x53b   : > { %v2835_v53 = vsub.f32 0.0, %v2825_v0  ;;  %v2910_v60 = vadd.f32 %v5284_v36, %v2909_v21 }
 0x53c   : > { %v2797_v22 = vpop.f32.mrf.mxu0 }
 0x53d   : > { %v5288_v2 = vpop.eup %5287  ;;  %v2849_v3 = vmul.f32 1.442695, %v2835_v53  ;;  %v2798_v56 = vadd.f32 %v7471_v12, %v2797_v22  ;;  %v2914_v37 = vsel %vm2913_vm13, %v5284_v36, %v2910_v60  ;;  %v4693_v60 = vld [vmem:[%s5891_s20 + $0xf8] sm:$0xff] }
 0x53e   : > { %v2858_v5 = vadd.f32 1.0, %v5288_v2  ;;  %v5290_v4 = vpop.eup %5289  ;;  %v2919_v13 = vsel %vm2916_vm14, %v2918_v17, %v2914_v37 }
 0x53f   : > { %5291 = vpow2.f32 %v2849_v3  ;;  %v2922_v23 = vmul.f32 %v5290_v4, %v7488_v44  ;;  %vm2993_vm0 = vcmp.gt.f32.partialorder %v2919_v13, %v4689_v8  ;;  %vm2927_vm2 = vweird.f32 %v5290_v4 }
 0x540   : > { %5293 = vrcp.f32 %v2858_v5  ;;  %v2826_v24 = vpop.f32.mrf.mxu1  ;;  %vm4704_vm1 = vmpackc.low %vm2993_vm0, %vm2992_vm15  ;;  %v2947_v45 = vand.u32 2147483648, %v2858_v5  ;;  %v2945_v49 = vand.u32 2147483647, %v2858_v5  ;;  %vm2941_vm7 = vweird.f32 %v2858_v5 }
 0x541   : > { %v2827_v39 = vadd.f32 %v2826_v24, %v2798_v56  ;;  %4705 = vmatmul.msk.bf16.gmra.mxu2 %vm4704_vm1, %v5680_v50  ;;  %4713 = vmatmul.msk.bf16.gmra.mxu3 %vm4704_vm1, %v5680_v50  ;;  %v2923_v7 = vsub.f32 1.0, %v2922_v23  ;;  %vm2928_vm4 = vmor %vm2926_vm3, %vm2927_vm2 }
 0x542   : > { %v2948_v18 = vor.u32 1.1754944e-38, %v2947_v45  ;;  %vm2946_vm9 = vcmp.eq.f32.partialorder %v2945_v49, 8.507059e+37 }
 0x543   : > { %v2836_v1 = vsub.f32 0.0, %v2827_v39  ;;  %v2924_v12 = vmul.f32 %v5290_v4, %v2923_v7 }
 0x545   : > { %v5292_v62 = vpop.eup %5291  ;;  %v2851_v52 = vmul.f32 1.442695, %v2836_v1  ;;  %v2925_v63 = vadd.f32 %v5290_v4, %v2924_v12 }
 0x546   : > { %v5294_v20 = vpop.eup %5293  ;;  %v2859_v26 = vadd.f32 1.0, %v5292_v62 }
 0x547   : > { %v2937_v29 = vmul.f32 %v5294_v20, %v2858_v5  ;;  %5295 = vpow2.f32 %v2851_v52  ;;  %v2929_v38 = vsel %vm2928_vm4, %v5290_v4, %v2925_v63  ;;  %vm2942_vm5 = vweird.f32 %v5294_v20 }
 0x548   : > { %5297 = vrcp.f32 %v2859_v26  ;;  %v2934_v47 = vsel %vm2931_vm6, %v2933_v51, %v2929_v38  ;;  %vm2943_vm8 = vmor %vm2941_vm7, %vm2942_vm5  ;;  %v2962_v44 = vand.u32 2147483648, %v2859_v26  ;;  %vm2956_vm14 = vweird.f32 %v2859_v26 }
 0x549   : > { %v2938_v33 = vsub.f32 1.0, %v2937_v29  ;;  %vm2994_vm10 = vcmp.gt.f32.partialorder %v2934_v47, %v4690_v46  ;;  %v2960_v54 = vand.u32 2147483647, %v2859_v26 }
 0x54a   : > { %v2963_v61 = vor.u32 1.1754944e-38, %v2962_v44 }
 0x54b   : > { %v2939_v31 = vmul.f32 %v5294_v20, %v2938_v33  ;;  %vm2961_vm1 = vcmp.eq.f32.partialorder %v2960_v54, 8.507059e+37 }
 0x54d   : > { %v5296_v30 = vpop.eup %5295  ;;  %v2940_v34 = vadd.f32 %v5294_v20, %v2939_v31 }
 0x54e   : > { %v5298_v59 = vpop.eup %5297  ;;  %v2860_v27 = vadd.f32 1.0, %v5296_v30 }
 0x54f   : > { %v2952_v48 = vmul.f32 %v5298_v59, %v2859_v26  ;;  %v2944_v36 = vsel %vm2943_vm8, %v5294_v20, %v2940_v34  ;;  %vm2957_vm13 = vweird.f32 %v5298_v59 }
 0x550   : > { %5299 = vrcp.f32 %v2860_v27  ;;  %v2949_v11 = vsel %vm2946_vm9, %v2948_v18, %v2944_v36  ;;  %vm2958_vm15 = vmor %vm2956_vm14, %vm2957_vm13  ;;  %v2977_v32 = vand.u32 2147483648, %v2860_v27  ;;  %v2975_v14 = vand.u32 2147483647, %v2860_v27 }
 0x551   : > { %vm2995_vm11 = vcmp.gt.f32.partialorder %v2949_v11, %v4691_v42  ;;  %v2953_v19 = vsub.f32 1.0, %v2952_v48  ;;  %vm2971_vm2 = vweird.f32 %v2860_v27 }
 0x552   : > { %vm4706_vm12 = vmpackc.low %vm2995_vm11, %vm2994_vm10  ;;  %v2978_v53 = vor.u32 1.1754944e-38, %v2977_v32  ;;  %vm2976_vm4 = vcmp.eq.f32.partialorder %v2975_v14, 8.507059e+37 }
 0x553   : > { %4707 = vmatmul.msk.bf16.gmra.mxu2 %vm4706_vm12, %v5680_v50  ;;  %4715 = vmatmul.msk.bf16.gmra.mxu3 %vm4706_vm12, %v5680_v50  ;;  %v2954_v55 = vmul.f32 %v5298_v59, %v2953_v19 }
 0x555   : > { %v2955_v57 = vadd.f32 %v5298_v59, %v2954_v55 }
 0x556   : > { %v5300_v9 = vpop.eup %5299 }
 0x557   : > { %v2967_v10 = vmul.f32 %v5300_v9, %v2860_v27  ;;  %v2959_v35 = vsel %vm2958_vm15, %v5298_v59, %v2955_v57  ;;  %vm2972_vm0 = vweird.f32 %v5300_v9 }
 0x558   : > { %v2964_v28 = vsel %vm2961_vm1, %v2963_v61, %v2959_v35  ;;  %vm2973_vm3 = vmor %vm2971_vm2, %vm2972_vm0 }
 0x559   : > { %v2968_v58 = vsub.f32 1.0, %v2967_v10  ;;  %vm2996_vm5 = vcmp.gt.f32.partialorder %v2964_v28, %v4692_v25 }
 0x55b   : > { %v2969_v0 = vmul.f32 %v5300_v9, %v2968_v58 }
 0x55d   : > { %v2970_v21 = vadd.f32 %v5300_v9, %v2969_v0 }
 0x55f   : > { %v2974_v2 = vsel %vm2973_vm3, %v5300_v9, %v2970_v21 }
 0x560   : > { %v2979_v3 = vsel %vm2976_vm4, %v2978_v53, %v2974_v2 }
 0x561   : > { %vm2997_vm6 = vcmp.gt.f32.partialorder %v2979_v3, %v4693_v60 }
 0x562   : > { %vm4708_vm7 = vmpackc.low %vm2997_vm6, %vm2996_vm5 }
 0x563   : > { %4709 = vmatmul.msk.bf16.gmra.mxu2 %vm4708_vm7, %v5680_v50  ;;  %4717 = vmatmul.msk.bf16.gmra.mxu3 %vm4708_vm7, %v5680_v50 }
 0x5b2   : > { %v3027_v22 = vpop.f32.mrf.mxu2  ;;  %v3056_v15 = vpop.f32.mrf.mxu3 }
 0x5b3   : > { %v3028_v17 = vadd.f32 %v3027_v22, %v6158_v40  ;;  %v3057_v6 = vadd.f32 %v3056_v15, %v6160_v41 }
 0x5b5   : > { %v3076_v8 = vsub.f32 0.0, %v3028_v17  ;;  %v3077_v5 = vsub.f32 0.0, %v3057_v6 }
 0x5b7   : > { %v3092_v56 = vmul.f32 1.442695, %v3076_v8  ;;  %v3094_v37 = vmul.f32 1.442695, %v3077_v5 }
 0x5b9   : > { %5301 = vpow2.f32 %v3092_v56 }
 0x5ba   : > { %5303 = vpow2.f32 %v3094_v37  ;;  %v3029_v4 = vpop.f32.mrf.mxu2  ;;  %v3058_v13 = vpop.f32.mrf.mxu3 }
 0x5bb   : > { %v3030_v23 = vadd.f32 %v3029_v4, %v6158_v40  ;;  %v3059_v24 = vadd.f32 %v3058_v13, %v6160_v41 }
 0x5bd   : > { %v3078_v39 = vsub.f32 0.0, %v3030_v23  ;;  %v3079_v7 = vsub.f32 0.0, %v3059_v24 }
 0x5bf   : > { %v5302_v1 = vpop.eup %5301  ;;  %v3096_v12 = vmul.f32 1.442695, %v3078_v39  ;;  %v3098_v20 = vmul.f32 1.442695, %v3079_v7  ;;  %v4718_v7 = vld [vmem:[%s6250_s18 + $0x180] sm:$0xff] }
 0x5c0   : > { %v5304_v62 = vpop.eup %5303  ;;  %v3124_v52 = vadd.f32 1.0, %v5302_v1 }
 0x5c1   : > { %v3125_v26 = vadd.f32 1.0, %v5304_v62  ;;  %5305 = vpow2.f32 %v3096_v12 }
 0x5c2   : > { %5307 = vrcp.f32 %v3124_v52  ;;  %v3149_v51 = vand.u32 2147483647, %v3124_v52  ;;  %vm3145_vm8 = vweird.f32 %v3124_v52  ;;  %v3151_v59 = vand.u32 2147483648, %v3124_v52 }
 0x5c3   : > { %5309 = vrcp.f32 %v3125_v26  ;;  %vm3160_vm9 = vweird.f32 %v3125_v26  ;;  %v3164_v36 = vand.u32 2147483647, %v3125_v26  ;;  %v3166_v11 = vand.u32 2147483648, %v3125_v26 }
 0x5c4   : > { %5311 = vpow2.f32 %v3098_v20  ;;  %v3032_v29 = vpop.f32.mrf.mxu2  ;;  %v3061_v63 = vpop.f32.mrf.mxu3  ;;  %vm7525_vm11 = vcmp.eq.f32.partialorder %v3149_v51, 8.507059e+37  ;;  %v3152_v0 = vor.u32 1.1754944e-38, %v3151_v59 }
 0x5c5   : > { %v3033_v16 = vadd.f32 %v3032_v29, %v6158_v40  ;;  %v3062_v43 = vadd.f32 %v3061_v63, %v6160_v41  ;;  %vm7536_vm13 = vcmp.eq.f32.partialorder %v3164_v36, 8.507059e+37  ;;  %v3167_v2 = vor.u32 1.1754944e-38, %v3166_v11  ;;  %v4719_v29 = vld [vmem:[%s6250_s18 + $0x188] sm:$0xff] }
 0x5c7   : > { %v5306_v33 = vpop.eup %5305  ;;  %v3080_v31 = vsub.f32 0.0, %v3033_v16  ;;  %v3081_v49 = vsub.f32 0.0, %v3062_v43 }
 0x5c8   : > { %v5308_v45 = vpop.eup %5307  ;;  %v7517_v38 = vadd.f32 1.0, %v5306_v33 }
 0x5c9   : > { %v7519_v30 = vpop.eup %5309  ;;  %v3141_v34 = vmul.f32 %v5308_v45, %v3124_v52  ;;  %v3100_v18 = vmul.f32 1.442695, %v3080_v31  ;;  %v3102_v46 = vmul.f32 1.442695, %v3081_v49  ;;  %vm3146_vm10 = vweird.f32 %v5308_v45 }
 0x5ca   : > { %v5312_v27 = vpop.eup %5311  ;;  %v3156_v47 = vmul.f32 %v7519_v30, %v3125_v26  ;;  %5313 = vrcp.f32 %v7517_v38  ;;  %v3179_v44 = vand.u32 2147483647, %v7517_v38  ;;  %vm3161_vm12 = vweird.f32 %v7519_v30  ;;  %vm7542_vm14 = vmor %vm3145_vm8, %vm3146_vm10 }
 0x5cb   : > { %v3142_v42 = vsub.f32 1.0, %v3141_v34  ;;  %v7523_v48 = vadd.f32 1.0, %v5312_v27  ;;  %5315 = vpow2.f32 %v3100_v18  ;;  %v3181_v14 = vand.u32 2147483648, %v7517_v38  ;;  %vm7558_vm1 = vmor %vm3160_vm9, %vm3161_vm12 }
 0x5cc   : > { %v3157_v19 = vsub.f32 1.0, %v3156_v47  ;;  %v3034_v10 = vpop.f32.mrf.mxu2  ;;  %v3063_v57 = vpop.f32.mrf.mxu3  ;;  %vm3175_vm15 = vweird.f32 %v7517_v38  ;;  %vm7551_vm0 = vcmp.eq.f32.partialorder %v3179_v44, 8.507059e+37 }
 0x5cd   : > { %v3143_v9 = vmul.f32 %v5308_v45, %v3142_v42  ;;  %5317 = vrcp.f32 %v7523_v48  ;;  %v3035_v58 = vadd.f32 %v3034_v10, %v6158_v40  ;;  %v3064_v32 = vadd.f32 %v3063_v57, %v6160_v41 }
 0x5ce   : > { %v3158_v54 = vmul.f32 %v7519_v30, %v3157_v19  ;;  %5319 = vpow2.f32 %v3102_v46  ;;  %vm3190_vm2 = vweird.f32 %v7523_v48  ;;  %v3194_v37 = vand.u32 2147483647, %v7523_v48 }
 0x5cf   : > { %v3144_v35 = vadd.f32 %v5308_v45, %v3143_v9  ;;  %v3082_v28 = vsub.f32 0.0, %v3035_v58  ;;  %v3083_v53 = vsub.f32 0.0, %v3064_v32  ;;  %v3182_v39 = vor.u32 1.1754944e-38, %v3181_v14  ;;  %v4721_v9 = vld [vmem:[%s6250_s18 + $0x198] sm:$0xff] }
 0x5d0   : > { %v5314_v21 = vpop.eup %5313  ;;  %v3159_v60 = vadd.f32 %v7519_v30, %v3158_v54  ;;  %v3196_v62 = vand.u32 2147483648, %v7523_v48  ;;  %vm7580_vm5 = vcmp.eq.f32.partialorder %v3194_v37, 8.507059e+37 }
 0x5d1   : > { %v3171_v3 = vmul.f32 %v5314_v21, %v7517_v38  ;;  %v3148_v22 = vsel %vm7542_vm14, %v5308_v45, %v3144_v35  ;;  %v5316_v6 = vpop.eup %5315  ;;  %v3104_v8 = vmul.f32 1.442695, %v3082_v28  ;;  %v3106_v5 = vmul.f32 1.442695, %v3083_v53 }
 0x5d2   : > { %v3163_v56 = vsel %vm7558_vm1, %v7519_v30, %v3159_v60  ;;  %v7567_v23 = vadd.f32 1.0, %v5316_v6  ;;  %v3153_v24 = vsel %vm7525_vm11, %v3152_v0, %v3148_v22  ;;  %vm3176_vm3 = vweird.f32 %v5314_v21  ;;  %v4720_v30 = vld [vmem:[%s6250_s18 + $0x190] sm:$0xff] }
 0x5d3   : > { %v5318_v4 = vpop.eup %5317  ;;  %v3172_v13 = vsub.f32 1.0, %v3171_v3  ;;  %5321 = vpow2.f32 %v3104_v8  ;;  %v3168_v26 = vsel %vm7536_vm13, %v3167_v2, %v3163_v56  ;;  %vm3397_vm4 = vcmp.gt.f32.partialorder %v3153_v24, %v4718_v7  ;;  %vm3177_vm6 = vmor %vm3175_vm15, %vm3176_vm3 }
 0x5d4   : > { %v5320_v1 = vpop.eup %5319  ;;  %v3186_v12 = vmul.f32 %v5318_v4, %v7523_v48  ;;  %5323 = vrcp.f32 %v7567_v23  ;;  %vm3191_vm7 = vweird.f32 %v5318_v4  ;;  %v3197_v34 = vor.u32 1.1754944e-38, %v3196_v62 }
 0x5d5   : > { %v3173_v52 = vmul.f32 %v5314_v21, %v3172_v13  ;;  %v7575_v20 = vadd.f32 1.0, %v5320_v1  ;;  %5325 = vpow2.f32 %v3106_v5  ;;  %vm3398_vm8 = vcmp.gt.f32.partialorder %v3168_v26, %v4719_v29  ;;  %vm3192_vm11 = vmor %vm3190_vm2, %vm3191_vm7 }
 0x5d6   : > { %v3187_v63 = vsub.f32 1.0, %v3186_v12  ;;  %v3037_v16 = vpop.f32.mrf.mxu2  ;;  %v3066_v43 = vpop.f32.mrf.mxu3  ;;  %v3209_v18 = vand.u32 2147483647, %v7567_v23  ;;  %vm3205_vm9 = vweird.f32 %v7567_v23  ;;  %v3211_v38 = vand.u32 2147483648, %v7567_v23 }
 0x5d7   : > { %5327 = vrcp.f32 %v7575_v20  ;;  %v3038_v45 = vadd.f32 %v3037_v16, %v6158_v40  ;;  %v3067_v31 = vadd.f32 %v3066_v43, %v6160_v41  ;;  %v3174_v49 = vadd.f32 %v5314_v21, %v3173_v52 }
 0x5d8   : > { %v3188_v51 = vmul.f32 %v5318_v4, %v3187_v63  ;;  %v3224_v10 = vand.u32 2147483647, %v7575_v20  ;;  %v3226_v32 = vand.u32 2147483648, %v7575_v20  ;;  %vm7618_vm14 = vcmp.eq.f32.partialorder %v3209_v18, 8.507059e+37 }
 0x5d9   : > { %v3084_v59 = vsub.f32 0.0, %v3038_v45  ;;  %v3085_v27 = vsub.f32 0.0, %v3067_v31  ;;  %v3178_v47 = vsel %vm3177_vm6, %v5314_v21, %v3174_v49  ;;  %v5322_v46 = vpop.eup %5321  ;;  %v3212_v8 = vor.u32 1.1754944e-38, %v3211_v38 }
 0x5da   : > { %v3183_v42 = vsel %vm7551_vm0, %v3182_v39, %v3178_v47  ;;  %v3189_v36 = vadd.f32 %v5318_v4, %v3188_v51  ;;  %v7596_v11 = vpop.eup %5323  ;;  %v7598_v19 = vadd.f32 1.0, %v5322_v46  ;;  %vm3220_vm0 = vweird.f32 %v7575_v20  ;;  %v4722_v47 = vld [vmem:[%s6250_s18 + $0x1a0] sm:$0xff] }
 0x5db   : > { %v3108_v55 = vmul.f32 1.442695, %v3084_v59  ;;  %vm3399_vm10 = vcmp.gt.f32.partialorder %v3183_v42, %v4720_v30  ;;  %v5326_v57 = vpop.eup %5325  ;;  %v3201_v44 = vmul.f32 %v7596_v11, %v7567_v23  ;;  %v3110_v54 = vmul.f32 1.442695, %v3085_v27 }
 0x5dc   : > { %vm4750_vm12 = vmpackc.low %vm3399_vm10, %vm3397_vm4  ;;  %v3193_v58 = vsel %vm3192_vm11, %v5318_v4, %v3189_v36  ;;  %5329 = vrcp.f32 %v7598_v19  ;;  %v7612_v0 = vadd.f32 1.0, %v5326_v57  ;;  %vm3206_vm13 = vweird.f32 %v7596_v11  ;;  %v4723_v36 = vld [vmem:[%s6250_s18 + $0x1a8] sm:$0xff] }
 0x5dd   : > { %v7609_v35 = vpop.eup %5327  ;;  %4751 = vmatmul.msk.bf16.vlgmr.msra.gmra.mxu0 %vm4750_vm12, %v5680_v50  ;;  %v3198_v48 = vsel %vm7580_vm5, %v3197_v34, %v3193_v58  ;;  %5331 = vpow2.f32 %v3108_v55  ;;  %v3202_v53 = vsub.f32 1.0, %v3201_v44  ;;  %v3239_v2 = vand.u32 2147483647, %v7598_v19  ;;  %vm7645_vm5 = vmor %vm3205_vm9, %vm3206_vm13  ;;  %v4724_v58 = vld [vmem:[%s6250_s18 + $0x1b0] sm:$0xff] }
 0x5de   : > { %v3216_v61 = vmul.f32 %v7609_v35, %v7575_v20  ;;  %v3039_v21 = vpop.f32.mrf.mxu2  ;;  %v3068_v28 = vpop.f32.mrf.mxu3  ;;  %vm3400_vm15 = vcmp.gt.f32.partialorder %v3198_v48, %v4721_v9  ;;  %5333 = vrcp.f32 %v7612_v0  ;;  %v3241_v22 = vand.u32 2147483648, %v7598_v19 }
 0x5df   : > { %v3040_v25 = vadd.f32 %v3039_v21, %v6158_v40  ;;  %v3069_v60 = vadd.f32 %v3068_v28, %v6160_v41  ;;  %vm4758_vm1 = vmpackc.low %vm3400_vm15, %vm3398_vm8  ;;  %5335 = vpow2.f32 %v3110_v54  ;;  %v3203_v3 = vmul.f32 %v7596_v11, %v3202_v53 }
 0x5e0   : > { %4759 = vmatmul.msk.bf16.vlgmr.msra.gmra.mxu1 %vm4758_vm1, %v5680_v50  ;;  %v3217_v15 = vsub.f32 1.0, %v3216_v61  ;;  %vm7633_vm2 = vcmp.eq.f32.partialorder %v3224_v10, 8.507059e+37  ;;  %vm3235_vm3 = vweird.f32 %v7598_v19  ;;  %vm3221_vm4 = vweird.f32 %v7609_v35 }
 0x5e1   : > { %v3086_v17 = vsub.f32 0.0, %v3040_v25  ;;  %v3087_v6 = vsub.f32 0.0, %v3069_v60  ;;  %v3204_v56 = vadd.f32 %v7596_v11, %v3203_v3  ;;  %v3242_v7 = vor.u32 1.1754944e-38, %v3241_v22  ;;  %vm3222_vm9 = vmor %vm3220_vm0, %vm3221_vm4  ;;  %v4725_v25 = vld [vmem:[%s6250_s18 + $0x1b8] sm:$0xff] }
 0x5e2   : > { %v3218_v37 = vmul.f32 %v7609_v35, %v3217_v15  ;;  %v5330_v4 = vpop.eup %5329  ;;  %v3227_v1 = vor.u32 1.1754944e-38, %v3226_v32  ;;  %vm7653_vm6 = vcmp.eq.f32.partialorder %v3239_v2, 8.507059e+37  ;;  %v3254_v23 = vand.u32 2147483647, %v7612_v0 }
 0x5e3   : > { %v3112_v13 = vmul.f32 1.442695, %v3086_v17  ;;  %v3114_v24 = vmul.f32 1.442695, %v3087_v6  ;;  %v5332_v12 = vpop.eup %5331  ;;  %v3231_v62 = vmul.f32 %v5330_v4, %v7598_v19  ;;  %v3208_v52 = vsel %vm7645_vm5, %v7596_v11, %v3204_v56 }
 0x5e4   : > { %v3219_v29 = vadd.f32 %v7609_v35, %v3218_v37  ;;  %v7659_v63 = vpop.eup %5333  ;;  %v7661_v16 = vadd.f32 1.0, %v5332_v12  ;;  %vm3236_vm7 = vweird.f32 %v5330_v4  ;;  %vm3250_vm8 = vweird.f32 %v7612_v0 }
 0x5e5   : > { %5337 = vpow2.f32 %v3112_v13  ;;  %v5336_v43 = vpop.eup %5335  ;;  %v3246_v33 = vmul.f32 %v7659_v63, %v7612_v0  ;;  %v3213_v49 = vsel %vm7618_vm14, %v3212_v8, %v3208_v52  ;;  %v3232_v51 = vsub.f32 1.0, %v3231_v62  ;;  %vm3237_vm12 = vmor %vm3235_vm3, %vm3236_vm7 }
 0x5e6   : > { %5339 = vpow2.f32 %v3114_v24  ;;  %v3042_v45 = vpop.f32.mrf.mxu2  ;;  %v3071_v31 = vpop.f32.mrf.mxu3  ;;  %v7669_v30 = vadd.f32 1.0, %v5336_v43  ;;  %v3223_v18 = vsel %vm3222_vm9, %v7609_v35, %v3219_v29  ;;  %vm7679_vm10 = vcmp.eq.f32.partialorder %v3254_v23, 8.507059e+37 }
 0x5e7   : > { %5341 = vrcp.f32 %v7661_v16  ;;  %v3043_v34 = vadd.f32 %v3042_v45, %v6158_v40  ;;  %v3072_v59 = vadd.f32 %v3071_v31, %v6160_v41  ;;  %v3233_v27 = vmul.f32 %v5330_v4, %v3232_v51 }
 0x5e8   : > { %v3247_v46 = vsub.f32 1.0, %v3246_v33  ;;  %5343 = vrcp.f32 %v7669_v30  ;;  %v3228_v55 = vsel %vm7633_vm2, %v3227_v1, %v3223_v18  ;;  %vm3251_vm11 = vweird.f32 %v7659_v63 }
 0x5e9   : > { %v3088_v38 = vsub.f32 0.0, %v3043_v34  ;;  %v3089_v11 = vsub.f32 0.0, %v3072_v59  ;;  %v3234_v20 = vadd.f32 %v5330_v4, %v3233_v27  ;;  %v3256_v10 = vand.u32 2147483648, %v7612_v0  ;;  %vm3252_vm15 = vmor %vm3250_vm8, %vm3251_vm11  ;;  %v4726_v27 = vld [vmem:[%s6250_s18 + $0x1c0] sm:$0xff] }
 0x5ea   : > { %v3248_v9 = vmul.f32 %v7659_v63, %v3247_v46  ;;  %vm3401_vm13 = vcmp.gt.f32.partialorder %v3213_v49, %v4722_v47  ;;  %vm3402_vm14 = vcmp.gt.f32.partialorder %v3228_v55, %v4723_v36  ;;  %v3269_v61 = vand.u32 2147483647, %v7661_v16 }
 0x5eb   : > { %v5338_v57 = vpop.eup %5337  ;;  %v3116_v44 = vmul.f32 1.442695, %v3088_v38  ;;  %v3118_v54 = vmul.f32 1.442695, %v3089_v11  ;;  %v3238_v48 = vsel %vm3237_vm12, %v5330_v4, %v3234_v20  ;;  %v3257_v53 = vor.u32 1.1754944e-38, %v3256_v10 }
 0x5ec   : > { %v5340_v32 = vpop.eup %5339  ;;  %v7694_v35 = vadd.f32 1.0, %v5338_v57  ;;  %v3249_v14 = vadd.f32 %v7659_v63, %v3248_v9  ;;  %v3243_v19 = vsel %vm7653_vm6, %v3242_v7, %v3238_v48  ;;  %v3271_v4 = vand.u32 2147483648, %v7661_v16 }
 0x5ed   : > { %v5342_v21 = vpop.eup %5341  ;;  %v7698_v28 = vadd.f32 1.0, %v5340_v32  ;;  %5345 = vpow2.f32 %v3116_v44  ;;  %vm3403_vm0 = vcmp.gt.f32.partialorder %v3243_v19, %v4724_v58  ;;  %vm3265_vm4 = vweird.f32 %v7661_v16  ;;  %v4728_v58 = vld [vmem:[%s6250_s18 + $0x1d0] sm:$0xff] }
 0x5ee   : > { %v3261_v60 = vmul.f32 %v5342_v21, %v7661_v16  ;;  %5347 = vrcp.f32 %v7694_v35  ;;  %v3044_v2 = vpop.f32.mrf.mxu2  ;;  %v3073_v3 = vpop.f32.mrf.mxu3  ;;  %v3253_v22 = vsel %vm3252_vm15, %v7659_v63, %v3249_v14  ;;  %vm4752_vm1 = vmpackc.low %vm3403_vm0, %vm3401_vm13  ;;  %vm3266_vm5 = vweird.f32 %v5342_v21 }
 0x5ef   : > { %v7710_v15 = vpop.eup %5343  ;;  %5349 = vrcp.f32 %v7698_v28  ;;  %v3045_v17 = vadd.f32 %v3044_v2, %v6158_v40  ;;  %v3074_v0 = vadd.f32 %v3073_v3, %v6160_v41  ;;  %v3258_v6 = vsel %vm7679_vm10, %v3257_v53, %v3253_v22  ;;  %4753 = vmatmul.msk.bf16.gmra.mxu0 %vm4752_vm1, %v5680_v50  ;;  %vm3267_vm8 = vmor %vm3265_vm4, %vm3266_vm5  ;;  %v4727_v3 = vld [vmem:[%s6250_s18 + $0x1c8] sm:$0xff]  ;;  %v4729_v22 = vld [vmem:[%s6250_s18 + $0x1d8] sm:$0xff] }
 0x5f0   : > { %v3276_v8 = vmul.f32 %v7710_v15, %v7669_v30  ;;  %5351 = vpow2.f32 %v3118_v54  ;;  %vm3404_vm2 = vcmp.gt.f32.partialorder %v3258_v6, %v4725_v25  ;;  %v3262_v5 = vsub.f32 1.0, %v3261_v60 }
 0x5f1   : > { %v3090_v56 = vsub.f32 0.0, %v3045_v17  ;;  %v3091_v37 = vsub.f32 0.0, %v3074_v0  ;;  %vm4760_vm3 = vmpackc.low %vm3404_vm2, %vm3402_vm14  ;;  %vm7725_vm6 = vcmp.eq.f32.partialorder %v3269_v61, 8.507059e+37  ;;  %vm3295_vm7 = vweird.f32 %v7694_v35 }
 0x5f2   : > { %4761 = vmatmul.msk.bf16.gmra.mxu1 %vm4760_vm3, %v5680_v50  ;;  %v3263_v13 = vmul.f32 %v5342_v21, %v3262_v5  ;;  %v3277_v12 = vsub.f32 1.0, %v3276_v8  ;;  %v3299_v29 = vand.u32 2147483647, %v7694_v35  ;;  %v3272_v43 = vor.u32 1.1754944e-38, %v3271_v4 }
 0x5f3   : > { %v5346_v24 = vpop.eup %5345  ;;  %v3120_v39 = vmul.f32 1.442695, %v3090_v56  ;;  %v3122_v7 = vmul.f32 1.442695, %v3091_v37  ;;  %v3301_v51 = vand.u32 2147483648, %v7694_v35  ;;  %vm3280_vm10 = vweird.f32 %v7669_v30 }
 0x5f4   : > { %v5348_v62 = vpop.eup %5347  ;;  %v7729_v52 = vadd.f32 1.0, %v5346_v24  ;;  %v3264_v26 = vadd.f32 %v5342_v21, %v3263_v13  ;;  %v3278_v33 = vmul.f32 %v7710_v15, %v3277_v12  ;;  %vm3281_vm11 = vweird.f32 %v7710_v15 }
 0x5f5   : > { %v7733_v23 = vpop.eup %5349  ;;  %v3291_v63 = vmul.f32 %v5348_v62, %v7694_v35  ;;  %5353 = vpow2.f32 %v3120_v39  ;;  %vm3296_vm9 = vweird.f32 %v5348_v62  ;;  %v3286_v46 = vand.u32 2147483648, %v7669_v30  ;;  %vm7757_vm14 = vmor %vm3280_vm10, %vm3281_vm11 }
 0x5f6   : > { %v5352_v45 = vpop.eup %5351  ;;  %v3306_v31 = vmul.f32 %v7733_v23, %v7698_v28  ;;  %5355 = vrcp.f32 %v7729_v52  ;;  %v3268_v49 = vsel %vm3267_vm8, %v5342_v21, %v3264_v26  ;;  %v3279_v47 = vadd.f32 %v7710_v15, %v3278_v33  ;;  %vm3297_vm0 = vmor %vm3295_vm7, %vm3296_vm9 }
 0x5f7   : > { %v7743_v34 = vadd.f32 1.0, %v5352_v45  ;;  %5357 = vpow2.f32 %v3122_v7  ;;  %v3273_v59 = vsel %vm7725_vm6, %v3272_v43, %v3268_v49  ;;  %v3292_v16 = vsub.f32 1.0, %v3291_v63 }
 0x5f8   : > { %v3307_v42 = vsub.f32 1.0, %v3306_v31  ;;  %vm7753_vm12 = vcmp.eq.f32.partialorder %v3299_v29, 8.507059e+37  ;;  %v3302_v38 = vor.u32 1.1754944e-38, %v3301_v51  ;;  %vm3405_vm13 = vcmp.gt.f32.partialorder %v3273_v59, %v4726_v27 }
 0x5f9   : > { %5359 = vrcp.f32 %v7743_v34  ;;  %v3293_v18 = vmul.f32 %v5348_v62, %v3292_v16  ;;  %v3284_v55 = vand.u32 2147483647, %v7669_v30  ;;  %v3283_v10 = vsel %vm7757_vm14, %v7710_v15, %v3279_v47 }
 0x5fa   : > { %v3308_v57 = vmul.f32 %v7733_v23, %v3307_v42  ;;  %vm3311_vm15 = vweird.f32 %v7733_v23  ;;  %vm3310_vm1 = vweird.f32 %v7698_v28  ;;  %v3314_v30 = vand.u32 2147483647, %v7698_v28  ;;  %v4732_v42 = vld [vmem:[%s6250_s18 + $0x1f0] sm:$0xff] }
 0x5fb   : > { %v5354_v20 = vpop.eup %5353  ;;  %v3294_v9 = vadd.f32 %v5348_v62, %v3293_v18  ;;  %v3316_v32 = vand.u32 2147483648, %v7698_v28  ;;  %v3287_v21 = vor.u32 1.1754944e-38, %v3286_v46  ;;  %vm3285_vm2 = vcmp.eq.f32.partialorder %v3284_v55, 8.507059e+37  ;;  %vm3312_vm3 = vmor %vm3310_vm1, %vm3311_vm15  ;;  %v4730_v46 = vld [vmem:[%s6250_s18 + $0x1e0] sm:$0xff] }
 0x5fc   : > { %v7767_v44 = vpop.eup %5355  ;;  %v7769_v54 = vadd.f32 1.0, %v5354_v20  ;;  %v3309_v19 = vadd.f32 %v7733_v23, %v3308_v57  ;;  %vm3315_vm6 = vcmp.eq.f32.partialorder %v3314_v30, 8.507059e+37  ;;  %v3329_v8 = vand.u32 2147483647, %v7729_v52  ;;  %v4733_v57 = vld [vmem:[%s6250_s18 + $0x1f8] sm:$0xff] }
 0x5fd   : > { %v5358_v48 = vpop.eup %5357  ;;  %v3321_v14 = vmul.f32 %v7767_v44, %v7729_v52  ;;  %v3298_v61 = vsel %vm3297_vm0, %v5348_v62, %v3294_v9  ;;  %v3288_v25 = vsel %vm3285_vm2, %v3287_v21, %v3283_v10  ;;  %v3317_v2 = vor.u32 1.1754944e-38, %v3316_v32  ;;  %v4731_v10 = vld [vmem:[%s6250_s18 + $0x1e8] sm:$0xff]  ;;  %v7848_v30 = vld [vmem:[%s8129_s4] ss:$0 sm:$0xff] }
 0x5fe   : > { %5361 = vrcp.f32 %v7769_v54  ;;  %v7782_v35 = vadd.f32 1.0, %v5358_v48  ;;  %v3303_v53 = vsel %vm7753_vm12, %v3302_v38, %v3298_v61  ;;  %v3313_v60 = vsel %vm3312_vm3, %v7733_v23, %v3309_v19 }
 0x5ff   : > { %v7788_v28 = vpop.eup %5359  ;;  %vm3407_vm4 = vcmp.gt.f32.partialorder %v3303_v53, %v4728_v58  ;;  %v3322_v17 = vsub.f32 1.0, %v3321_v14  ;;  %v3318_v0 = vsel %vm3315_vm6, %v3317_v2, %v3313_v60  ;;  %vm3406_vm7 = vcmp.gt.f32.partialorder %v3288_v25, %v4727_v3 }
 0x600   : > { %v3336_v15 = vmul.f32 %v7788_v28, %v7743_v34  ;;  %5363 = vrcp.f32 %v7782_v35  ;;  %vm4754_vm5 = vmpackc.low %vm3407_vm4, %vm3405_vm13  ;;  %vm3408_vm8 = vcmp.gt.f32.partialorder %v3318_v0, %v4729_v22  ;;  %vm3326_vm10 = vweird.f32 %v7767_v44 }
 0x601   : > { %4755 = vmatmul.msk.bf16.gmra.mxu0 %vm4754_vm5, %v5680_v50  ;;  %v3323_v6 = vmul.f32 %v7767_v44, %v3322_v17  ;;  %vm4762_vm9 = vmpackc.low %vm3408_vm8, %vm3406_vm7  ;;  %vm3325_vm11 = vweird.f32 %v7729_v52  ;;  %vm7806_vm12 = vcmp.eq.f32.partialorder %v3329_v8, 8.507059e+37  ;;  %v3331_v7 = vand.u32 2147483648, %v7729_v52 }
 0x602   : > { %v3337_v5 = vsub.f32 1.0, %v3336_v15  ;;  %4763 = vmatmul.msk.bf16.gmra.mxu1 %vm4762_vm9, %v5680_v50  ;;  %v3359_v1 = vand.u32 2147483647, %v7769_v54  ;;  %vm3341_vm13 = vweird.f32 %v7788_v28  ;;  %vm7815_vm14 = vmor %vm3325_vm11, %vm3326_vm10  ;;  %v3361_v23 = vand.u32 2147483648, %v7769_v54 }
 0x603   : > { %v3324_v4 = vadd.f32 %v7767_v44, %v3323_v6  ;;  %vm3340_vm15 = vweird.f32 %v7743_v34  ;;  %v3344_v63 = vand.u32 2147483647, %v7743_v34  ;;  %v3346_v52 = vand.u32 2147483648, %v7743_v34 }
 0x604   : > { %v5362_v56 = vpop.eup %5361  ;;  %v3338_v13 = vmul.f32 %v7788_v28, %v3337_v5  ;;  %v3332_v31 = vor.u32 1.1754944e-38, %v3331_v7  ;;  %vm3355_vm1 = vweird.f32 %v7769_v54  ;;  %vm7827_vm2 = vmor %vm3340_vm15, %vm3341_vm13  ;;  %v3374_v51 = vand.u32 2147483647, %v7782_v35 }
 0x605   : > { %v3351_v37 = vmul.f32 %v5362_v56, %v7769_v54  ;;  %v3328_v43 = vsel %vm7815_vm14, %v7767_v44, %v3324_v4  ;;  %vm3356_vm0 = vweird.f32 %v5362_v56  ;;  %v3376_v34 = vand.u32 2147483648, %v7782_v35 }
 0x606   : > { %v5364_v24 = vpop.eup %5363  ;;  %v3339_v26 = vadd.f32 %v7788_v28, %v3338_v13  ;;  %v3333_v47 = vsel %vm7806_vm12, %v3332_v31, %v3328_v43  ;;  %vm3357_vm4 = vmor %vm3355_vm1, %vm3356_vm0  ;;  %vm3360_vm5 = vcmp.eq.f32.partialorder %v3359_v1, 8.507059e+37  ;;  %v3362_v18 = vor.u32 1.1754944e-38, %v3361_v23 }
 0x607   : > { %v3366_v12 = vmul.f32 %v5364_v24, %v7782_v35  ;;  %v3352_v62 = vsub.f32 1.0, %v3351_v37  ;;  %vm3371_vm3 = vweird.f32 %v5364_v24  ;;  %v3347_v36 = vor.u32 1.1754944e-38, %v3346_v52 }
 0x608   : > { %v3343_v16 = vsel %vm7827_vm2, %v7788_v28, %v3339_v26  ;;  %vm3345_vm6 = vcmp.eq.f32.partialorder %v3344_v63, 8.507059e+37  ;;  %vm3370_vm7 = vweird.f32 %v7782_v35  ;;  %v3377_v9 = vor.u32 1.1754944e-38, %v3376_v34 }
 0x609   : > { %v3353_v33 = vmul.f32 %v5362_v56, %v3352_v62  ;;  %v3367_v45 = vsub.f32 1.0, %v3366_v12  ;;  %v3348_v20 = vsel %vm3345_vm6, %v3347_v36, %v3343_v16  ;;  %vm3372_vm8 = vmor %vm3370_vm7, %vm3371_vm3  ;;  %vm3409_vm9 = vcmp.gt.f32.partialorder %v3333_v47, %v4730_v46 }
 0x60a   : > { %vm3375_vm11 = vcmp.eq.f32.partialorder %v3374_v51, 8.507059e+37  ;;  %vm3410_vm13 = vcmp.gt.f32.partialorder %v3348_v20, %v4731_v10 }
 0x60b   : > { %v3354_v59 = vadd.f32 %v5362_v56, %v3353_v33  ;;  %v3368_v27 = vmul.f32 %v5364_v24, %v3367_v45 }
 0x60d   : > { %v3358_v38 = vsel %vm3357_vm4, %v5362_v56, %v3354_v59  ;;  %v3369_v11 = vadd.f32 %v5364_v24, %v3368_v27 }
 0x60e   : > { %v3363_v55 = vsel %vm3360_vm5, %v3362_v18, %v3358_v38 }
 0x60f   : > { %vm3411_vm10 = vcmp.gt.f32.partialorder %v3363_v55, %v4732_v42  ;;  %v3373_v44 = vsel %vm3372_vm8, %v5364_v24, %v3369_v11  ;;  %v4766_v11 = vld [vmem:[%s5891_s20 + $0x100] sm:$0xff]  ;;  %v4767_v55 = vld [vmem:[%s5891_s20 + $0x108] sm:$0xff] }
 0x610   : > { %vm4756_vm12 = vmpackc.low %vm3411_vm10, %vm3409_vm9  ;;  %v3378_v54 = vsel %vm3375_vm11, %v3377_v9, %v3373_v44 }
 0x611   : > { %4757 = vmatmul.msk.bf16.gmra.mxu0 %vm4756_vm12, %v5680_v50  ;;  %vm3412_vm14 = vcmp.gt.f32.partialorder %v3378_v54, %v4733_v57 }
 0x612   : > { %vm4764_vm15 = vmpackc.low %vm3412_vm14, %vm3410_vm13 }
 0x613   : > { %4765 = vmatmul.msk.bf16.gmra.mxu1 %vm4764_vm15, %v5680_v50 }
 0x65a   : > { %v3462_v58 = vpop.f32.mrf.mxu0 }
 0x65b   : > { %v3463_v32 = vadd.f32 %v7848_v30, %v3462_v58 }
 0x65d   : > { %v3491_v48 = vpop.f32.mrf.mxu1 }
 0x65e   : > { %v3492_v14 = vadd.f32 %v3491_v48, %v3463_v32 }
 0x660   : > { %v3511_v61 = vsub.f32 0.0, %v3492_v14 }
 0x662   : > { %v3519_v21 = vmul.f32 1.442695, %v3511_v61  ;;  %v3464_v19 = vpop.f32.mrf.mxu0 }
 0x663   : > { %v3465_v35 = vadd.f32 %v7848_v30, %v3464_v19 }
 0x664   : > { %5365 = vpow2.f32 %v3519_v21 }
 0x665   : > { %v3493_v53 = vpop.f32.mrf.mxu1 }
 0x666   : > { %v3494_v28 = vadd.f32 %v3493_v53, %v3465_v35 }
 0x668   : > { %v3512_v25 = vsub.f32 0.0, %v3494_v28 }
 0x66a   : > { %v5366_v60 = vpop.eup %5365  ;;  %v3521_v2 = vmul.f32 1.442695, %v3512_v25 }
 0x66b   : > { %v3535_v3 = vadd.f32 1.0, %v5366_v60 }
 0x66c   : > { %5367 = vpow2.f32 %v3521_v2  ;;  %v3467_v22 = vpop.f32.mrf.mxu0 }
 0x66d   : > { %5369 = vrcp.f32 %v3535_v3  ;;  %v3468_v15 = vadd.f32 %v7848_v30, %v3467_v22  ;;  %v3554_v33 = vand.u32 2147483648, %v3535_v3  ;;  %vm3548_vm1 = vweird.f32 %v3535_v3 }
 0x66e   : > { %v3552_v49 = vand.u32 2147483647, %v3535_v3 }
 0x66f   : > { %v3496_v17 = vpop.f32.mrf.mxu1  ;;  %v3555_v18 = vor.u32 1.1754944e-38, %v3554_v33 }
 0x670   : > { %v3497_v0 = vadd.f32 %v3496_v17, %v3468_v15  ;;  %vm3553_vm4 = vcmp.eq.f32.partialorder %v3552_v49, 8.507059e+37 }
 0x672   : > { %v5368_v6 = vpop.eup %5367  ;;  %v3513_v8 = vsub.f32 0.0, %v3497_v0 }
 0x673   : > { %v5370_v5 = vpop.eup %5369  ;;  %v3536_v56 = vadd.f32 1.0, %v5368_v6 }
 0x674   : > { %v3544_v37 = vmul.f32 %v5370_v5, %v3535_v3  ;;  %v3523_v4 = vmul.f32 1.442695, %v3513_v8  ;;  %v3469_v13 = vpop.f32.mrf.mxu0  ;;  %vm3549_vm0 = vweird.f32 %v5370_v5 }
 0x675   : > { %5371 = vrcp.f32 %v3536_v56  ;;  %v3470_v39 = vadd.f32 %v7848_v30, %v3469_v13  ;;  %vm3550_vm2 = vmor %vm3548_vm1, %vm3549_vm0  ;;  %v3569_v34 = vand.u32 2147483648, %v3536_v56  ;;  %v3567_v27 = vand.u32 2147483647, %v3536_v56 }
 0x676   : > { %v3545_v24 = vsub.f32 1.0, %v3544_v37  ;;  %5373 = vpow2.f32 %v3523_v4  ;;  %vm3563_vm5 = vweird.f32 %v3536_v56 }
 0x677   : > { %v3498_v7 = vpop.f32.mrf.mxu1  ;;  %v3570_v38 = vor.u32 1.1754944e-38, %v3569_v34  ;;  %vm3568_vm7 = vcmp.eq.f32.partialorder %v3567_v27, 8.507059e+37 }
 0x678   : > { %v3546_v1 = vmul.f32 %v5370_v5, %v3545_v24  ;;  %v3499_v12 = vadd.f32 %v3498_v7, %v3470_v39 }
 0x67a   : > { %v3514_v62 = vsub.f32 0.0, %v3499_v12  ;;  %v3547_v52 = vadd.f32 %v5370_v5, %v3546_v1 }
 0x67b   : > { %v5372_v26 = vpop.eup %5371 }
 0x67c   : > { %v5374_v29 = vpop.eup %5373  ;;  %v3559_v23 = vmul.f32 %v5372_v26, %v3536_v56  ;;  %v3525_v63 = vmul.f32 1.442695, %v3514_v62  ;;  %v3551_v16 = vsel %vm3550_vm2, %v5370_v5, %v3547_v52  ;;  %vm3564_vm3 = vweird.f32 %v5372_v26 }
 0x67d   : > { %v7854_v43 = vadd.f32 1.0, %v5374_v29  ;;  %v3556_v36 = vsel %vm3553_vm4, %v3555_v18, %v3551_v16  ;;  %vm3565_vm6 = vmor %vm3563_vm5, %vm3564_vm3  ;;  %v4769_v29 = vld [vmem:[%s5891_s20 + $0x118] sm:$0xff] }
 0x67e   : > { %v3560_v45 = vsub.f32 1.0, %v3559_v23  ;;  %5375 = vpow2.f32 %v3525_v63  ;;  %v3472_v31 = vpop.f32.mrf.mxu0  ;;  %vm3672_vm8 = vcmp.gt.f32.partialorder %v3556_v36, %v4766_v11 }
 0x67f   : > { %5377 = vrcp.f32 %v7854_v43  ;;  %v3473_v51 = vadd.f32 %v7848_v30, %v3472_v31  ;;  %v3501_v47 = vpop.f32.mrf.mxu1  ;;  %v3584_v0 = vand.u32 2147483648, %v7854_v43  ;;  %vm3578_vm12 = vweird.f32 %v7854_v43 }
 0x680   : > { %v3561_v59 = vmul.f32 %v5372_v26, %v3560_v45  ;;  %v3582_v6 = vand.u32 2147483647, %v7854_v43 }
 0x681   : > { %v3502_v46 = vadd.f32 %v3501_v47, %v3473_v51  ;;  %v3585_v39 = vor.u32 1.1754944e-38, %v3584_v0 }
 0x682   : > { %v3562_v42 = vadd.f32 %v5372_v26, %v3561_v59  ;;  %vm3583_vm15 = vcmp.eq.f32.partialorder %v3582_v6, 8.507059e+37 }
 0x683   : > { %v3515_v9 = vsub.f32 0.0, %v3502_v46 }
 0x684   : > { %v5376_v20 = vpop.eup %5375  ;;  %v3566_v10 = vsel %vm3565_vm6, %v5372_v26, %v3562_v42  ;;  %v4768_v26 = vld [vmem:[%s5891_s20 + $0x110] sm:$0xff] }
 0x685   : > { %v5378_v57 = vpop.eup %5377  ;;  %v3538_v44 = vadd.f32 1.0, %v5376_v20  ;;  %v3571_v54 = vsel %vm3568_vm7, %v3570_v38, %v3566_v10  ;;  %v3527_v32 = vmul.f32 1.442695, %v3515_v9 }
 0x686   : > { %v3574_v58 = vmul.f32 %v5378_v57, %v7854_v43  ;;  %v3474_v48 = vpop.f32.mrf.mxu0  ;;  %vm3673_vm9 = vcmp.gt.f32.partialorder %v3571_v54, %v4767_v55  ;;  %vm3579_vm11 = vweird.f32 %v5378_v57 }
 0x687   : > { %5379 = vrcp.f32 %v3538_v44  ;;  %v3475_v14 = vadd.f32 %v7848_v30, %v3474_v48  ;;  %vm4782_vm10 = vmpackc.low %vm3673_vm9, %vm3672_vm8  ;;  %v3503_v21 = vpop.f32.mrf.mxu1  ;;  %v3597_v56 = vand.u32 2147483647, %v3538_v44  ;;  %v3599_v37 = vand.u32 2147483648, %v3538_v44 }
 0x688   : > { %5381 = vpow2.f32 %v3527_v32  ;;  %4783 = vmatmul.msk.bf16.vlgmr.msra.gmra.mxu2 %vm4782_vm10, %v5680_v50  ;;  %4791 = vmatmul.msk.bf16.vlgmr.msra.gmra.mxu3 %vm4782_vm10, %v5680_v50  ;;  %v3575_v61 = vsub.f32 1.0, %v3574_v58  ;;  %vm3580_vm13 = vmor %vm3578_vm12, %vm3579_vm11  ;;  %vm3593_vm0 = vweird.f32 %v3538_v44 }
 0x689   : > { %v3504_v19 = vadd.f32 %v3503_v21, %v3475_v14  ;;  %v3600_v62 = vor.u32 1.1754944e-38, %v3599_v37  ;;  %vm3598_vm2 = vcmp.eq.f32.partialorder %v3597_v56, 8.507059e+37 }
 0x68a   : > { %v3576_v35 = vmul.f32 %v5378_v57, %v3575_v61 }
 0x68b   : > { %v3516_v53 = vsub.f32 0.0, %v3504_v19  ;;  %v4770_v19 = vld [vmem:[%s5891_s20 + $0x120] sm:$0xff] }
 0x68c   : > { %v3577_v22 = vadd.f32 %v5378_v57, %v3576_v35  ;;  %v4771_v35 = vld [vmem:[%s5891_s20 + $0x128] sm:$0xff] }
 0x68d   : > { %v5380_v28 = vpop.eup %5379  ;;  %v3529_v2 = vmul.f32 1.442695, %v3516_v53 }
 0x68e   : > { %v5382_v25 = vpop.eup %5381  ;;  %v3589_v60 = vmul.f32 %v5380_v28, %v3538_v44  ;;  %v3477_v3 = vpop.f32.mrf.mxu0  ;;  %v3581_v13 = vsel %vm3580_vm13, %v5378_v57, %v3577_v22  ;;  %vm3594_vm14 = vweird.f32 %v5380_v28 }
 0x68f   : > { %v7864_v15 = vadd.f32 1.0, %v5382_v25  ;;  %v3478_v17 = vadd.f32 %v7848_v30, %v3477_v3  ;;  %5383 = vpow2.f32 %v3529_v2  ;;  %v3586_v12 = vsel %vm3583_vm15, %v3585_v39, %v3581_v13  ;;  %vm3595_vm1 = vmor %vm3593_vm0, %vm3594_vm14 }
 0x690   : > { %v3590_v8 = vsub.f32 1.0, %v3589_v60  ;;  %v3506_v5 = vpop.f32.mrf.mxu1  ;;  %vm3674_vm3 = vcmp.gt.f32.partialorder %v3586_v12, %v4768_v26 }
 0x691   : > { %5385 = vrcp.f32 %v7864_v15  ;;  %v3507_v4 = vadd.f32 %v3506_v5, %v3478_v17  ;;  %v3614_v11 = vand.u32 2147483648, %v7864_v15  ;;  %vm3608_vm7 = vweird.f32 %v7864_v15 }
 0x692   : > { %v3591_v24 = vmul.f32 %v5380_v28, %v3590_v8  ;;  %v3612_v55 = vand.u32 2147483647, %v7864_v15 }
 0x693   : > { %v3517_v7 = vsub.f32 0.0, %v3507_v4  ;;  %v3615_v54 = vor.u32 1.1754944e-38, %v3614_v11 }
 0x694   : > { %v3592_v1 = vadd.f32 %v5380_v28, %v3591_v24  ;;  %vm3613_vm10 = vcmp.eq.f32.partialorder %v3612_v55, 8.507059e+37 }
 0x695   : > { %v5384_v23 = vpop.eup %5383  ;;  %v3531_v63 = vmul.f32 1.442695, %v3517_v7  ;;  %v4772_v7 = vld [vmem:[%s5891_s20 + $0x130] sm:$0xff] }
 0x696   : > { %v3479_v52 = vpop.f32.mrf.mxu0  ;;  %v3596_v43 = vsel %vm3595_vm1, %v5380_v28, %v3592_v1  ;;  %v3540_v45 = vadd.f32 1.0, %v5384_v23  ;;  %v4773_v1 = vld [vmem:[%s5891_s20 + $0x138] sm:$0xff] }
 0x697   : > { %v5386_v33 = vpop.eup %5385  ;;  %v3480_v31 = vadd.f32 %v7848_v30, %v3479_v52  ;;  %v3601_v49 = vsel %vm3598_vm2, %v3600_v62, %v3596_v43  ;;  %5387 = vpow2.f32 %v3531_v63 }
 0x698   : > { %v3604_v51 = vmul.f32 %v5386_v33, %v7864_v15  ;;  %vm3675_vm4 = vcmp.gt.f32.partialorder %v3601_v49, %v4769_v29  ;;  %5389 = vrcp.f32 %v3540_v45  ;;  %v3508_v34 = vpop.f32.mrf.mxu1  ;;  %vm3609_vm6 = vweird.f32 %v5386_v33 }
 0x699   : > { %vm4784_vm5 = vmpackc.low %vm3675_vm4, %vm3674_vm3  ;;  %v3509_v59 = vadd.f32 %v3508_v34, %v3480_v31  ;;  %v3629_v9 = vand.u32 2147483648, %v3540_v45  ;;  %v3627_v44 = vand.u32 2147483647, %v3540_v45  ;;  %vm3623_vm11 = vweird.f32 %v3540_v45 }
 0x69a   : > { %4785 = vmatmul.msk.bf16.gmra.mxu2 %vm4784_vm5, %v5680_v50  ;;  %4793 = vmatmul.msk.bf16.gmra.mxu3 %vm4784_vm5, %v5680_v50  ;;  %v3605_v16 = vsub.f32 1.0, %v3604_v51  ;;  %vm3610_vm8 = vmor %vm3608_vm7, %vm3609_vm6 }
 0x69b   : > { %v3518_v27 = vsub.f32 0.0, %v3509_v59  ;;  %v3630_v21 = vor.u32 1.1754944e-38, %v3629_v9  ;;  %vm3628_vm13 = vcmp.eq.f32.partialorder %v3627_v44, 8.507059e+37 }
 0x69c   : > { %v3606_v47 = vmul.f32 %v5386_v33, %v3605_v16 }
 0x69d   : > { %v5388_v18 = vpop.eup %5387  ;;  %v3533_v46 = vmul.f32 1.442695, %v3518_v27 }
 0x69e   : > { %v5390_v30 = vpop.eup %5389  ;;  %v3541_v42 = vadd.f32 1.0, %v5388_v18  ;;  %v3607_v38 = vadd.f32 %v5386_v33, %v3606_v47 }
 0x69f   : > { %v3619_v36 = vmul.f32 %v5390_v30, %v3540_v45  ;;  %5391 = vpow2.f32 %v3533_v46  ;;  %vm3624_vm9 = vweird.f32 %v5390_v30 }
 0x6a0   : > { %5393 = vrcp.f32 %v3541_v42  ;;  %v3611_v10 = vsel %vm3610_vm8, %v5386_v33, %v3607_v38  ;;  %vm3625_vm12 = vmor %vm3623_vm11, %vm3624_vm9  ;;  %v3644_v17 = vand.u32 2147483648, %v3541_v42  ;;  %vm3638_vm2 = vweird.f32 %v3541_v42 }
 0x6a1   : > { %v3620_v20 = vsub.f32 1.0, %v3619_v36  ;;  %v3616_v61 = vsel %vm3613_vm10, %v3615_v54, %v3611_v10  ;;  %v3642_v0 = vand.u32 2147483647, %v3541_v42 }
 0x6a2   : > { %vm3676_vm14 = vcmp.gt.f32.partialorder %v3616_v61, %v4770_v19  ;;  %v3645_v4 = vor.u32 1.1754944e-38, %v3644_v17 }
 0x6a3   : > { %v3621_v57 = vmul.f32 %v5390_v30, %v3620_v20  ;;  %vm3643_vm5 = vcmp.eq.f32.partialorder %v3642_v0, 8.507059e+37 }
 0x6a5   : > { %v5392_v58 = vpop.eup %5391  ;;  %v3622_v32 = vadd.f32 %v5390_v30, %v3621_v57 }
 0x6a6   : > { %v5394_v48 = vpop.eup %5393  ;;  %v3542_v14 = vadd.f32 1.0, %v5392_v58 }
 0x6a7   : > { %v3634_v53 = vmul.f32 %v5394_v48, %v3541_v42  ;;  %v3626_v28 = vsel %vm3625_vm12, %v5390_v30, %v3622_v32  ;;  %vm3639_vm1 = vweird.f32 %v5394_v48 }
 0x6a8   : > { %5395 = vrcp.f32 %v3542_v14  ;;  %v3631_v25 = vsel %vm3628_vm13, %v3630_v21, %v3626_v28  ;;  %vm3640_vm3 = vmor %vm3638_vm2, %vm3639_vm1  ;;  %v3659_v8 = vand.u32 2147483648, %v3542_v14  ;;  %v3657_v37 = vand.u32 2147483647, %v3542_v14 }
 0x6a9   : > { %vm3677_vm15 = vcmp.gt.f32.partialorder %v3631_v25, %v4771_v35  ;;  %v3635_v60 = vsub.f32 1.0, %v3634_v53  ;;  %vm3653_vm6 = vweird.f32 %v3542_v14 }
 0x6aa   : > { %vm4786_vm0 = vmpackc.low %vm3677_vm15, %vm3676_vm14  ;;  %v3660_v39 = vor.u32 1.1754944e-38, %v3659_v8  ;;  %vm3658_vm8 = vcmp.eq.f32.partialorder %v3657_v37, 8.507059e+37 }
 0x6ab   : > { %4787 = vmatmul.msk.bf16.gmra.mxu2 %vm4786_vm0, %v5680_v50  ;;  %4795 = vmatmul.msk.bf16.gmra.mxu3 %vm4786_vm0, %v5680_v50  ;;  %v3636_v2 = vmul.f32 %v5394_v48, %v3635_v60 }
 0x6ad   : > { %v3637_v15 = vadd.f32 %v5394_v48, %v3636_v2 }
 0x6ae   : > { %v5396_v3 = vpop.eup %5395 }
 0x6af   : > { %v3649_v22 = vmul.f32 %v5396_v3, %v3542_v14  ;;  %v3641_v5 = vsel %vm3640_vm3, %v5394_v48, %v3637_v15  ;;  %vm3654_vm4 = vweird.f32 %v5396_v3 }
 0x6b0   : > { %v3646_v24 = vsel %vm3643_vm5, %v3645_v4, %v3641_v5  ;;  %vm3655_vm7 = vmor %vm3653_vm6, %vm3654_vm4 }
 0x6b1   : > { %v3650_v6 = vsub.f32 1.0, %v3649_v22  ;;  %vm3678_vm9 = vcmp.gt.f32.partialorder %v3646_v24, %v4772_v7  ;;  %v4799_v24 = vld [vmem:[%s6250_s18 + $0x208] sm:$0xff] }
 0x6b3   : > { %v3651_v56 = vmul.f32 %v5396_v3, %v3650_v6 }
 0x6b5   : > { %v3652_v13 = vadd.f32 %v5396_v3, %v3651_v56  ;;  %v4798_v56 = vld [vmem:[%s6250_s18 + $0x200] sm:$0xff] }
 0x6b7   : > { %v3656_v12 = vsel %vm3655_vm7, %v5396_v3, %v3652_v13 }
 0x6b8   : > { %v3661_v62 = vsel %vm3658_vm8, %v3660_v39, %v3656_v12 }
 0x6b9   : > { %vm3679_vm10 = vcmp.gt.f32.partialorder %v3661_v62, %v4773_v1 }
 0x6ba   : > { %vm4788_vm11 = vmpackc.low %vm3679_vm10, %vm3678_vm9 }
 0x6bb   : > { %4789 = vmatmul.msk.bf16.gmra.mxu2 %vm4788_vm11, %v5680_v50  ;;  %4797 = vmatmul.msk.bf16.gmra.mxu3 %vm4788_vm11, %v5680_v50 }
 0x70b   : > { %v3709_v26 = vpop.f32.mrf.mxu2  ;;  %v3738_v29 = vpop.f32.mrf.mxu3 }
 0x70c   : > { %v3710_v23 = vadd.f32 %v3709_v26, %v6158_v40  ;;  %v3739_v63 = vadd.f32 %v3738_v29, %v6160_v41 }
 0x70e   : > { %v3758_v52 = vsub.f32 0.0, %v3710_v23  ;;  %v3759_v43 = vsub.f32 0.0, %v3739_v63 }
 0x710   : > { %v3774_v33 = vmul.f32 1.442695, %v3758_v52  ;;  %v3776_v45 = vmul.f32 1.442695, %v3759_v43 }
 0x712   : > { %5397 = vpow2.f32 %v3774_v33  ;;  %v5681_v33 = vmov 0.0  }
 0x713   : > { %5399 = vpow2.f32 %v3776_v45  ;;  %v3711_v31 = vpop.f32.mrf.mxu2  ;;  %v3740_v49 = vpop.f32.mrf.mxu3 }
 0x714   : > { %v3712_v51 = vadd.f32 %v3711_v31, %v6158_v40  ;;  %v3741_v34 = vadd.f32 %v3740_v49, %v6160_v41 }
 0x716   : > { %v3760_v59 = vsub.f32 0.0, %v3712_v51  ;;  %v3761_v50 = vsub.f32 0.0, %v3741_v34 }
 0x718   : > { %v5398_v16 = vpop.eup %5397  ;;  %v3778_v27 = vmul.f32 1.442695, %v3760_v59  ;;  %v3780_v46 = vmul.f32 1.442695, %v3761_v50 }
 0x719   : > { %v5400_v47 = vpop.eup %5399  ;;  %v3806_v18 = vadd.f32 1.0, %v5398_v16 }
 0x71a   : > { %v3807_v30 = vadd.f32 1.0, %v5400_v47  ;;  %5401 = vpow2.f32 %v3778_v27 }
 0x71b   : > { %5403 = vrcp.f32 %v3806_v18  ;;  %v3831_v48 = vand.u32 2147483647, %v3806_v18  ;;  %v3833_v21 = vand.u32 2147483648, %v3806_v18  ;;  %vm3827_vm12 = vweird.f32 %v3806_v18 }
 0x71c   : > { %5405 = vrcp.f32 %v3807_v30  ;;  %v3846_v28 = vand.u32 2147483647, %v3807_v30  ;;  %v3848_v25 = vand.u32 2147483648, %v3807_v30  ;;  %vm3842_vm15 = vweird.f32 %v3807_v30 }
 0x71d   : > { %5407 = vpow2.f32 %v3780_v46  ;;  %v3714_v42 = vpop.f32.mrf.mxu2  ;;  %v3743_v36 = vpop.f32.mrf.mxu3  ;;  %vm7900_vm14 = vcmp.eq.f32.partialorder %v3831_v48, 8.507059e+37  ;;  %v3834_v5 = vor.u32 1.1754944e-38, %v3833_v21 }
 0x71e   : > { %v3715_v38 = vadd.f32 %v3714_v42, %v6158_v40  ;;  %v3744_v11 = vadd.f32 %v3743_v36, %v6160_v41  ;;  %vm3847_vm2 = vcmp.eq.f32.partialorder %v3846_v28, 8.507059e+37  ;;  %v3849_v4 = vor.u32 1.1754944e-38, %v3848_v25 }
 0x720   : > { %v5402_v55 = vpop.eup %5401  ;;  %v3762_v20 = vsub.f32 0.0, %v3715_v38  ;;  %v3763_v9 = vsub.f32 0.0, %v3744_v11  ;;  %v4800_v11 = vld [vmem:[%s6250_s18 + $0x210] sm:$0xff] }
 0x721   : > { %v5404_v10 = vpop.eup %5403  ;;  %v7894_v57 = vadd.f32 1.0, %v5402_v55 }
 0x722   : > { %v5406_v44 = vpop.eup %5405  ;;  %v3823_v54 = vmul.f32 %v5404_v10, %v3806_v18  ;;  %v3782_v58 = vmul.f32 1.442695, %v3762_v20  ;;  %v3784_v35 = vmul.f32 1.442695, %v3763_v9  ;;  %vm3828_vm13 = vweird.f32 %v5404_v10 }
 0x723   : > { %v5408_v32 = vpop.eup %5407  ;;  %v3838_v14 = vmul.f32 %v5406_v44, %v3807_v30  ;;  %5409 = vrcp.f32 %v7894_v57  ;;  %vm3843_vm0 = vweird.f32 %v5406_v44  ;;  %vm3829_vm1 = vmor %vm3827_vm12, %vm3828_vm13  ;;  %vm3857_vm4 = vweird.f32 %v7894_v57 }
 0x724   : > { %v3824_v61 = vsub.f32 1.0, %v3823_v54  ;;  %v7897_v19 = vadd.f32 1.0, %v5408_v32  ;;  %5411 = vpow2.f32 %v3782_v58  ;;  %vm3844_vm3 = vmor %vm3842_vm15, %vm3843_vm0  ;;  %v3863_v7 = vand.u32 2147483648, %v7894_v57  ;;  %v4801_v32 = vld [vmem:[%s6250_s18 + $0x218] sm:$0xff] }
 0x725   : > { %v3839_v53 = vsub.f32 1.0, %v3838_v14  ;;  %v3716_v60 = vpop.f32.mrf.mxu2  ;;  %v3745_v2 = vpop.f32.mrf.mxu3  ;;  %v3861_v31 = vand.u32 2147483647, %v7894_v57 }
 0x726   : > { %v3825_v3 = vmul.f32 %v5404_v10, %v3824_v61  ;;  %5413 = vrcp.f32 %v7897_v19  ;;  %v3717_v0 = vadd.f32 %v3716_v60, %v6158_v40  ;;  %v3746_v6 = vadd.f32 %v3745_v2, %v6160_v41 }
 0x727   : > { %v3840_v15 = vmul.f32 %v5406_v44, %v3839_v53  ;;  %5415 = vpow2.f32 %v3784_v35  ;;  %v3864_v50 = vor.u32 1.1754944e-38, %v3863_v7  ;;  %v3878_v27 = vand.u32 2147483648, %v7897_v19 }
 0x728   : > { %v3826_v17 = vadd.f32 %v5404_v10, %v3825_v3  ;;  %v3764_v26 = vsub.f32 0.0, %v3717_v0  ;;  %v3765_v29 = vsub.f32 0.0, %v3746_v6  ;;  %v3876_v20 = vand.u32 2147483647, %v7897_v19 }
 0x729   : > { %v5410_v8 = vpop.eup %5409  ;;  %v3841_v37 = vadd.f32 %v5406_v44, %v3840_v15  ;;  %vm3862_vm10 = vcmp.eq.f32.partialorder %v3861_v31, 8.507059e+37  ;;  %vm3872_vm11 = vweird.f32 %v7897_v19 }
 0x72a   : > { %v3830_v13 = vsel %vm3829_vm1, %v5404_v10, %v3826_v17  ;;  %v3853_v39 = vmul.f32 %v5410_v8, %v7894_v57  ;;  %v5412_v1 = vpop.eup %5411  ;;  %vm3858_vm7 = vweird.f32 %v5410_v8  ;;  %v3786_v42 = vmul.f32 1.442695, %v3764_v26 }
 0x72b   : > { %v3835_v12 = vsel %vm7900_vm14, %v3834_v5, %v3830_v13  ;;  %v3845_v62 = vsel %vm3844_vm3, %v5406_v44, %v3841_v37  ;;  %v7913_v43 = vadd.f32 1.0, %v5412_v1  ;;  %v3788_v36 = vmul.f32 1.442695, %v3765_v29  ;;  %vm3859_vm8 = vmor %vm3857_vm4, %vm3858_vm7  ;;  %v4802_v1 = vld [vmem:[%s6250_s18 + $0x220] sm:$0xff] }
 0x72c   : > { %v5414_v23 = vpop.eup %5413  ;;  %vm4079_vm5 = vcmp.gt.f32.partialorder %v3835_v12, %v4798_v56  ;;  %v3850_v63 = vsel %vm3847_vm2, %v3849_v4, %v3845_v62  ;;  %v3854_v52 = vsub.f32 1.0, %v3853_v39  ;;  %v3879_v57 = vor.u32 1.1754944e-38, %v3878_v27 }
 0x72d   : > { %v4814_v45 = vsel %vm4079_vm5, 1.0, %v5681_v33  ;;  %vm4080_vm6 = vcmp.gt.f32.partialorder %v3850_v63, %v4799_v24  ;;  %v3868_v49 = vmul.f32 %v5414_v23, %v7897_v19  ;;  %v5416_v51 = vpop.eup %5415  ;;  %5417 = vrcp.f32 %v7913_v43 }
 0x72e   : > { %4151 = vst [vmem:[%s7920_s15] sm:$0xff] %v4814_v45  ;;  %v4815_v34 = vsel %vm4080_vm6, 1.0, %v5681_v33  ;;  %v3855_v59 = vmul.f32 %v5410_v8, %v3854_v52  ;;  %v7927_v47 = vadd.f32 1.0, %v5416_v51  ;;  %v3719_v18 = vpop.f32.mrf.mxu2  ;;  %v3748_v46 = vpop.f32.mrf.mxu3  ;;  %vm3873_vm9 = vweird.f32 %v5414_v23  ;;  %v4803_v45 = vld [vmem:[%s6250_s18 + $0x228] sm:$0xff] }
 0x72f   : > { %4152 = vst [vmem:[%s7920_s15 + $0x8] sm:$0xff] %v4815_v34  ;;  %v3869_v16 = vsub.f32 1.0, %v3868_v49  ;;  %v3720_v38 = vadd.f32 %v3719_v18, %v6158_v40  ;;  %vm3874_vm13 = vmor %vm3872_vm11, %vm3873_vm9  ;;  %vm3877_vm14 = vcmp.eq.f32.partialorder %v3876_v20, 8.507059e+37  ;;  %v3749_v35 = vadd.f32 %v3748_v46, %v6160_v41 }
 0x730   : > { %v3856_v30 = vadd.f32 %v5410_v8, %v3855_v59  ;;  %5419 = vrcp.f32 %v7927_v47  ;;  %v3893_v25 = vand.u32 2147483648, %v7913_v43  ;;  %vm3887_vm0 = vweird.f32 %v7913_v43 }
 0x731   : > { %v3870_v55 = vmul.f32 %v5414_v23, %v3869_v16  ;;  %5421 = vpow2.f32 %v3786_v42  ;;  %v3766_v54 = vsub.f32 0.0, %v3720_v38  ;;  %v3891_v17 = vand.u32 2147483647, %v7913_v43 }
 0x732   : > { %v3860_v9 = vsel %vm3859_vm8, %v5410_v8, %v3856_v30  ;;  %5423 = vpow2.f32 %v3788_v36  ;;  %v3767_v0 = vsub.f32 0.0, %v3749_v35  ;;  %v3906_v56 = vand.u32 2147483647, %v7927_v47 }
 0x733   : > { %v3865_v10 = vsel %vm3862_vm10, %v3864_v50, %v3860_v9  ;;  %v3871_v44 = vadd.f32 %v5414_v23, %v3870_v55  ;;  %v5418_v58 = vpop.eup %5417  ;;  %v3790_v19 = vmul.f32 1.442695, %v3766_v54  ;;  %v3894_v24 = vor.u32 1.1754944e-38, %v3893_v25 }
 0x734   : > { %vm4081_vm12 = vcmp.gt.f32.partialorder %v3865_v10, %v4800_v11  ;;  %v3883_v61 = vmul.f32 %v5418_v58, %v7913_v43  ;;  %vm3888_vm1 = vweird.f32 %v5418_v58  ;;  %v3908_v39 = vand.u32 2147483648, %v7927_v47 }
 0x735   : > { %v4816_v48 = vsel %vm4081_vm12, 1.0, %v5681_v33  ;;  %v3875_v14 = vsel %vm3874_vm13, %v5414_v23, %v3871_v44  ;;  %5425 = vpow2.f32 %v3790_v19  ;;  %vm3889_vm2 = vmor %vm3887_vm0, %vm3888_vm1  ;;  %v3792_v62 = vmul.f32 1.442695, %v3767_v0 }
 0x736   : > { %4153 = vst [vmem:[%s7920_s15 + $0x10] sm:$0xff] %v4816_v48  ;;  %v3880_v21 = vsel %vm3877_vm14, %v3879_v57, %v3875_v14  ;;  %v5420_v53 = vpop.eup %5419  ;;  %v3884_v28 = vsub.f32 1.0, %v3883_v61  ;;  %v3721_v60 = vpop.f32.mrf.mxu2  ;;  %vm3892_vm4 = vcmp.eq.f32.partialorder %v3891_v17, 8.507059e+37  ;;  %vm3902_vm5 = vweird.f32 %v7927_v47 }
 0x737   : > { %vm4082_vm15 = vcmp.gt.f32.partialorder %v3880_v21, %v4801_v32  ;;  %v3898_v3 = vmul.f32 %v5420_v53, %v7927_v47  ;;  %v5422_v22 = vpop.eup %5421  ;;  %v3750_v6 = vpop.f32.mrf.mxu3  ;;  %v3722_v4 = vadd.f32 %v3721_v60, %v6158_v40  ;;  %vm3903_vm3 = vweird.f32 %v5420_v53 }
 0x738   : > { %v4817_v2 = vsel %vm4082_vm15, 1.0, %v5681_v33  ;;  %v3885_v15 = vmul.f32 %v5418_v58, %v3884_v28  ;;  %v5424_v8 = vpop.eup %5423  ;;  %v7948_v37 = vadd.f32 1.0, %v5422_v22  ;;  %vm3907_vm6 = vcmp.eq.f32.partialorder %v3906_v56, 8.507059e+37  ;;  %vm3904_vm8 = vmor %vm3902_vm5, %vm3903_vm3 }
 0x739   : > { %4154 = vst [vmem:[%s7920_s15 + $0x18] sm:$0xff] %v4817_v2  ;;  %v3899_v5 = vsub.f32 1.0, %v3898_v3  ;;  %v7952_v7 = vadd.f32 1.0, %v5424_v8  ;;  %v3768_v52 = vsub.f32 0.0, %v3722_v4  ;;  %v3909_v43 = vor.u32 1.1754944e-38, %v3908_v39  ;;  %v4804_v3 = vld [vmem:[%s6250_s18 + $0x230] sm:$0xff] }
 0x73a   : > { %v3886_v13 = vadd.f32 %v5418_v58, %v3885_v15  ;;  %5427 = vrcp.f32 %v7948_v37  ;;  %v3751_v49 = vadd.f32 %v3750_v6, %v6160_v41  ;;  %v3921_v59 = vand.u32 2147483647, %v7948_v37  ;;  %v4805_v8 = vld [vmem:[%s6250_s18 + $0x238] sm:$0xff] }
 0x73b   : > { %v3900_v12 = vmul.f32 %v5420_v53, %v3899_v5  ;;  %5429 = vrcp.f32 %v7952_v7  ;;  %v5426_v29 = vpop.eup %5425  ;;  %vm3917_vm10 = vweird.f32 %v7948_v37  ;;  %v3923_v27 = vand.u32 2147483648, %v7948_v37 }
 0x73c   : > { %v3890_v26 = vsel %vm3889_vm2, %v5418_v58, %v3886_v13  ;;  %v7961_v31 = vadd.f32 1.0, %v5426_v29  ;;  %5431 = vpow2.f32 %v3792_v62  ;;  %v3794_v47 = vmul.f32 1.442695, %v3768_v52  ;;  %v4806_v52 = vld [vmem:[%s6250_s18 + $0x240] sm:$0xff] }
 0x73d   : > { %v3895_v23 = vsel %vm3892_vm4, %v3894_v24, %v3890_v26  ;;  %v3901_v63 = vadd.f32 %v5420_v53, %v3900_v12  ;;  %vm3932_vm11 = vweird.f32 %v7952_v7  ;;  %v3769_v36 = vsub.f32 0.0, %v3751_v49 }
 0x73e   : > { %vm4083_vm7 = vcmp.gt.f32.partialorder %v3895_v23, %v4802_v1  ;;  %5433 = vrcp.f32 %v7961_v31  ;;  %v3724_v18 = vpop.f32.mrf.mxu2  ;;  %vm7974_vm12 = vcmp.eq.f32.partialorder %v3921_v59, 8.507059e+37  ;;  %v3936_v20 = vand.u32 2147483647, %v7952_v7 }
 0x73f   : > { %v4818_v51 = vsel %vm4083_vm7, 1.0, %v5681_v33  ;;  %v3905_v34 = vsel %vm3904_vm8, %v5420_v53, %v3901_v63  ;;  %v3753_v38 = vpop.f32.mrf.mxu3  ;;  %v3938_v9 = vand.u32 2147483648, %v7952_v7  ;;  %5435 = vpow2.f32 %v3794_v47 }
 0x740   : > { %4155 = vst [vmem:[%s7920_s15 + $0x20] sm:$0xff] %v4818_v51  ;;  %v3910_v50 = vsel %vm3907_vm6, %v3909_v43, %v3905_v34  ;;  %v5428_v16 = vpop.eup %5427  ;;  %v3796_v44 = vmul.f32 1.442695, %v3769_v36  ;;  %v3725_v54 = vadd.f32 %v3724_v18, %v6158_v40  ;;  %v3953_v32 = vand.u32 2147483648, %v7961_v31 }
 0x741   : > { %vm4084_vm9 = vcmp.gt.f32.partialorder %v3910_v50, %v4803_v45  ;;  %v5430_v46 = vpop.eup %5429  ;;  %v3913_v42 = vmul.f32 %v5428_v16, %v7948_v37  ;;  %vm3918_vm13 = vweird.f32 %v5428_v16  ;;  %v3754_v48 = vadd.f32 %v3753_v38, %v6160_v41 }
 0x742   : > { %v4819_v30 = vsel %vm4084_vm9, 1.0, %v5681_v33  ;;  %v3928_v55 = vmul.f32 %v5430_v46, %v7952_v7  ;;  %v5432_v58 = vpop.eup %5431  ;;  %5437 = vpow2.f32 %v3796_v44  ;;  %v3770_v19 = vsub.f32 0.0, %v3725_v54  ;;  %vm3919_vm0 = vmor %vm3917_vm10, %vm3918_vm13 }
 0x743   : > { %4156 = vst [vmem:[%s7920_s15 + $0x28] sm:$0xff] %v4819_v30  ;;  %v3914_v10 = vsub.f32 1.0, %v3913_v42  ;;  %v7984_v21 = vadd.f32 1.0, %v5432_v58  ;;  %v3924_v35 = vor.u32 1.1754944e-38, %v3923_v27  ;;  %vm3933_vm14 = vweird.f32 %v5430_v46 }
 0x744   : > { %v3929_v57 = vsub.f32 1.0, %v3928_v55  ;;  %v5434_v14 = vpop.eup %5433  ;;  %vm7987_vm15 = vcmp.eq.f32.partialorder %v3936_v20, 8.507059e+37  ;;  %v3939_v2 = vor.u32 1.1754944e-38, %v3938_v9  ;;  %vm3947_vm1 = vweird.f32 %v7961_v31  ;;  %vm3934_vm2 = vmor %vm3932_vm11, %vm3933_vm14  ;;  %v4807_v9 = vld [vmem:[%s6250_s18 + $0x248] sm:$0xff] }
 0x745   : > { %v3915_v61 = vmul.f32 %v5428_v16, %v3914_v10  ;;  %v3943_v28 = vmul.f32 %v5434_v14, %v7961_v31  ;;  %5439 = vrcp.f32 %v7984_v21  ;;  %v3798_v17 = vmul.f32 1.442695, %v3770_v19  ;;  %v5436_v0 = vpop.eup %5435 }
 0x746   : > { %v3930_v53 = vmul.f32 %v5430_v46, %v3929_v57  ;;  %v3951_v5 = vand.u32 2147483647, %v7961_v31  ;;  %v3954_v56 = vor.u32 1.1754944e-38, %v3953_v32  ;;  %v3771_v4 = vsub.f32 0.0, %v3754_v48  ;;  %v3726_v39 = vpop.f32.mrf.mxu2 }
 0x747   : > { %v3916_v25 = vadd.f32 %v5428_v16, %v3915_v61  ;;  %v3944_v15 = vsub.f32 1.0, %v3943_v28  ;;  %vm3948_vm3 = vweird.f32 %v5434_v14  ;;  %v8005_v12 = vadd.f32 1.0, %v5436_v0  ;;  %v3755_v50 = vpop.f32.mrf.mxu3 }
 0x748   : > { %v3931_v22 = vadd.f32 %v5430_v46, %v3930_v53  ;;  %v5438_v1 = vpop.eup %5437  ;;  %5441 = vpow2.f32 %v3798_v17  ;;  %vm3949_vm6 = vmor %vm3947_vm1, %vm3948_vm3  ;;  %v3800_v43 = vmul.f32 1.442695, %v3771_v4  ;;  %v3727_v45 = vadd.f32 %v3726_v39, %v6158_v40  ;;  %v4808_v17 = vld [vmem:[%s6250_s18 + $0x250] sm:$0xff] }
 0x749   : > { %v3920_v6 = vsel %vm3919_vm0, %v5428_v16, %v3916_v25  ;;  %v3945_v24 = vmul.f32 %v5434_v14, %v3944_v15  ;;  %v8008_v29 = vadd.f32 1.0, %v5438_v1  ;;  %5443 = vrcp.f32 %v8005_v12 }
 0x74a   : > { %v3925_v37 = vsel %vm7974_vm12, %v3924_v35, %v3920_v6  ;;  %v3935_v13 = vsel %vm3934_vm2, %v5430_v46, %v3931_v22  ;;  %vm3952_vm7 = vcmp.eq.f32.partialorder %v3951_v5, 8.507059e+37  ;;  %v3966_v31 = vand.u32 2147483647, %v7984_v21 }
 0x74b   : > { %vm4085_vm4 = vcmp.gt.f32.partialorder %v3925_v37, %v4804_v3  ;;  %v3940_v7 = vsel %vm7987_vm15, %v3939_v2, %v3935_v13  ;;  %v3946_v26 = vadd.f32 %v5434_v14, %v3945_v24  ;;  %v5440_v23 = vpop.eup %5439  ;;  %5445 = vrcp.f32 %v8008_v29  ;;  %v4809_v13 = vld [vmem:[%s6250_s18 + $0x258] sm:$0xff] }
 0x74c   : > { %v4820_v62 = vsel %vm4085_vm4, 1.0, %v5681_v33  ;;  %vm4086_vm5 = vcmp.gt.f32.partialorder %v3940_v7, %v4805_v8  ;;  %v3958_v51 = vmul.f32 %v5440_v23, %v7984_v21  ;;  %v3968_v47 = vand.u32 2147483648, %v7984_v21 }
 0x74d   : > { %4157 = vst [vmem:[%s7920_s15 + $0x30] sm:$0xff] %v4820_v62  ;;  %v4821_v63 = vsel %vm4086_vm5, 1.0, %v5681_v33  ;;  %v3950_v49 = vsel %vm3949_vm6, %v5434_v14, %v3946_v26  ;;  %5447 = vpow2.f32 %v3800_v43  ;;  %v3772_v40 = vsub.f32 0.0, %v3727_v45 }
 0x74e   : > { %4158 = vst [vmem:[%s7920_s15 + $0x38] sm:$0xff] %v4821_v63  ;;  %v3955_v34 = vsel %vm3952_vm7, %v3954_v56, %v3950_v49  ;;  %v3959_v59 = vsub.f32 1.0, %v3958_v51  ;;  %v5442_v16 = vpop.eup %5441  ;;  %vm3963_vm9 = vweird.f32 %v5440_v23  ;;  %vm3962_vm10 = vweird.f32 %v7984_v21  ;;  %v4810_v49 = vld [vmem:[%s6250_s18 + $0x260] sm:$0xff] }
 0x74f   : > { %vm4087_vm8 = vcmp.gt.f32.partialorder %v3955_v34, %v4806_v52  ;;  %v8024_v46 = vadd.f32 1.0, %v5442_v16  ;;  %v5444_v30 = vpop.eup %5443  ;;  %v3802_v42 = vmul.f32 1.442695, %v3772_v40  ;;  %v3756_v36 = vadd.f32 %v3755_v50, %v6160_v41  ;;  %vm3964_vm12 = vmor %vm3962_vm10, %vm3963_vm9 }
 0x750   : > { %v4822_v27 = vsel %vm4087_vm8, 1.0, %v5681_v33  ;;  %v3960_v18 = vmul.f32 %v5440_v23, %v3959_v59  ;;  %vm3967_vm11 = vcmp.eq.f32.partialorder %v3966_v31, 8.507059e+37  ;;  %v3973_v11 = vmul.f32 %v5444_v30, %v8005_v12 }
 0x751   : > { %4159 = vst [vmem:[%s7920_s15 + $0x40] sm:$0xff] %v4822_v27  ;;  %5449 = vrcp.f32 %v8024_v46  ;;  %v5446_v55 = vpop.eup %5445  ;;  %v3969_v20 = vor.u32 1.1754944e-38, %v3968_v47  ;;  %vm3977_vm13 = vweird.f32 %v8005_v12  ;;  %v3981_v10 = vand.u32 2147483647, %v8005_v12 }
 0x752   : > { %v3961_v38 = vadd.f32 %v5440_v23, %v3960_v18  ;;  %5451 = vpow2.f32 %v3802_v42  ;;  %v3974_v54 = vsub.f32 1.0, %v3973_v11  ;;  %v3983_v58 = vand.u32 2147483648, %v8005_v12 }
 0x753   : > { %v3988_v41 = vmul.f32 %v5446_v55, %v8008_v29  ;;  %v5448_v57 = vpop.eup %5447  ;;  %vm3978_vm14 = vweird.f32 %v5444_v30  ;;  %v3996_v48 = vand.u32 2147483647, %v8008_v29  ;;  %v3773_v14 = vsub.f32 0.0, %v3756_v36  ;;  %v4811_v36 = vld [vmem:[%s6250_s18 + $0x268] sm:$0xff] }
 0x754   : > { %v3965_v44 = vsel %vm3964_vm12, %v5440_v23, %v3961_v38  ;;  %v3975_v61 = vmul.f32 %v5444_v30, %v3974_v54  ;;  %v8036_v19 = vadd.f32 1.0, %v5448_v57  ;;  %vm8039_vm0 = vcmp.eq.f32.partialorder %v3981_v10, 8.507059e+37  ;;  %vm3979_vm2 = vmor %vm3977_vm13, %vm3978_vm14 }
 0x755   : > { %v3970_v32 = vsel %vm3967_vm11, %v3969_v20, %v3965_v44  ;;  %v3989_v21 = vsub.f32 1.0, %v3988_v41  ;;  %v3998_v28 = vand.u32 2147483648, %v8008_v29  ;;  %v3804_v25 = vmul.f32 1.442695, %v3773_v14  ;;  %v4812_v41 = vld [vmem:[%s6250_s18 + $0x270] sm:$0xff] }
 0x756   : > { %vm4088_vm15 = vcmp.gt.f32.partialorder %v3970_v32, %v4807_v9  ;;  %v3976_v2 = vadd.f32 %v5444_v30, %v3975_v61  ;;  %vm3993_vm1 = vweird.f32 %v5446_v55  ;;  %5453 = vrcp.f32 %v8036_v19 }
 0x757   : > { %v4823_v35 = vsel %vm4088_vm15, 1.0, %v5681_v33  ;;  %v5450_v60 = vpop.eup %5449  ;;  %v3990_v3 = vmul.f32 %v5446_v55, %v3989_v21  ;;  %v3984_v15 = vor.u32 1.1754944e-38, %v3983_v58  ;;  %vm3992_vm3 = vweird.f32 %v8008_v29 }
 0x758   : > { %4160 = vst [vmem:[%s7920_s15 + $0x48] sm:$0xff] %v4823_v35  ;;  %v5452_v22 = vpop.eup %5451  ;;  %vm8051_vm4 = vcmp.eq.f32.partialorder %v3996_v48, 8.507059e+37  ;;  %v4003_v6 = vmul.f32 %v5450_v60, %v8024_v46  ;;  %v3980_v8 = vsel %vm3979_vm2, %v5444_v30, %v3976_v2  ;;  %5455 = vpow2.f32 %v3804_v25  ;;  %vm3994_vm5 = vmor %vm3992_vm3, %vm3993_vm1  ;;  %v4813_v25 = vld [vmem:[%s6250_s18 + $0x278] sm:$0xff]  ;;  %s5605_s18 = scalar_lea.hbm %s8132_s7, 256 }
 0x759   : > { %v3991_v5 = vadd.f32 %v5446_v55, %v3990_v3  ;;  %v8056_v56 = vadd.f32 1.0, %v5452_v22  ;;  %v3985_v4 = vsel %vm8039_vm0, %v3984_v15, %v3980_v8  ;;  %v3999_v37 = vor.u32 1.1754944e-38, %v3998_v28  ;;  %p5607_p3 = scmp.lt.s32.totalorder %s5605_s18, %s5601_s19 }
 0x75a   : > { %v4004_v24 = vsub.f32 1.0, %v4003_v6  ;;  %v4011_v39 = vand.u32 2147483647, %v8024_v46  ;;  %vm4089_vm6 = vcmp.gt.f32.partialorder %v3985_v4, %v4808_v17  ;;  %v4013_v7 = vand.u32 2147483648, %v8024_v46 }
 0x75b   : > { %v3995_v1 = vsel %vm3994_vm5, %v5446_v55, %v3991_v5  ;;  %5457 = vrcp.f32 %v8056_v56  ;;  %v4824_v12 = vsel %vm4089_vm6, 1.0, %v5681_v33  ;;  %vm4008_vm7 = vweird.f32 %v5450_v60  ;;  %p5608_p7 = por %p5607_p3, %p5606_p13 }
 0x75c   : > { %v4000_v62 = vsel %vm8051_vm4, %v3999_v37, %v3995_v1  ;;  %v4005_v26 = vmul.f32 %v5450_v60, %v4004_v24  ;;  %v5454_v29 = vpop.eup %5453  ;;  %4161 = vst [vmem:[%s7920_s15 + $0x50] sm:$0xff] %v4824_v12  ;;  %vm4007_vm9 = vweird.f32 %v8024_v46  ;;  %v4014_v45 = vor.u32 1.1754944e-38, %v4013_v7 }
 0x75d   : > { %vm4090_vm8 = vcmp.gt.f32.partialorder %v4000_v62, %v4809_v13  ;;  %v4018_v52 = vmul.f32 %v5454_v29, %v8036_v19  ;;  %vm4009_vm10 = vmor %vm4007_vm9, %vm4008_vm7  ;;  %vm4012_vm11 = vcmp.eq.f32.partialorder %v4011_v39, 8.507059e+37  ;;  %v4026_v16 = vand.u32 2147483647, %v8036_v19  ;;  %p5609_p8 = pnand %p5608_p7, %p5604_p6 }
 0x75e   : > { %v4825_v23 = vsel %vm4090_vm8, 1.0, %v5681_v33  ;;  %v4006_v63 = vadd.f32 %v5450_v60, %v4005_v26  ;;  %v5456_v43 = vpop.eup %5455  ;;  %v4028_v27 = vand.u32 2147483648, %v8036_v19  ;;  %vm4023_vm13 = vweird.f32 %v5454_v29 }
 0x75f   : > { %4162 = vst [vmem:[%s7920_s15 + $0x58] sm:$0xff] %v4825_v23  ;;  %v4019_v34 = vsub.f32 1.0, %v4018_v52  ;;  %v3821_v59 = vadd.f32 1.0, %v5456_v43  ;;  %vm4022_vm14 = vweird.f32 %v8036_v19  ;;  %vm4027_vm0 = vcmp.eq.f32.partialorder %v4026_v16, 8.507059e+37 }
 0x760   : > { %v4010_v51 = vsel %vm4009_vm10, %v5450_v60, %v4006_v63  ;;  %vm4024_vm15 = vmor %vm4022_vm14, %vm4023_vm13  ;;  %v4029_v42 = vor.u32 1.1754944e-38, %v4028_v27  ;;  %v4043_v38 = vand.u32 2147483648, %v8056_v56  ;;  %v4041_v20 = vand.u32 2147483647, %v8056_v56 }
 0x761   : > { %v5458_v31 = vpop.eup %5457  ;;  %v4015_v50 = vsel %vm4012_vm11, %v4014_v45, %v4010_v51  ;;  %v4020_v47 = vmul.f32 %v5454_v29, %v4019_v34  ;;  %5459 = vrcp.f32 %v3821_v59  ;;  %vm4037_vm3 = vweird.f32 %v8056_v56 }
 0x762   : > { %vm4091_vm12 = vcmp.gt.f32.partialorder %v4015_v50, %v4810_v49  ;;  %v4033_v40 = vmul.f32 %v5458_v31, %v8056_v56  ;;  %vm4038_vm1 = vweird.f32 %v5458_v31  ;;  %v4044_v58 = vor.u32 1.1754944e-38, %v4043_v38 }
 0x763   : > { %v4826_v18 = vsel %vm4091_vm12, 1.0, %v5681_v33  ;;  %v4021_v46 = vadd.f32 %v5454_v29, %v4020_v47  ;;  %vm4039_vm4 = vmor %vm4037_vm3, %vm4038_vm1  ;;  %vm4042_vm5 = vcmp.eq.f32.partialorder %v4041_v20, 8.507059e+37  ;;  %v4058_v21 = vand.u32 2147483648, %v3821_v59 }
 0x764   : > { %4163 = vst [vmem:[%s7920_s15 + $0x60] sm:$0xff] %v4826_v18  ;;  %v4034_v30 = vsub.f32 1.0, %v4033_v40  ;;  %v4056_v35 = vand.u32 2147483647, %v3821_v59  ;;  %vm4052_vm8 = vweird.f32 %v3821_v59 }
 0x765   : > { %v4025_v11 = vsel %vm4024_vm15, %v5454_v29, %v4021_v46  ;;  %v4059_v28 = vor.u32 1.1754944e-38, %v4058_v21 }
 0x766   : > { %v4035_v55 = vmul.f32 %v5458_v31, %v4034_v30  ;;  %v4030_v9 = vsel %vm4027_vm0, %v4029_v42, %v4025_v11  ;;  %vm4057_vm10 = vcmp.eq.f32.partialorder %v4056_v35, 8.507059e+37 }
 0x767   : > { %vm4092_vm2 = vcmp.gt.f32.partialorder %v4030_v9, %v4811_v36  ;;  %v5460_v44 = vpop.eup %5459 }
 0x768   : > { %v4036_v10 = vadd.f32 %v5458_v31, %v4035_v55  ;;  %v4827_v54 = vsel %vm4092_vm2, 1.0, %v5681_v33  ;;  %v4048_v32 = vmul.f32 %v5460_v44, %v3821_v59  ;;  %vm4053_vm7 = vweird.f32 %v5460_v44 }
 0x769   : > { %4164 = vst [vmem:[%s7920_s15 + $0x68] sm:$0xff] %v4827_v54  ;;  %vm4054_vm9 = vmor %vm4052_vm8, %vm4053_vm7 }
 0x76a   : > { %v4040_v57 = vsel %vm4039_vm4, %v5458_v31, %v4036_v10  ;;  %v4049_v14 = vsub.f32 1.0, %v4048_v32 }
 0x76b   : > { %v4045_v48 = vsel %vm4042_vm5, %v4044_v58, %v4040_v57 }
 0x76c   : > { %vm4093_vm6 = vcmp.gt.f32.partialorder %v4045_v48, %v4812_v41  ;;  %v4050_v19 = vmul.f32 %v5460_v44, %v4049_v14 }
 0x76d   : > { %v4828_v61 = vsel %vm4093_vm6, 1.0, %v5681_v33 }
 0x76e   : > { %4165 = vst [vmem:[%s7920_s15 + $0x70] sm:$0xff] %v4828_v61  ;;  %v4051_v53 = vadd.f32 %v5460_v44, %v4050_v19 }
 0x770   : > { %v4055_v60 = vsel %vm4054_vm9, %v5460_v44, %v4051_v53 }
 0x771   : > { %v4060_v2 = vsel %vm4057_vm10, %v4059_v28, %v4055_v60 }
 0x772   : > { %vm4094_vm11 = vcmp.gt.f32.partialorder %v4060_v2, %v4813_v25 }
 0x773   : > { %v4829_v3 = vsel %vm4094_vm11, 1.0, %v5681_v33 }
 0x774   : > { %4166 = vst [vmem:[%s7920_s15 + $0x78] sm:$0xff] %v4829_v3 }
 0x775   : > { %5612 = shalt.err (!%p5609_p8)
}
 0x776   : > { %s5682_s9 = smov 256   ;;  %s5683_s23 = smov 16  }
 0x777   : > { %4907 = dma.vmem_to_hbm [thread:$0]  (%p5776_p11), %s4182_s28, 2048, %s4184_s17, %s4168_s8, %s5682_s9, %s5682_s9, %s5683_s23  }
 0x778 PF: > { %s4198_s2 = sand.u32 1, %s5647_s24   ;;  %p4917_p9 = pnand %p4323_p2, %p5780_p12 }
 0x779   : > { %s4199_s22 = scalar_lea.sflag [#allocation4], %s4198_s2 }
 0x77a   : > { %p4918_p10 = pneg %p4917_p9 }
 0x77c   : > { %5642 = dma.done.wait (%p4918_p10), %s4199_s22, 2048  }
 0x77d   : > { %5644 = vsyncadd (%p4918_p10), %s4199_s22, 4294965248  ;;  %s8322_s27 = sld [smem:[#allocation23_spill]]  ;;  %s8325_s24 = smov %s5651_s25 }
 0x77e   : > { %s8323_s11 = sld [smem:[#allocation22_spill]] }
 0x77f   : > { %s8324_s26 = sld [smem:[#allocation24_spill]] }
 0x783   : > { %p24_p1 = scmp.ge.s32.totalorder %s8322_s27, 4  }
 0x784   : > { %s8326_s25 = smov %s8323_s11 }
 0x785   :  { %26 = sbr.rel (!%p24_p1) target bundleno = 11 (0xb), region = 143 }
 0x78a   :  { %4205 = vsyncpa [#allocation3], 1 }
 0x78b   :  { %4207 = vsyncpa [#allocation3 + $0x1], 1 }
 0x78c   :  { %4208 = vsyncpa [#allocation6], 1 }
 0x78d   :  { %4209 = vsyncpa [#allocation9], 1 }
 0x78e   :  { %4211 = vsyncpa [#allocation9 + $0x1], 1 }
 0x78f   :  { %4212 = vsyncpa [#allocation4], 1 }
 0x790   :  { %4214 = vsyncpa [#allocation4 + $0x1], 1 }

</bundles_post_ra>
